<compile_context>
chip_gen: v7x
topology: tpu7x:2x2x1
jax: 0.10.0
libtpu: 0.0.40
codegen_flags: <defaults>
</compile_context>

<pallas_src>
import jax
import jax.numpy as jnp
from jax import lax
from jax.experimental import pallas as pl
from jax.experimental.pallas import tpu as pltpu

LANE = 128


def _round_up(v, m):
    return (v + m - 1) // m * m


def _pad_to(a, shape):
    return jnp.pad(a, [(0, t - s) for s, t in zip(a.shape, shape)])


def bottleneck_kernel(x_ref, w1_ref, w2_ref, w3_ref, b1_ref, b2_ref, b3_ref,
                      o_ref, pad_ref):
    H, W, Ci = x_ref.shape[1], x_ref.shape[2], x_ref.shape[3]
    Pp = w1_ref.shape[1]
    HW = H * W

    # ---- conv1 (1x1, BN scale pre-folded) + bias + ReLU ----
    x_flat = x_ref[0].reshape(HW, Ci)
    h1 = jnp.dot(x_flat, w1_ref[...], preferred_element_type=jnp.float32)
    h1 = jnp.maximum(h1 + b1_ref[...], 0.0).astype(pad_ref.dtype)

    # ---- conv2 (3x3, stride 1, pad 1) as a single im2col matmul ----
    # Write the padded image into scratch: W-halo is concatenated into the
    # interior row store (minor dims stay fully aligned); only the two H-halo
    # rows need explicit zero stores, done every step (megacore-safe).
    h1_img = h1.reshape(H, W, Pp)
    zw = jnp.zeros((H, 1, Pp), pad_ref.dtype)
    zrow = jnp.zeros((1, W + 2, Pp), pad_ref.dtype)
    pad_ref[0:1, :, :] = zrow
    pad_ref[H + 1:H + 2, :, :] = zrow
    pad_ref[1:H + 1, :, :] = jnp.concatenate([zw, h1_img, zw], axis=1)

    # im2col: 9 taps concatenated along K (each 128-lane aligned column band),
    # then one long-K matmul on the MXU instead of 9 short ones.
    patch = jnp.concatenate(
        [pad_ref[dy:dy + H, dx:dx + W, :].reshape(HW, Pp)
         for dy in range(3) for dx in range(3)],
        axis=-1)                                              # (HW, 9*Pp)
    h2 = jnp.dot(patch, w2_ref[...], preferred_element_type=jnp.float32)
    h2 = jnp.maximum(h2 + b2_ref[...], 0.0).astype(x_ref.dtype)

    # ---- conv3 (1x1) + bias + residual (re-read x block) + ReLU ----
    h3 = jnp.dot(h2, w3_ref[...], preferred_element_type=jnp.float32)
    h3 = h3 + b3_ref[...]
    out = jnp.maximum(h3 + x_ref[0].reshape(HW, Ci).astype(jnp.float32), 0.0)
    o_ref[0] = out.reshape(H, W, Ci).astype(o_ref.dtype)


def bottleneck_pallas(x, w1, w2, w3, s1, b1, s2, b2, s3, b3):
    """x: (N,H,W,Cin); w1: (Cin,P); w2: (3,3,P,P) HWIO; w3: (P, Cin).
    s*/b*: per-channel inference-BN scale/bias (1-D)."""
    N, H, W, Cin = x.shape
    Cin_w, P = w1.shape
    P3, C3 = w3.shape
    assert Cin_w == Cin and P3 == P
    assert C3 == Cin, "downsample=None requires in_planes == planes * expansion"

    Pp = _round_up(P, LANE)          # lane-padded planes
    Cp = _round_up(Cin, LANE)        # lane-padded in/out (residual) channels

    # Fold BN scale into conv output channels once (one-time transform).
    w1f = w1 * s1[None, :]
    w2f = w2 * s2[None, None, None, :]
    w3f = w3 * s3[None, :]

    # Zero-pad channels to 128-lane multiples; padded channels stay exactly 0
    # through every stage (zero weights, zero bias, ReLU(0)=0), so results in
    # the original channels are unchanged.
    w1p = _pad_to(w1f, (Cp, Pp))
    w2p = _pad_to(w2f, (3, 3, Pp, Pp)).reshape(9 * Pp, Pp)    # im2col weight
    w3p = _pad_to(w3f, (Pp, Cp))
    b1p = _pad_to(b1.reshape(1, P).astype(jnp.float32), (1, Pp))
    b2p = _pad_to(b2.reshape(1, P).astype(jnp.float32), (1, Pp))
    b3p = _pad_to(b3.reshape(1, C3).astype(jnp.float32), (1, Cp))
    xp = _pad_to(x, (N, H, W, Cp))

    out_p = pl.pallas_call(
        bottleneck_kernel,
        out_shape=jax.ShapeDtypeStruct((N, H, W, Cp), x.dtype),
        grid_spec=pltpu.PrefetchScalarGridSpec(
            num_scalar_prefetch=0,
            grid=(N,),
            in_specs=[
                pl.BlockSpec((1, H, W, Cp), lambda n: (n, 0, 0, 0)),
                pl.BlockSpec((Cp, Pp), lambda n: (0, 0)),
                pl.BlockSpec((9 * Pp, Pp), lambda n: (0, 0)),
                pl.BlockSpec((Pp, Cp), lambda n: (0, 0)),
                pl.BlockSpec((1, Pp), lambda n: (0, 0)),
                pl.BlockSpec((1, Pp), lambda n: (0, 0)),
                pl.BlockSpec((1, Cp), lambda n: (0, 0)),
            ],
            out_specs=pl.BlockSpec((1, H, W, Cp), lambda n: (n, 0, 0, 0)),
            scratch_shapes=[pltpu.VMEM((H + 2, W + 2, Pp), x.dtype)],
        ),
        compiler_params=pltpu.CompilerParams(
            dimension_semantics=("parallel",),       # megacore-shard batch
            vmem_limit_bytes=32 * 1024 * 1024),      # safe on v5e/v6e/v7x
    )(xp, w1p, w2p, w3p, b1p, b2p, b3p)

    return out_p[..., :C3]


def make_bn(key, c, eps=1e-5):
    k1, k2, k3, k4 = jax.random.split(key, 4)
    gamma = 1.0 + 0.1 * jax.random.normal(k1, (c,), jnp.float32)
    beta = 0.05 * jax.random.normal(k2, (c,), jnp.float32)
    mean = 0.1 * jax.random.normal(k3, (c,), jnp.float32)
    var = 1.0 + 0.5 * jnp.abs(jax.random.normal(k4, (c,), jnp.float32))
    scale = gamma / jnp.sqrt(var + eps)
    bias = beta - mean * scale
    return scale, bias


def reference_forward(x, w1, w2, w3, s1, b1, s2, b2, s3, b3):
    # Pure-JAX reference (NHWC), mirroring the PyTorch forward (inference BN).
    h = jnp.einsum("nhwc,cp->nhwp", x, w1)
    h = jnp.maximum(h * s1 + b1, 0.0)
    h = lax.conv_general_dilated(
        h, w2, window_strides=(1, 1), padding="SAME",
        dimension_numbers=("NHWC", "HWIO", "NHWC"))
    h = jnp.maximum(h * s2 + b2, 0.0)
    h = jnp.einsum("nhwp,pq->nhwq", h, w3)
    h = h * s3 + b3
    return jnp.maximum(h + x, 0.0)


if __name__ == "__main__":
    # Small shapes: batch=2, planes=8, in_planes = planes*expansion = 32, 16x16.
    N, H, W = 2, 16, 16
    planes = 8
    in_planes = planes * 4  # expansion=4, downsample=None -> residual matches

    key = jax.random.PRNGKey(0)
    kx, kw1, kw2, kw3, kb1, kb2, kb3 = jax.random.split(key, 7)

    x = jax.random.normal(kx, (N, H, W, in_planes), jnp.float32)
    w1 = 0.1 * jax.random.normal(kw1, (in_planes, planes), jnp.float32)
    w2 = 0.1 * jax.random.normal(kw2, (3, 3, planes, planes), jnp.float32)
    w3 = 0.1 * jax.random.normal(kw3, (planes, in_planes), jnp.float32)

    s1, b1 = make_bn(kb1, planes)
    s2, b2 = make_bn(kb2, planes)
    s3, b3 = make_bn(kb3, in_planes)

    out = bottleneck_pallas(x, w1, w2, w3, s1, b1, s2, b2, s3, b3)
    out = jax.block_until_ready(out)

    ref = reference_forward(x, w1, w2, w3, s1, b1, s2, b2, s3, b3)
    assert out.shape == (N, H, W, in_planes)
    assert jnp.allclose(out, ref, rtol=1e-3, atol=1e-3), "mismatch vs reference"

    print("KERNEL_OK")
</pallas_src>

<mosaic_0001>
module attributes {stable_mosaic.version = 11 : i64} {
  func.func @bottleneck_kernel(%arg0: i32, %arg1: memref<1x16x16x128xf32, #tpu.memory_space<vmem>>, %arg2: memref<128x128xf32, #tpu.memory_space<vmem>>, %arg3: memref<1152x128xf32, #tpu.memory_space<vmem>>, %arg4: memref<128x128xf32, #tpu.memory_space<vmem>>, %arg5: memref<1x128xf32, #tpu.memory_space<vmem>>, %arg6: memref<1x128xf32, #tpu.memory_space<vmem>>, %arg7: memref<1x128xf32, #tpu.memory_space<vmem>>, %arg8: memref<1x16x16x128xf32, #tpu.memory_space<vmem>>, %arg9: memref<18x18x128xf32, #tpu.memory_space<vmem>>) attributes {dimension_semantics = [#tpu.dimension_semantics<parallel>], iteration_bounds = array<i64: 2>, scalar_prefetch = 0 : i64, scratch_operands = 1 : i64, tpu.core_type = #tpu.core_type<tc>, window_params = [{transform_indices = @transform_0, window_bounds = array<i64: 1, 16, 16, 128>}, {pipeline_mode = #tpu.pipeline_mode<synchronous>, transform_indices = @transform_1, window_bounds = array<i64: 128, 128>}, {pipeline_mode = #tpu.pipeline_mode<synchronous>, transform_indices = @transform_2, window_bounds = array<i64: 1152, 128>}, {pipeline_mode = #tpu.pipeline_mode<synchronous>, transform_indices = @transform_3, window_bounds = array<i64: 128, 128>}, {pipeline_mode = #tpu.pipeline_mode<synchronous>, transform_indices = @transform_4, window_bounds = array<i64: 1, 128>}, {pipeline_mode = #tpu.pipeline_mode<synchronous>, transform_indices = @transform_5, window_bounds = array<i64: 1, 128>}, {pipeline_mode = #tpu.pipeline_mode<synchronous>, transform_indices = @transform_6, window_bounds = array<i64: 1, 128>}, {transform_indices = @transform_7, window_bounds = array<i64: 1, 16, 16, 128>}]} {
    %c0 = arith.constant 0 : index
    %c0_0 = arith.constant 0 : index
    %c0_1 = arith.constant 0 : index
    %c0_2 = arith.constant 0 : index
    %0 = vector.load %arg1[%c0, %c0_0, %c0_1, %c0_2] : memref<1x16x16x128xf32, #tpu.memory_space<vmem>>, vector<1x16x16x128xf32>
    %1 = vector.shape_cast %0 : vector<1x16x16x128xf32> to vector<16x16x128xf32>
    %2 = vector.shape_cast %1 : vector<16x16x128xf32> to vector<256x128xf32>
    %c0_3 = arith.constant 0 : index
    %c0_4 = arith.constant 0 : index
    %3 = vector.load %arg2[%c0_3, %c0_4] : memref<128x128xf32, #tpu.memory_space<vmem>>, vector<128x128xf32>
    %cst = arith.constant dense<0.000000e+00> : vector<256x128xf32>
    %4 = tpu.matmul %2, %3, %cst {dimension_numbers = #tpu.dot_dimension_numbers<[1], [0], [0], [1], [0, 0, 1, 1], [], []>} : vector<256x128xf32>, vector<128x128xf32>, vector<256x128xf32> -> vector<256x128xf32>
    %c0_5 = arith.constant 0 : index
    %c0_6 = arith.constant 0 : index
    %5 = vector.load %arg5[%c0_5, %c0_6] : memref<1x128xf32, #tpu.memory_space<vmem>>, vector<1x128xf32>
    %6 = vector.broadcast %5 : vector<1x128xf32> to vector<256x128xf32>
    %7 = arith.addf %4, %6 : vector<256x128xf32>
    %cst_7 = arith.constant 0.000000e+00 : f32
    %8 = vector.broadcast %cst_7 : f32 to vector<256x128xf32>
    %9 = arith.maximumf %7, %8 : vector<256x128xf32>
    %10 = vector.shape_cast %9 : vector<256x128xf32> to vector<16x16x128xf32>
    %cst_8 = arith.constant 0.000000e+00 : f32
    %11 = vector.broadcast %cst_8 : f32 to vector<16x1x128xf32>
    %cst_9 = arith.constant 0.000000e+00 : f32
    %12 = vector.broadcast %cst_9 : f32 to vector<1x18x128xf32>
    %c0_10 = arith.constant 0 : index
    %c0_11 = arith.constant 0 : index
    %c0_12 = arith.constant 0 : index
    %13 = vector.load %arg9[%c0_10, %c0_11, %c0_12] : memref<18x18x128xf32, #tpu.memory_space<vmem>>, vector<1x18x128xf32>
    tpu.vector_store %arg9[%c0_10, %c0_11, %c0_12], %12 {strides = array<i32>} : memref<18x18x128xf32, #tpu.memory_space<vmem>>, vector<1x18x128xf32>,
    %c17 = arith.constant 17 : index
    %c0_13 = arith.constant 0 : index
    %c0_14 = arith.constant 0 : index
    %14 = vector.load %arg9[%c17, %c0_13, %c0_14] : memref<18x18x128xf32, #tpu.memory_space<vmem>>, vector<1x18x128xf32>
    tpu.vector_store %arg9[%c17, %c0_13, %c0_14], %12 {strides = array<i32>} : memref<18x18x128xf32, #tpu.memory_space<vmem>>, vector<1x18x128xf32>,
    %15 = tpu.concatenate %11, %10, %11 in 1 : vector<16x1x128xf32>, vector<16x16x128xf32>, vector<16x1x128xf32> -> vector<16x18x128xf32>
    %c1 = arith.constant 1 : index
    %c0_15 = arith.constant 0 : index
    %c0_16 = arith.constant 0 : index
    %16 = vector.load %arg9[%c1, %c0_15, %c0_16] : memref<18x18x128xf32, #tpu.memory_space<vmem>>, vector<16x18x128xf32>
    tpu.vector_store %arg9[%c1, %c0_15, %c0_16], %15 {strides = array<i32>} : memref<18x18x128xf32, #tpu.memory_space<vmem>>, vector<16x18x128xf32>,
    %c0_17 = arith.constant 0 : index
    %c0_18 = arith.constant 0 : index
    %c0_19 = arith.constant 0 : index
    %17 = vector.load %arg9[%c0_17, %c0_18, %c0_19] : memref<18x18x128xf32, #tpu.memory_space<vmem>>, vector<16x16x128xf32>
    %18 = vector.shape_cast %17 : vector<16x16x128xf32> to vector<256x128xf32>
    %c0_20 = arith.constant 0 : index
    %c1_21 = arith.constant 1 : index
    %c0_22 = arith.constant 0 : index
    %19 = vector.load %arg9[%c0_20, %c1_21, %c0_22] : memref<18x18x128xf32, #tpu.memory_space<vmem>>, vector<16x16x128xf32>
    %20 = vector.shape_cast %19 : vector<16x16x128xf32> to vector<256x128xf32>
    %c0_23 = arith.constant 0 : index
    %c2 = arith.constant 2 : index
    %c0_24 = arith.constant 0 : index
    %21 = vector.load %arg9[%c0_23, %c2, %c0_24] : memref<18x18x128xf32, #tpu.memory_space<vmem>>, vector<16x16x128xf32>
    %22 = vector.shape_cast %21 : vector<16x16x128xf32> to vector<256x128xf32>
    %c1_25 = arith.constant 1 : index
    %c0_26 = arith.constant 0 : index
    %c0_27 = arith.constant 0 : index
    %23 = vector.load %arg9[%c1_25, %c0_26, %c0_27] : memref<18x18x128xf32, #tpu.memory_space<vmem>>, vector<16x16x128xf32>
    %24 = vector.shape_cast %23 : vector<16x16x128xf32> to vector<256x128xf32>
    %c1_28 = arith.constant 1 : index
    %c1_29 = arith.constant 1 : index
    %c0_30 = arith.constant 0 : index
    %25 = vector.load %arg9[%c1_28, %c1_29, %c0_30] : memref<18x18x128xf32, #tpu.memory_space<vmem>>, vector<16x16x128xf32>
    %26 = vector.shape_cast %25 : vector<16x16x128xf32> to vector<256x128xf32>
    %c1_31 = arith.constant 1 : index
    %c2_32 = arith.constant 2 : index
    %c0_33 = arith.constant 0 : index
    %27 = vector.load %arg9[%c1_31, %c2_32, %c0_33] : memref<18x18x128xf32, #tpu.memory_space<vmem>>, vector<16x16x128xf32>
    %28 = vector.shape_cast %27 : vector<16x16x128xf32> to vector<256x128xf32>
    %c2_34 = arith.constant 2 : index
    %c0_35 = arith.constant 0 : index
    %c0_36 = arith.constant 0 : index
    %29 = vector.load %arg9[%c2_34, %c0_35, %c0_36] : memref<18x18x128xf32, #tpu.memory_space<vmem>>, vector<16x16x128xf32>
    %30 = vector.shape_cast %29 : vector<16x16x128xf32> to vector<256x128xf32>
    %c2_37 = arith.constant 2 : index
    %c1_38 = arith.constant 1 : index
    %c0_39 = arith.constant 0 : index
    %31 = vector.load %arg9[%c2_37, %c1_38, %c0_39] : memref<18x18x128xf32, #tpu.memory_space<vmem>>, vector<16x16x128xf32>
    %32 = vector.shape_cast %31 : vector<16x16x128xf32> to vector<256x128xf32>
    %c2_40 = arith.constant 2 : index
    %c2_41 = arith.constant 2 : index
    %c0_42 = arith.constant 0 : index
    %33 = vector.load %arg9[%c2_40, %c2_41, %c0_42] : memref<18x18x128xf32, #tpu.memory_space<vmem>>, vector<16x16x128xf32>
    %34 = vector.shape_cast %33 : vector<16x16x128xf32> to vector<256x128xf32>
    %35 = tpu.concatenate %18, %20, %22, %24, %26, %28, %30, %32, %34 in 1 : vector<256x128xf32>, vector<256x128xf32>, vector<256x128xf32>, vector<256x128xf32>, vector<256x128xf32>, vector<256x128xf32>, vector<256x128xf32>, vector<256x128xf32>, vector<256x128xf32> -> vector<256x1152xf32>
    %c0_43 = arith.constant 0 : index
    %c0_44 = arith.constant 0 : index
    %36 = vector.load %arg3[%c0_43, %c0_44] : memref<1152x128xf32, #tpu.memory_space<vmem>>, vector<1152x128xf32>
    %cst_45 = arith.constant dense<0.000000e+00> : vector<256x128xf32>
    %37 = tpu.matmul %35, %36, %cst_45 {dimension_numbers = #tpu.dot_dimension_numbers<[1], [0], [0], [1], [0, 0, 1, 1], [], []>} : vector<256x1152xf32>, vector<1152x128xf32>, vector<256x128xf32> -> vector<256x128xf32>
    %c0_46 = arith.constant 0 : index
    %c0_47 = arith.constant 0 : index
    %38 = vector.load %arg6[%c0_46, %c0_47] : memref<1x128xf32, #tpu.memory_space<vmem>>, vector<1x128xf32>
    %39 = vector.broadcast %38 : vector<1x128xf32> to vector<256x128xf32>
    %40 = arith.addf %37, %39 : vector<256x128xf32>
    %cst_48 = arith.constant 0.000000e+00 : f32
    %41 = vector.broadcast %cst_48 : f32 to vector<256x128xf32>
    %42 = arith.maximumf %40, %41 : vector<256x128xf32>
    %c0_49 = arith.constant 0 : index
    %c0_50 = arith.constant 0 : index
    %43 = vector.load %arg4[%c0_49, %c0_50] : memref<128x128xf32, #tpu.memory_space<vmem>>, vector<128x128xf32>
    %cst_51 = arith.constant dense<0.000000e+00> : vector<256x128xf32>
    %44 = tpu.matmul %42, %43, %cst_51 {dimension_numbers = #tpu.dot_dimension_numbers<[1], [0], [0], [1], [0, 0, 1, 1], [], []>} : vector<256x128xf32>, vector<128x128xf32>, vector<256x128xf32> -> vector<256x128xf32>
    %c0_52 = arith.constant 0 : index
    %c0_53 = arith.constant 0 : index
    %45 = vector.load %arg7[%c0_52, %c0_53] : memref<1x128xf32, #tpu.memory_space<vmem>>, vector<1x128xf32>
    %46 = vector.broadcast %45 : vector<1x128xf32> to vector<256x128xf32>
    %47 = arith.addf %44, %46 : vector<256x128xf32>
    %c0_54 = arith.constant 0 : index
    %c0_55 = arith.constant 0 : index
    %c0_56 = arith.constant 0 : index
    %c0_57 = arith.constant 0 : index
    %48 = vector.load %arg1[%c0_54, %c0_55, %c0_56, %c0_57] : memref<1x16x16x128xf32, #tpu.memory_space<vmem>>, vector<1x16x16x128xf32>
    %49 = vector.shape_cast %48 : vector<1x16x16x128xf32> to vector<16x16x128xf32>
    %50 = vector.shape_cast %49 : vector<16x16x128xf32> to vector<256x128xf32>
    %51 = arith.addf %47, %50 : vector<256x128xf32>
    %cst_58 = arith.constant 0.000000e+00 : f32
    %52 = vector.broadcast %cst_58 : f32 to vector<256x128xf32>
    %53 = arith.maximumf %51, %52 : vector<256x128xf32>
    %54 = vector.shape_cast %53 : vector<256x128xf32> to vector<16x16x128xf32>
    %c0_59 = arith.constant 0 : index
    %c0_60 = arith.constant 0 : index
    %c0_61 = arith.constant 0 : index
    %c0_62 = arith.constant 0 : index
    %55 = vector.load %arg8[%c0_59, %c0_60, %c0_61, %c0_62] : memref<1x16x16x128xf32, #tpu.memory_space<vmem>>, vector<1x16x16x128xf32>
    %56 = vector.shape_cast %55 : vector<1x16x16x128xf32> to vector<16x16x128xf32>
    %57 = vector.shape_cast %54 : vector<16x16x128xf32> to vector<1x16x16x128xf32>
    tpu.vector_store %arg8[%c0_59, %c0_60, %c0_61, %c0_62], %57 {strides = array<i32>} : memref<1x16x16x128xf32, #tpu.memory_space<vmem>>, vector<1x16x16x128xf32>,
    return
  }
  func.func @transform_0(%arg0: i32) -> (i32, i32, i32, i32) {
    %c0_i32 = arith.constant 0 : i32
    %c0_i32_0 = arith.constant 0 : i32
    %c0_i32_1 = arith.constant 0 : i32
    %c0_i32_2 = arith.constant 0 : i32
    return %arg0, %c0_i32, %c0_i32_0, %c0_i32_1 : i32, i32, i32, i32
  }
  func.func @transform_1(%arg0: i32) -> (i32, i32) {
    %c0_i32 = arith.constant 0 : i32
    %c0_i32_0 = arith.constant 0 : i32
    %c0_i32_1 = arith.constant 0 : i32
    return %c0_i32, %c0_i32_0 : i32, i32
  }
  func.func @transform_2(%arg0: i32) -> (i32, i32) {
    %c0_i32 = arith.constant 0 : i32
    %c0_i32_0 = arith.constant 0 : i32
    %c0_i32_1 = arith.constant 0 : i32
    return %c0_i32, %c0_i32_0 : i32, i32
  }
  func.func @transform_3(%arg0: i32) -> (i32, i32) {
    %c0_i32 = arith.constant 0 : i32
    %c0_i32_0 = arith.constant 0 : i32
    %c0_i32_1 = arith.constant 0 : i32
    return %c0_i32, %c0_i32_0 : i32, i32
  }
  func.func @transform_4(%arg0: i32) -> (i32, i32) {
    %c0_i32 = arith.constant 0 : i32
    %c0_i32_0 = arith.constant 0 : i32
    %c0_i32_1 = arith.constant 0 : i32
    return %c0_i32, %c0_i32_0 : i32, i32
  }
  func.func @transform_5(%arg0: i32) -> (i32, i32) {
    %c0_i32 = arith.constant 0 : i32
    %c0_i32_0 = arith.constant 0 : i32
    %c0_i32_1 = arith.constant 0 : i32
    return %c0_i32, %c0_i32_0 : i32, i32
  }
  func.func @transform_6(%arg0: i32) -> (i32, i32) {
    %c0_i32 = arith.constant 0 : i32
    %c0_i32_0 = arith.constant 0 : i32
    %c0_i32_1 = arith.constant 0 : i32
    return %c0_i32, %c0_i32_0 : i32, i32
  }
  func.func @transform_7(%arg0: i32) -> (i32, i32, i32, i32) {
    %c0_i32 = arith.constant 0 : i32
    %c0_i32_0 = arith.constant 0 : i32
    %c0_i32_1 = arith.constant 0 : i32
    %c0_i32_2 = arith.constant 0 : i32
    return %arg0, %c0_i32, %c0_i32_0, %c0_i32_1 : i32, i32, i32, i32
  }
}

</mosaic_0001>

<bundles_post_ra>
// kernel: tpu_custom_call.1
= control target key start
LH: loop header
LB: loop body
LE: loop exit
PB: predicated region body
PF: predicated region fallthrough
CT: control target
= control target key end

     0   :  { %12 = vsyncpa [#allocation4], 0  ;;  %s5599_s0 = inlined_call_operand.hbm [shape: f32[2,16,16,128], index: 0, kind: input, shape index: {}]   ;;  %s5600_s1 = inlined_call_operand.hbm [shape: f32[128,128], index: 1, kind: input, shape index: {}]   ;;  %s5601_s2 = inlined_call_operand.hbm [shape: f32[1152,128], index: 2, kind: input, shape index: {}]   ;;  %s5602_s3 = inlined_call_operand.hbm [shape: f32[128,128], index: 3, kind: input, shape index: {}]   ;;  %s5603_s4 = inlined_call_operand.vmem [shape: f32[1,128], index: 4, kind: input, shape index: {}]   ;;  %s5604_s5 = inlined_call_operand.vmem [shape: f32[1,128], index: 5, kind: input, shape index: {}]   ;;  %s5605_s6 = inlined_call_operand.vmem [shape: f32[1,128], index: 6, kind: input, shape index: {}]   ;;  %s5606_s7 = inlined_call_operand.hbm [shape: f32[2,16,16,128], index: 7, kind: output, shape index: {}]  }
   0x1   :  { %14 = vsyncpa [#allocation4 + $0x1], 0 }
   0x2   :  { %15 = vsyncpa [#allocation7], 0 }
   0x3   :  { %16 = vsyncpa [#allocation10], 0 }
   0x4   :  { %17 = vsyncpa [#allocation5], 0 }
   0x5   :  { %19 = vsyncpa [#allocation5 + $0x1], 0  ;;  %s4255_s24 = smov 0   ;;  %s4257_s25 = smov 0  }
   0x6   :  { %s4259_s26 = smov 0   ;;  %s4261_s27 = smov 0  }
   0x7 LB: > { %s4276_s28 = sadd.s32 4294967295, %s4202_s27   ;;  %s2959_s29 = sadd.s32 4294967294, %s4202_s27   ;;  %s4202_s27 = sphi %s4261_s27, %s5681_s27   ;;  %s4198_s26 = sphi %s4259_s26, %s5680_s26   ;;  %s4194_s25 = sphi %s4257_s25, %s5679_s25   ;;  %s4190_s24 = sphi %s4255_s24, %s5678_s24  }
   0x8   : > { %p45_p0 = scmp.ne.s32.totalorder %s4194_s25, %s4190_s24  ;;  %p5607_p1 = scmp.eq.s32.totalorder %s4276_s28, 0 }
   0x9   : > { %p201_p3 = scmp.eq.s32.totalorder %s2959_s29, 1  ;;  %p2960_p5 = scmp.ge.s32.totalorder %s4202_s27, 1 }
   0xa   : > { %p4285_p4 = por %p5607_p1, %p45_p0  ;;  %p208_p7 = scmp.lt.s32.totalorder %s4202_s27, 3 }
   0xb   : > { %p4290_p6 = por %p201_p3, %p45_p0  ;;  %s4204_s10 = smov [#allocation6]  }
   0xc   : > { %s5618_s30 = scalar_select %p4285_p4, 1, 0 }
   0xd   : > { %s5619_s8 = scalar_select %p4290_p6, 1, 0 }
   0xe   : > { %p4295_p8 = pnand %p2960_p5, %p208_p7  ;;  %s220_s11 = sshll.u32 %s4204_s10, 4  ;;  %s4299_s11 = int_to_ptr.vmem [resolvable:$true] %s220_s11 }
   0xf   : > { %5620 = sst [smem:[#allocation16_spill]] %s5619_s8  ;;  %s4205_s13 = smov [#allocation8]  }
  0x10   : > { %s5621_s9 = scalar_select %p4295_p8, 1, 0 }
  0x11   : > { %p3896_p9 = pneg %p4295_p8  ;;  %s233_s14 = sshll.u32 %s4205_s13, 4  ;;  %s4310_s14 = int_to_ptr.vmem [resolvable:$true] %s233_s14 }
  0x12   : > { %s4206_s15 = smov [#allocation9]   ;;  %s4014_s19 = scalar_lea.hbm %s5600_s1, 2048 }
  0x13   : > { %p4306_p11 = pnand %p3896_p9, %p5607_p1  ;;  %s4312_s16 = sshll.u32 %s4206_s15, 4  ;;  %s247_s16 = int_to_ptr.vmem [resolvable:$true] %s4312_s16 }
  0x14   : > { %p4015_p12 = scmp.ne.s32.totalorder %s5600_s1, %s4014_s19  ;;  %p4021_p5 = scmp.lt.u32.totalorder %s4014_s19, %s5600_s1 }
  0x15   : > { %p4322_p13 = pneg %p4306_p11 }
  0x17   : > { %p4017_p0 = pnand %p4322_p13, %p4015_p12 }
  0x19   : > { %p4018_p3 = pneg %p4017_p0 }
  0x1b   : > { %p4023_p7 = pnand %p4021_p5, %p4018_p3 }
  0x1d   : > { %4026 = shalt.err (!%p4023_p7)
}
  0x1e   : > { %s4027_s10 = scalar_lea.vmem %s4299_s11, 2048  ;;  %p4035_p2 = scmp.lt.s32.totalorder %s4299_s11, %s4299_s11 }
  0x1f   : > { %p4028_p9 = scmp.ne.s32.totalorder %s4299_s11, %s4027_s10  ;;  %p4036_p6 = scmp.lt.s32.totalorder %s4027_s10, %s4027_s10 }
  0x21   : > { %p4030_p10 = pnand %p4028_p9, %p4322_p13  ;;  %p4037_p12 = por %p4036_p6, %p4035_p2 }
  0x23   : > { %p4031_p1 = pneg %p4030_p10 }
  0x25   : > { %p4038_p0 = pnand %p4037_p12, %p4031_p1 }
  0x27   : > { %4041 = shalt.err (!%p4038_p0)
}
  0x28   : > { %s4207_s13 = smov 128   ;;  %s4208_s15 = smov 8  }
  0x29   : > { %3899 = dma.hbm_to_vmem [thread:$0]  (!%p4306_p11), %s5600_s1, 2048, %s4299_s11, [#allocation7], %s4207_s13, %s4207_s13, %s4208_s15  }
  0x2a   : > { %s4042_s21 = scalar_lea.hbm %s5601_s2, 18432 }
  0x2b   : > { %p4043_p1 = scmp.ne.s32.totalorder %s5601_s2, %s4042_s21  ;;  %p4049_p10 = scmp.lt.u32.totalorder %s4042_s21, %s5601_s2 }
  0x2d   : > { %p4045_p2 = pnand %p4043_p1, %p4322_p13 }
  0x2f   : > { %p4046_p6 = pneg %p4045_p2 }
  0x31   : > { %p4051_p3 = pnand %p4049_p10, %p4046_p6 }
  0x33   : > { %4054 = shalt.err (!%p4051_p3)
}
  0x34   : > { %s4055_s11 = scalar_lea.vmem %s4310_s14, 18432  ;;  %p4063_p12 = scmp.lt.s32.totalorder %s4310_s14, %s4310_s14 }
  0x35   : > { %p4056_p5 = scmp.ne.s32.totalorder %s4310_s14, %s4055_s11  ;;  %p4064_p0 = scmp.lt.s32.totalorder %s4055_s11, %s4055_s11 }
  0x37   : > { %p4058_p7 = pnand %p4056_p5, %p4322_p13  ;;  %p4065_p1 = por %p4064_p0, %p4063_p12 }
  0x39   : > { %p4059_p9 = pneg %p4058_p7 }
  0x3b   : > { %p4066_p2 = pnand %p4065_p1, %p4059_p9 }
  0x3d   : > { %4069 = shalt.err (!%p4066_p2)
}
  0x3e   : > { %3902 = dma.hbm_to_vmem [thread:$0]  (!%p4306_p11), %s5601_s2, 18432, %s4310_s14, [#allocation7], %s4207_s13, %s4207_s13, %s4208_s15  }
  0x3f   : > { %s4070_s20 = scalar_lea.hbm %s5602_s3, 2048 }
  0x40   : > { %p4071_p6 = scmp.ne.s32.totalorder %s5602_s3, %s4070_s20  ;;  %p4077_p5 = scmp.lt.u32.totalorder %s4070_s20, %s5602_s3 }
  0x42   : > { %p4073_p10 = pnand %p4071_p6, %p4322_p13 }
  0x44   : > { %p4074_p3 = pneg %p4073_p10 }
  0x46   : > { %p4079_p7 = pnand %p4077_p5, %p4074_p3 }
  0x48   : > { %4082 = shalt.err (!%p4079_p7)
}
  0x49   : > { %s4083_s11 = scalar_lea.vmem %s247_s16, 2048  ;;  %p4091_p1 = scmp.lt.s32.totalorder %s247_s16, %s247_s16 }
  0x4a   : > { %p4084_p9 = scmp.ne.s32.totalorder %s247_s16, %s4083_s11  ;;  %p4092_p2 = scmp.lt.s32.totalorder %s4083_s11, %s4083_s11 }
  0x4c   : > { %p4086_p12 = pnand %p4084_p9, %p4322_p13  ;;  %p4093_p4 = por %p4092_p2, %p4091_p1 }
  0x4e   : > { %p4087_p0 = pneg %p4086_p12 }
  0x50   : > { %p4094_p8 = pnand %p4093_p4, %p4087_p0 }
  0x52   : > { %4097 = shalt.err (!%p4094_p8)
}
  0x53   : > { %3905 = dma.hbm_to_vmem [thread:$0]  (!%p4306_p11), %s5602_s3, 2048, %s247_s16, [#allocation10], %s4207_s13, %s4207_s13, %s4208_s15  }
  0x54   : > { %s4395_s22 = sadd.s32 1, %s4202_s27   ;;  %s32_s17 = sadd.s32 1, %s4198_s26 }
  0x55   : > { %s29_s12 = ssub.s32 %s4202_s27, %s4395_s22  ;;  %p39_p8 = scmp.ne.s32.totalorder %s4198_s26, %s4194_s25 }
  0x56   : > { %p30_p4 = scmp.eq.s32.totalorder %s29_s12, 0  ;;  %p40_p13 = scmp.eq.s32.totalorder %s4202_s27, 0 }
  0x57   : > { %p3917_p6 = scmp.lt.s32.totalorder %s4202_s27, 2  ;;  %p5624_p3 = scmp.eq.s32.totalorder %s4276_s28, 1 }
  0x58   : > { %s4405_s18 = scalar_select %p30_p4, %s4198_s26, %s32_s17  }
  0x59   : > { %p41_p10 = por %p40_p13, %p39_p8  ;;  %p4409_p5 = por %p5624_p3, %p39_p8 }
  0x5a   : > { %s269_s20 = sand.u32 1, %s4198_s26   ;;  %s2982_s21 = sshll.u32 %s4202_s27, 12 }
  0x5b   : > { %s2965_s16 = sshll.u32 %s269_s20, 8  ;;  %s4418_s10 = scalar_lea.hbm %s5599_s0, %s2982_s21 }
  0x5c   : > { %s273_s11 = scalar_lea.vmem [#allocation3], %s2965_s16  ;;  %p4420_p11 = pnand %p3917_p6, %p41_p10 }
  0x5d   : > { %s280_s14 = sshll.u32 %s273_s11, 4  ;;  %s4426_s12 = scalar_lea.sflag [#allocation4], %s269_s20  ;;  %s4424_s14 = int_to_ptr.vmem [resolvable:$true] %s280_s14 }
  0x5e   : > { %s4098_s17 = scalar_lea.hbm %s4418_s10, 4096  ;;  %p4100_p9 = pneg %p4420_p11 }
  0x5f   : > { %p4099_p7 = scmp.ne.s32.totalorder %s4418_s10, %s4098_s17  ;;  %s4103_s23 = scalar_lea.hbm %s5599_s0, 8192 }
  0x60   : > { %p4104_p1 = scmp.lt.u32.totalorder %s4418_s10, %s5599_s0  ;;  %p4105_p2 = scmp.lt.u32.totalorder %s4103_s23, %s4098_s17 }
  0x61   : > { %p4101_p12 = pnand %p4100_p9, %p4099_p7  ;;  %p4107_p8 = scmp.lt.u32.totalorder %s4098_s17, %s4418_s10 }
  0x62   : > { %p4106_p4 = por %p4105_p2, %p4104_p1 }
  0x63   : > { %p4102_p0 = pneg %p4101_p12 }
  0x64   : > { %p4108_p13 = por %p4107_p8, %p4106_p4 }
  0x66   : > { %p4109_p6 = pnand %p4108_p13, %p4102_p0 }
  0x68   : > { %4112 = shalt.err (!%p4109_p6)
}
  0x69   : > { %s4113_s20 = scalar_lea.vmem %s4424_s14, 4096  ;;  %s4209_s21 = smov [#allocation3]  }
  0x6a   : > { %p4114_p10 = scmp.ne.s32.totalorder %s4424_s14, %s4113_s20  ;;  %s4118_s16 = sshll.u32 %s4209_s21, 4  ;;  %s4119_s16 = int_to_ptr.vmem [resolvable:$false] %s4118_s16 }
  0x6b   : > { %s4120_s29 = scalar_lea.vmem %s4119_s16, 8192  ;;  %p4121_p12 = scmp.lt.s32.totalorder %s4424_s14, %s4119_s16 }
  0x6c   : > { %p4116_p3 = pnand %p4114_p10, %p4100_p9  ;;  %p4122_p1 = scmp.lt.s32.totalorder %s4120_s29, %s4113_s20 }
  0x6e   : > { %p4117_p7 = pneg %p4116_p3  ;;  %p4123_p2 = por %p4122_p1, %p4121_p12 }
  0x70   : > { %p4124_p4 = pnand %p4123_p2, %p4117_p7 }
  0x72   : > { %4127 = shalt.err (!%p4124_p4)
}
  0x73   : > { %3909 = dma.hbm_to_vmem [thread:$0]  (!%p4420_p11), %s4418_s10, 4096, %s4424_s14, %s4426_s12, %s4207_s13, %s4207_s13, %s4208_s15  }
  0x74   : > { %p5627_p9 = scmp.ne.s32.totalorder %s5621_s9, 0 }
  0x76   : > { %292 = sbr.rel (%p5627_p9) target bundleno = 1203 (0x4b3), region = 48 }
  0x7d   : > { %s4460_s17 = sand.u32 1, %s4194_s25   ;;  %p5628_p0 = scmp.ne.s32.totalorder %s5618_s30, 0 }
  0x7e   : > { %s2969_s23 = sshll.u32 %s4460_s17, 8  ;;  %s295_s11 = scalar_lea.sflag [#allocation4], %s4460_s17 }
  0x7f   : > { %s4466_s8 = scalar_lea.vmem [#allocation3], %s2969_s23 }
  0x80   : > { %4173 = dma.done.wait (%p5628_p0), %s295_s11, 4096  }
  0x81   : > { %4175 = vsyncadd (%p5628_p0), %s295_s11, 4294963200  ;;  %p5629_p11 = scmp.eq.s32.totalorder %s4276_s28, 0 }
  0x83   : > { %4177 = dma.done.wait (%p5629_p11), [#allocation7], 20480   ;;  %p5630_p8 = pmov %p5629_p11 }
  0x85   : > { %4179 = vsyncadd (%p5630_p8), [#allocation7], 4294946816  ;;  %p5631_p13 = pmov %p5630_p8 }
  0x86   : > { %p5632_p6 = pmov %p5630_p8 }
  0x87   : > { %4181 = dma.done.wait (%p5631_p13), [#allocation10], 2048  }
  0x88   : > { %4183 = vsyncadd (%p5632_p6), [#allocation10], 4294965248  ;;  %v4210_v0 = vmov 0.0|0.0   ;;  %v373_v1 = vld [vmem:[#allocation6] sm:$0xff]  ;;  %v374_v2 = vld [vmem:[#allocation6 + $0x8] sm:$0xff]  ;;  %vm692_vm0 = vcmask 1040384  }
  0x89   : > { %3656 = vmatprep.subr.bf16.mxu1 %v4210_v0  ;;  %v375_v3 = vld [vmem:[#allocation6 + $0x10] sm:$0xff]  ;;  %v3368_v4 = vpack.c.bf16 %v374_v2, %v373_v1  ;;  %v376_v5 = vld [vmem:[#allocation6 + $0x18] sm:$0xff]  ;;  %v377_v7 = vld [vmem:[#allocation6 + $0x20] sm:$0xff]  ;;  %s5454_s12 = scalar_lea.vmem [#allocation11], %s2969_s23  ;;  %s2983_s20 = sshll.u32 %s4276_s28, 12 }
  0x8a   : > { %v3372_v6 = vpack.c.bf16 %v376_v5, %v375_v3  ;;  %v378_v8 = vld [vmem:[#allocation6 + $0x28] sm:$0xff]  ;;  %v341_v10 = vld [vmem:[%s4466_s8] sm:$0xff]  ;;  %v379_v11 = vld [vmem:[#allocation6 + $0x30] sm:$0xff]  ;;  %s2857_s21 = sshll.u32 %s5454_s12, 4  ;;  %s5551_s23 = scalar_lea.hbm %s5606_s7, %s2983_s20  ;;  %s5553_s21 = int_to_ptr.vmem [resolvable:$true] %s2857_s21 }
  0x8b   : > { %3369 = vmatprep.subr.bf16.mxu0 %v3368_v4  ;;  %v3376_v9 = vpack.c.bf16 %v378_v8, %v377_v7  ;;  %v380_v12 = vld [vmem:[#allocation6 + $0x38] sm:$0xff]  ;;  %3160 = vmatprep.mubr.f32.mxu0 %v341_v10  ;;  %v381_v14 = vld [vmem:[#allocation6 + $0x40] sm:$0xff]  ;;  %v382_v15 = vld [vmem:[#allocation6 + $0x48] sm:$0xff]  ;;  %s2844_s11 = scalar_lea.sflag [#allocation5], %s4460_s17  ;;  %s4212_s28 = smov [#allocation11]  }
  0x8c   : > { %3371 = vmatpush3.bf16.msra.mxu0 %v3368_v4  ;;  %v3380_v13 = vpack.c.bf16 %v380_v12, %v379_v11  ;;  %v3384_v16 = vpack.c.bf16 %v382_v15, %v381_v14  ;;  %v383_v17 = vld [vmem:[#allocation6 + $0x50] sm:$0xff]  ;;  %v384_v18 = vld [vmem:[#allocation6 + $0x58] sm:$0xff]  ;;  %v385_v20 = vld [vmem:[#allocation6 + $0x60] sm:$0xff]  ;;  %s4132_s30 = sshll.u32 %s4212_s28, 4  ;;  %s4133_s30 = int_to_ptr.vmem [resolvable:$false] %s4132_s30 }
  0x8d   : > { %3373 = vmatprep.subr.bf16.mxu0 %v3372_v6  ;;  %v3388_v19 = vpack.c.bf16 %v384_v18, %v383_v17  ;;  %v386_v21 = vld [vmem:[#allocation6 + $0x68] sm:$0xff]  ;;  %v1191_v23 = vld [vmem:[#allocation8 + $0x100] sm:$0xff]  ;;  %v387_v25 = vld [vmem:[#allocation6 + $0x70] sm:$0xff]  ;;  %s4134_s9 = scalar_lea.vmem %s4133_s30, 8192  ;;  %p4135_p12 = scmp.lt.s32.totalorder %s5553_s21, %s4133_s30 }
  0x8e   : > { %v3392_v22 = vpack.c.bf16 %v386_v21, %v385_v20  ;;  %v1192_v24 = vld [vmem:[#allocation8 + $0x108] sm:$0xff]  ;;  %v388_v26 = vld [vmem:[#allocation6 + $0x78] sm:$0xff]  ;;  %v1193_v28 = vld [vmem:[#allocation8 + $0x110] sm:$0xff] }
  0x8f   : > { %v4482_v27 = vpack.c.bf16 %v1192_v24, %v1191_v23  ;;  %v1194_v29 = vld [vmem:[#allocation8 + $0x118] sm:$0xff]  ;;  %v3396_v31 = vpack.c.bf16 %v388_v26, %v387_v25  ;;  %v1195_v32 = vld [vmem:[#allocation8 + $0x120] sm:$0xff]  ;;  %v1196_v33 = vld [vmem:[#allocation8 + $0x128] sm:$0xff] }
  0x90   : > { %3375 = vmatpush3.bf16.msra.mxu0 %v3372_v6  ;;  %v4485_v30 = vpack.c.bf16 %v1194_v29, %v1193_v28  ;;  %v4489_v34 = vpack.c.bf16 %v1196_v33, %v1195_v32  ;;  %v1159_v35 = vld [vmem:[#allocation8] sm:$0xff]  ;;  %v1160_v36 = vld [vmem:[#allocation8 + $0x8] sm:$0xff]  ;;  %v1197_v37 = vld [vmem:[#allocation8 + $0x130] sm:$0xff] }
  0x91   : > { %3377 = vmatprep.subr.bf16.mxu0 %v3376_v9  ;;  %3672 = vmatpush1.bf16.msra.mxu1 %v4482_v27  ;;  %v1198_v38 = vld [vmem:[#allocation8 + $0x138] sm:$0xff]  ;;  %v342_v39 = vld [vmem:[%s4466_s8 + $0x8] sm:$0xff]  ;;  %v3401_v40 = vpack.c.bf16 %v1160_v36, %v1159_v35  ;;  %v343_v41 = vld [vmem:[%s4466_s8 + $0x10] sm:$0xff] }
  0x92   : > { %3657 = vmatprep.subr.bf16.mxu1 %v4210_v0  ;;  %v1161_v42 = vld [vmem:[#allocation8 + $0x10] sm:$0xff]  ;;  %v1162_v43 = vld [vmem:[#allocation8 + $0x18] sm:$0xff]  ;;  %v4497_v44 = vpack.c.bf16 %v1198_v38, %v1197_v37  ;;  %v1199_v45 = vld [vmem:[#allocation8 + $0x140] sm:$0xff] }
  0x93   : > { %v1200_v46 = vld [vmem:[#allocation8 + $0x148] sm:$0xff]  ;;  %v344_v47 = vld [vmem:[%s4466_s8 + $0x18] sm:$0xff]  ;;  %v3404_v48 = vpack.c.bf16 %v1162_v43, %v1161_v42  ;;  %v345_v49 = vld [vmem:[%s4466_s8 + $0x20] sm:$0xff] }
  0x94   : > { %3379 = vmatpush3.bf16.msra.mxu0 %v3376_v9  ;;  %v1163_v50 = vld [vmem:[#allocation8 + $0x20] sm:$0xff]  ;;  %v1164_v51 = vld [vmem:[#allocation8 + $0x28] sm:$0xff]  ;;  %v4503_v52 = vpack.c.bf16 %v1200_v46, %v1199_v45  ;;  %v1201_v53 = vld [vmem:[#allocation8 + $0x150] sm:$0xff] }
  0x95   : > { %3381 = vmatprep.subr.bf16.mxu0 %v3380_v13  ;;  %3673 = vmatpush1.bf16.msra.mxu1 %v4485_v30  ;;  %v1202_v54 = vld [vmem:[#allocation8 + $0x158] sm:$0xff]  ;;  %v346_v55 = vld [vmem:[%s4466_s8 + $0x28] sm:$0xff]  ;;  %v3407_v56 = vpack.c.bf16 %v1164_v51, %v1163_v50  ;;  %v347_v57 = vld [vmem:[%s4466_s8 + $0x30] sm:$0xff] }
  0x96   : > { %3658 = vmatprep.subr.bf16.mxu1 %v4210_v0  ;;  %v1165_v58 = vld [vmem:[#allocation8 + $0x30] sm:$0xff]  ;;  %v1166_v59 = vld [vmem:[#allocation8 + $0x38] sm:$0xff]  ;;  %v4510_v60 = vpack.c.bf16 %v1202_v54, %v1201_v53  ;;  %v349_v63 = vld [vmem:[%s4466_s8 + $0x40] sm:$0xff] }
  0x97   : > { %v348_v61 = vld [vmem:[%s4466_s8 + $0x38] sm:$0xff]  ;;  %v3410_v62 = vpack.c.bf16 %v1166_v59, %v1165_v58  ;;  %v1167_v1 = vld [vmem:[#allocation8 + $0x40] sm:$0xff]  ;;  %v1168_v2 = vld [vmem:[#allocation8 + $0x48] sm:$0xff] }
  0x98   : > { %3383 = vmatpush3.bf16.msra.mxu0 %v3380_v13  ;;  %v350_v3 = vld [vmem:[%s4466_s8 + $0x48] sm:$0xff]  ;;  %v3413_v4 = vpack.c.bf16 %v1168_v2, %v1167_v1  ;;  %v351_v5 = vld [vmem:[%s4466_s8 + $0x50] sm:$0xff]  ;;  %v1170_v7 = vld [vmem:[#allocation8 + $0x58] sm:$0xff] }
  0x99   : > { %3385 = vmatprep.subr.bf16.mxu0 %v3384_v16  ;;  %3674 = vmatpush1.bf16.msra.mxu1 %v4489_v34  ;;  %v1169_v6 = vld [vmem:[#allocation8 + $0x50] sm:$0xff]  ;;  %v352_v8 = vld [vmem:[%s4466_s8 + $0x58] sm:$0xff]  ;;  %v353_v10 = vld [vmem:[%s4466_s8 + $0x60] sm:$0xff] }
  0x9a   : > { %3659 = vmatprep.subr.bf16.mxu1 %v4210_v0  ;;  %v3416_v9 = vpack.c.bf16 %v1170_v7, %v1169_v6  ;;  %v1171_v11 = vld [vmem:[#allocation8 + $0x60] sm:$0xff]  ;;  %v1172_v12 = vld [vmem:[#allocation8 + $0x68] sm:$0xff]  ;;  %v355_v15 = vld [vmem:[%s4466_s8 + $0x70] sm:$0xff]  ;;  %v4211_v6 = vmov 0.0  }
  0x9b   : > { %v354_v13 = vld [vmem:[%s4466_s8 + $0x68] sm:$0xff]  ;;  %v3419_v14 = vpack.c.bf16 %v1172_v12, %v1171_v11  ;;  %v1174_v17 = vld [vmem:[#allocation8 + $0x78] sm:$0xff]  ;;  %v357_v20 = vld [vmem:[%s4466_s8 + $0x80] sm:$0xff]  ;;  %653 = vst [vmem:[#allocation2] sm:$0xff] %v4211_v6 }
  0x9c   : > { %3387 = vmatpush3.bf16.msra.mxu0 %v3384_v16  ;;  %v1173_v16 = vld [vmem:[#allocation8 + $0x70] sm:$0xff]  ;;  %v356_v18 = vld [vmem:[%s4466_s8 + $0x78] sm:$0xff]  ;;  %v1175_v21 = vld [vmem:[#allocation8 + $0x80] sm:$0xff]  ;;  %654 = vst [vmem:[#allocation2 + $0x8] sm:$0xff] %v4211_v6 }
  0x9d   : > { %3389 = vmatprep.subr.bf16.mxu0 %v3388_v19  ;;  %3675 = vmatpush1.bf16.msra.mxu1 %v4497_v44  ;;  %v358_v23 = vld [vmem:[%s4466_s8 + $0x88] sm:$0xff]  ;;  %v359_v25 = vld [vmem:[%s4466_s8 + $0x90] sm:$0xff]  ;;  %v1178_v28 = vld [vmem:[#allocation8 + $0x98] sm:$0xff]  ;;  %655 = vst [vmem:[#allocation2 + $0x10] sm:$0x3] %v4211_v6 }
  0x9e   : > { %3660 = vmatprep.subr.bf16.mxu1 %v4210_v0  ;;  %v1177_v26 = vld [vmem:[#allocation8 + $0x90] sm:$0xff]  ;;  %v360_v29 = vld [vmem:[%s4466_s8 + $0x98] sm:$0xff]  ;;  %v361_v32 = vld [vmem:[%s4466_s8 + $0xa0] sm:$0xff]  ;;  %657 = vst [vmem:[#allocation2 + $0x198] sm:$0xff] %v4211_v6 }
  0x9f   : > { %v1179_v33 = vld [vmem:[#allocation8 + $0xa0] sm:$0xff]  ;;  %v1180_v35 = vld [vmem:[#allocation8 + $0xa8] sm:$0xff]  ;;  %v363_v38 = vld [vmem:[%s4466_s8 + $0xb0] sm:$0xff]  ;;  %658 = vst [vmem:[#allocation2 + $0x1a0] sm:$0xff] %v4211_v6 }
  0xa0   : > { %3391 = vmatpush3.bf16.msra.mxu0 %v3388_v19  ;;  %v3422_v19 = vpack.c.bf16 %v1174_v17, %v1173_v16  ;;  %v362_v36 = vld [vmem:[%s4466_s8 + $0xa8] sm:$0xff]  ;;  %v3431_v37 = vpack.c.bf16 %v1180_v35, %v1179_v33  ;;  %v365_v43 = vld [vmem:[%s4466_s8 + $0xc0] sm:$0xff]  ;;  %v1185_v50 = vld [vmem:[#allocation8 + $0xd0] sm:$0xff]  ;;  %659 = vst [vmem:[#allocation2 + $0x1a8] sm:$0x3] %v4211_v6 }
  0xa1   : > { %3393 = vmatprep.subr.bf16.mxu0 %v3392_v22  ;;  %3676 = vmatpush1.bf16.msra.mxu1 %v4503_v52  ;;  %v1183_v45 = vld [vmem:[#allocation8 + $0xc0] sm:$0xff]  ;;  %v1184_v46 = vld [vmem:[#allocation8 + $0xc8] sm:$0xff]  ;;  %v1186_v51 = vld [vmem:[#allocation8 + $0xd8] sm:$0xff] }
  0xa2   : > { %3661 = vmatprep.subr.bf16.mxu1 %v4210_v0  ;;  %v368_v53 = vld [vmem:[%s4466_s8 + $0xd8] sm:$0xff]  ;;  %v3440_v54 = vpack.c.bf16 %v1186_v51, %v1185_v50  ;;  %v1203_v59 = vld [vmem:[#allocation8 + $0x160] sm:$0xff]  ;;  %vm4637_vm1 = vmneg %vm692_vm0 }
  0xa3   : > { %v372_v58 = vld [vmem:[%s4466_s8 + $0xf8] sm:$0xff]  ;;  %v1187_v2 = vld [vmem:[#allocation8 + $0xe0] sm:$0xff] }
  0xa4   : > { %3395 = vmatpush3.bf16.msra.mxu0 %v3392_v22  ;;  %v1176_v22 = vld [vmem:[#allocation8 + $0x88] sm:$0xff]  ;;  %v1206_v1 = vld [vmem:[#allocation8 + $0x178] sm:$0xff]  ;;  %v1207_v7 = vld [vmem:[#allocation8 + $0x180] sm:$0xff] }
  0xa5   : > { %3397 = vmatprep.subr.bf16.mxu0 %v3396_v31  ;;  %3677 = vmatpush1.bf16.msra.mxu1 %v4510_v60  ;;  %v3425_v24 = vpack.c.bf16 %v1176_v22, %v1175_v21  ;;  %v1211_v17 = vld [vmem:[#allocation8 + $0x1a0] sm:$0xff]  ;;  %v1213_v21 = vld [vmem:[#allocation8 + $0x1b0] sm:$0xff]  ;;  %v1214_v22 = vld [vmem:[#allocation8 + $0x1b8] sm:$0xff] }
  0xa6   : > { %3662 = vmatprep.subr.bf16.mxu1 %v4210_v0  ;;  %v1222_v33 = vld [vmem:[#allocation8 + $0x1f8] sm:$0xff] }
  0xa8   : > { %3399 = vmatpush3.bf16.msra.mxu0 %v3396_v31  ;;  %v3428_v31 = vpack.c.bf16 %v1178_v28, %v1177_v26  ;;  %v1217_v26 = vld [vmem:[#allocation8 + $0x1d0] sm:$0xff]  ;;  %v1218_v28 = vld [vmem:[#allocation8 + $0x1d8] sm:$0xff] }
  0xa9   : > { %3400 = vmatprep.subr.bf16.mxu0 %v4210_v0 }
  0xab   : > { %3161 = vmatmul.mubr.f32.vlgmr.msra.gmra.mrb[0].mxu0 %v342_v39  ;;  %v1181_v39 = vld [vmem:[#allocation8 + $0xb0] sm:$0xff] }
  0xac   : > { %3163 = vmatprep.mubr.f32.mxu0 %v343_v41  ;;  %3402 = vmatpush1.bf16.msra.mxu0 %v3401_v40  ;;  %v1182_v40 = vld [vmem:[#allocation8 + $0xb8] sm:$0xff] }
  0xad   : > { %3403 = vmatprep.subr.bf16.mxu0 %v4210_v0  ;;  %v364_v41 = vld [vmem:[%s4466_s8 + $0xb8] sm:$0xff]  ;;  %v3434_v42 = vpack.c.bf16 %v1182_v40, %v1181_v39 }
  0xaf   : > { %3164 = vmatmul.mubr.f32.gmra.mrb[2].mxu0 %v344_v47  ;;  %v366_v47 = vld [vmem:[%s4466_s8 + $0xc8] sm:$0xff] }
  0xb0   : > { %3166 = vmatprep.mubr.f32.mxu0 %v345_v49  ;;  %3405 = vmatpush1.bf16.msra.mxu0 %v3404_v48  ;;  %v3437_v48 = vpack.c.bf16 %v1184_v46, %v1183_v45  ;;  %v367_v49 = vld [vmem:[%s4466_s8 + $0xd0] sm:$0xff] }
  0xb1   : > { %3406 = vmatprep.subr.bf16.mxu0 %v4210_v0 }
  0xb3   : > { %3167 = vmatmul.mubr.f32.gmra.mrb[4].mxu0 %v346_v55  ;;  %v369_v55 = vld [vmem:[%s4466_s8 + $0xe0] sm:$0xff] }
  0xb4   : > { %3169 = vmatprep.mubr.f32.mxu0 %v347_v57  ;;  %3408 = vmatpush1.bf16.msra.mxu0 %v3407_v56  ;;  %v370_v56 = vld [vmem:[%s4466_s8 + $0xe8] sm:$0xff]  ;;  %v371_v57 = vld [vmem:[%s4466_s8 + $0xf0] sm:$0xff] }
  0xb5   : > { %3409 = vmatprep.subr.bf16.mxu0 %v4210_v0 }
  0xb7   : > { %3170 = vmatmul.mubr.f32.gmra.mrb[6].mxu0 %v348_v61  ;;  %v1204_v61 = vld [vmem:[#allocation8 + $0x168] sm:$0xff] }
  0xb8   : > { %3172 = vmatprep.mubr.f32.mxu0 %v349_v63  ;;  %3411 = vmatpush1.bf16.msra.mxu0 %v3410_v62  ;;  %v4552_v62 = vpack.c.bf16 %v1204_v61, %v1203_v59  ;;  %v1205_v63 = vld [vmem:[#allocation8 + $0x170] sm:$0xff] }
  0xb9   : > { %3412 = vmatprep.subr.bf16.mxu0 %v4210_v0 }
  0xba   : > { %3678 = vmatpush1.bf16.msra.mxu1 %v4552_v62 }
  0xbb   : > { %3173 = vmatmul.mubr.f32.gmra.mrb[8].mxu0 %v350_v3  ;;  %3663 = vmatprep.subr.bf16.mxu1 %v4210_v0  ;;  %v1188_v3 = vld [vmem:[#allocation8 + $0xe8] sm:$0xff] }
  0xbc   : > { %3175 = vmatprep.mubr.f32.mxu0 %v351_v5  ;;  %3414 = vmatpush1.bf16.msra.mxu0 %v3413_v4  ;;  %v4556_v4 = vpack.c.bf16 %v1206_v1, %v1205_v63  ;;  %v3443_v5 = vpack.c.bf16 %v1188_v3, %v1187_v2 }
  0xbd   : > { %3415 = vmatprep.subr.bf16.mxu0 %v4210_v0 }
  0xbe   : > { %3679 = vmatpush1.bf16.msra.mxu1 %v4556_v4 }
  0xbf   : > { %3176 = vmatmul.mubr.f32.gmra.mrb[10].mxu0 %v352_v8  ;;  %3664 = vmatprep.subr.bf16.mxu1 %v4210_v0  ;;  %v1208_v8 = vld [vmem:[#allocation8 + $0x188] sm:$0xff] }
  0xc0   : > { %3178 = vmatprep.mubr.f32.mxu0 %v353_v10  ;;  %3417 = vmatpush1.bf16.msra.mxu0 %v3416_v9  ;;  %v1189_v9 = vld [vmem:[#allocation8 + $0xf0] sm:$0xff]  ;;  %v1190_v10 = vld [vmem:[#allocation8 + $0xf8] sm:$0xff]  ;;  %v3473_v11 = vpack.c.bf16 %v1208_v8, %v1207_v7 }
  0xc1   : > { %3418 = vmatprep.subr.bf16.mxu0 %v4210_v0  ;;  %v3446_v12 = vpack.c.bf16 %v1190_v10, %v1189_v9 }
  0xc2   : > { %3680 = vmatpush1.bf16.msra.mxu1 %v3473_v11 }
  0xc3   : > { %3179 = vmatmul.mubr.f32.gmra.mrb[12].mxu0 %v354_v13  ;;  %3665 = vmatprep.subr.bf16.mxu1 %v4210_v0  ;;  %v1209_v13 = vld [vmem:[#allocation8 + $0x190] sm:$0xff] }
  0xc4   : > { %3181 = vmatprep.mubr.f32.mxu0 %v355_v15  ;;  %3420 = vmatpush1.bf16.msra.mxu0 %v3419_v14  ;;  %v1210_v14 = vld [vmem:[#allocation8 + $0x198] sm:$0xff] }
  0xc5   : > { %3421 = vmatprep.subr.bf16.mxu0 %v4210_v0  ;;  %v902_v15 = vld [vmem:[#allocation2 + $0x1] sm:$0xff]  ;;  %v3476_v16 = vpack.c.bf16 %v1210_v14, %v1209_v13 }
  0xc7   : > { %3182 = vmatmul.mubr.f32.gmra.mrb[14].mxu0 %v356_v18  ;;  %3681 = vmatpush1.bf16.msra.mxu1 %v3476_v16  ;;  %v1212_v18 = vld [vmem:[#allocation8 + $0x1a8] sm:$0xff] }
  0xc8   : > { %3184 = vmatprep.mubr.f32.mxu0 %v357_v20  ;;  %3423 = vmatpush1.bf16.msra.mxu0 %v3422_v19  ;;  %v903_v19 = vld [vmem:[#allocation2 + $0x9] sm:$0xff]  ;;  %v3479_v20 = vpack.c.bf16 %v1212_v18, %v1211_v17 }
  0xc9   : > { %3424 = vmatprep.subr.bf16.mxu0 %v4210_v0  ;;  %3666 = vmatprep.subr.bf16.mxu1 %v4210_v0 }
  0xcb   : > { %3185 = vmatmul.mubr.f32.gmra.mrb[16].mxu0 %v358_v23  ;;  %3682 = vmatpush1.bf16.msra.mxu1 %v3479_v20  ;;  %v3482_v23 = vpack.c.bf16 %v1214_v22, %v1213_v21 }
  0xcc   : > { %3187 = vmatprep.mubr.f32.mxu0 %v359_v25  ;;  %3426 = vmatpush1.bf16.msra.mxu0 %v3425_v24  ;;  %v1216_v24 = vld [vmem:[#allocation8 + $0x1c8] sm:$0xff] }
  0xcd   : > { %3427 = vmatprep.subr.bf16.mxu0 %v4210_v0  ;;  %3667 = vmatprep.subr.bf16.mxu1 %v4210_v0 }
  0xcf   : > { %3188 = vmatmul.mubr.f32.gmra.mrb[18].mxu0 %v360_v29  ;;  %3683 = vmatpush1.bf16.msra.mxu1 %v3482_v23  ;;  %v1219_v29 = vld [vmem:[#allocation8 + $0x1e0] sm:$0xff] }
  0xd0   : > { %3190 = vmatprep.mubr.f32.mxu0 %v361_v32  ;;  %3429 = vmatpush1.bf16.msra.mxu0 %v3428_v31  ;;  %v1220_v31 = vld [vmem:[#allocation8 + $0x1e8] sm:$0xff]  ;;  %v1221_v32 = vld [vmem:[#allocation8 + $0x1f0] sm:$0xff] }
  0xd1   : > { %3430 = vmatprep.subr.bf16.mxu0 %v4210_v0  ;;  %3668 = vmatprep.subr.bf16.mxu1 %v4210_v0 }
  0xd3   : > { %3191 = vmatmul.mubr.f32.gmra.mrb[20].mxu0 %v362_v36 }
  0xd4   : > { %3193 = vmatprep.mubr.f32.mxu0 %v363_v38  ;;  %3432 = vmatpush1.bf16.msra.mxu0 %v3431_v37 }
  0xd5   : > { %3433 = vmatprep.subr.bf16.mxu0 %v4210_v0 }
  0xd7   : > { %3194 = vmatmul.mubr.f32.gmra.mrb[22].mxu0 %v364_v41 }
  0xd8   : > { %3196 = vmatprep.mubr.f32.mxu0 %v365_v43  ;;  %3435 = vmatpush1.bf16.msra.mxu0 %v3434_v42 }
  0xd9   : > { %3436 = vmatprep.subr.bf16.mxu0 %v4210_v0 }
  0xdb   : > { %3197 = vmatmul.mubr.f32.gmra.mrb[24].mxu0 %v366_v47 }
  0xdc   : > { %3199 = vmatprep.mubr.f32.mxu0 %v367_v49  ;;  %3438 = vmatpush1.bf16.msra.mxu0 %v3437_v48 }
  0xdd   : > { %3439 = vmatprep.subr.bf16.mxu0 %v4210_v0 }
  0xdf   : > { %3200 = vmatmul.mubr.f32.gmra.mrb[26].mxu0 %v368_v53 }
  0xe0   : > { %3202 = vmatprep.mubr.f32.mxu0 %v369_v55  ;;  %3441 = vmatpush1.bf16.msra.mxu0 %v3440_v54 }
  0xe1   : > { %3442 = vmatprep.subr.bf16.mxu0 %v4210_v0 }
  0xe3   : > { %3203 = vmatmul.mubr.f32.gmra.mrb[28].mxu0 %v370_v56 }
  0xe4   : > { %3205 = vmatprep.mubr.f32.mxu0 %v371_v57  ;;  %3444 = vmatpush1.bf16.msra.mxu0 %v3443_v5 }
  0xe5   : > { %3445 = vmatprep.subr.bf16.mxu0 %v4210_v0 }
  0xe7   : > { %3206 = vmatmul.mubr.f32.gmra.mrb[30].mxu0 %v372_v58 }
  0xe8   : > { %3447 = vmatpush1.bf16.msra.mxu0 %v3446_v12  ;;  %1374 = vmatprep.mubr.f32.mxu0 %v902_v15 }
  0xe9   : > { %3448 = vmatprep.subr.bf16.mxu0 %v4210_v0 }
  0xeb   : > { %1375 = vmatmul.mubr.f32.vlgmr.msra.gmra.mrb[32].mxu0 %v4211_v6 }
  0xec   : > { %3450 = vmatpush1.bf16.msra.mxu0 %v4482_v27  ;;  %1379 = vmatprep.mubr.f32.mxu0 %v903_v19  ;;  %v1215_v27 = vld [vmem:[#allocation8 + $0x1c0] sm:$0xff] }
  0xed   : > { %3451 = vmatprep.subr.bf16.mxu0 %v4210_v0  ;;  %v3485_v25 = vpack.c.bf16 %v1216_v24, %v1215_v27 }
  0xef   : > { %1380 = vmatmul.mubr.f32.gmra.mrb[34].mxu0 %v4211_v6  ;;  %3684 = vmatpush1.bf16.msra.mxu1 %v3485_v25 }
  0xf0   : > { %3453 = vmatpush1.bf16.msra.mxu0 %v4485_v30  ;;  %3669 = vmatprep.subr.bf16.mxu1 %v4210_v0  ;;  %v3488_v30 = vpack.c.bf16 %v1218_v28, %v1217_v26 }
  0xf1   : > { %3454 = vmatprep.subr.bf16.mxu0 %v4210_v0 }
  0xf3   : > { %3685 = vmatpush1.bf16.msra.mxu1 %v3488_v30 }
  0xf4   : > { %3456 = vmatpush1.bf16.msra.mxu0 %v4489_v34  ;;  %3670 = vmatprep.subr.bf16.mxu1 %v4210_v0  ;;  %v3491_v34 = vpack.c.bf16 %v1220_v31, %v1219_v29 }
  0xf5   : > { %3457 = vmatprep.subr.bf16.mxu0 %v4210_v0 }
  0xf7   : > { %3686 = vmatpush1.bf16.msra.mxu1 %v3491_v34 }
  0xf8   : > { %3459 = vmatpush1.bf16.msra.mxu0 %v4497_v44  ;;  %3671 = vmatprep.subr.bf16.mxu1 %v4210_v0  ;;  %v3494_v44 = vpack.c.bf16 %v1222_v33, %v1221_v32 }
  0xf9   : > { %3460 = vmatprep.subr.bf16.mxu0 %v4210_v0 }
  0xfb   : > { %3687 = vmatpush1.bf16.msra.mxu1 %v3494_v44 }
  0xfc   : > { %3462 = vmatpush1.bf16.msra.mxu0 %v4503_v52  ;;  %3496 = vmatprep.subr.bf16.mxu1 %v4210_v0  ;;  %v4596_v52 = vld [vmem:[%s5603_s4] ss:$0 sm:$0xff] }
  0xfd   : > { %3463 = vmatprep.subr.bf16.mxu0 %v4210_v0 }
 0x100   : > { %3465 = vmatpush1.bf16.msra.mxu0 %v4510_v60 }
 0x101   : > { %3466 = vmatprep.subr.bf16.mxu0 %v4210_v0 }
 0x104   : > { %3468 = vmatpush1.bf16.msra.mxu0 %v4552_v62 }
 0x105   : > { %3469 = vmatprep.subr.bf16.mxu0 %v4210_v0 }
 0x108   : > { %3471 = vmatpush1.bf16.msra.mxu0 %v4556_v4 }
 0x109   : > { %3472 = vmatprep.subr.bf16.mxu0 %v4210_v0 }
 0x10c   : > { %3474 = vmatpush1.bf16.msra.mxu0 %v3473_v11 }
 0x10d   : > { %3475 = vmatprep.subr.bf16.mxu0 %v4210_v0 }
 0x110   : > { %3477 = vmatpush1.bf16.msra.mxu0 %v3476_v16 }
 0x111   : > { %3478 = vmatprep.subr.bf16.mxu0 %v4210_v0 }
 0x114   : > { %3480 = vmatpush1.bf16.msra.mxu0 %v3479_v20 }
 0x115   : > { %3481 = vmatprep.subr.bf16.mxu0 %v4210_v0 }
 0x118   : > { %3483 = vmatpush1.bf16.msra.mxu0 %v3482_v23 }
 0x119   : > { %3484 = vmatprep.subr.bf16.mxu0 %v4210_v0 }
 0x11c   : > { %3486 = vmatpush1.bf16.msra.mxu0 %v3485_v25 }
 0x11d   : > { %3487 = vmatprep.subr.bf16.mxu0 %v4210_v0 }
 0x120   : > { %3489 = vmatpush1.bf16.msra.mxu0 %v3488_v30 }
 0x121   : > { %3490 = vmatprep.subr.bf16.mxu0 %v4210_v0 }
 0x124   : > { %3492 = vmatpush1.bf16.msra.mxu0 %v3491_v34 }
 0x125   : > { %3493 = vmatprep.subr.bf16.mxu0 %v4210_v0 }
 0x128   : > { %3495 = vmatpush1.bf16.msra.mxu0 %v3494_v44 }
 0x17e   : > { %v3162_v60 = vpop.f32.mrb[0].mxu0 }
 0x17f   : > { %v468_v35 = vadd.f32 %v3162_v60, %v4596_v52  ;;  %v462_v36 = vpop.f32.mrb[1].mxu0 }
 0x180   : > { %v463_v37 = vadd.f32 %v4596_v52, %v462_v36 }
 0x181   : > { %v622_v38 = vmax.f32 %v468_v35, 0.0 }
 0x182   : > { %v621_v39 = vmax.f32 %v463_v37, 0.0  ;;  %v3165_v40 = vpop.f32.mrb[2].mxu0 }
 0x183   : > { %v694_v41 = vrot.slane %v622_v38, 7  ;;  %v478_v42 = vadd.f32 %v3165_v40, %v4596_v52  ;;  %v472_v43 = vpop.f32.mrb[3].mxu0 }
 0x184   : > { %v693_v45 = vrot.slane %v621_v39, 7  ;;  %v473_v46 = vadd.f32 %v4596_v52, %v472_v43 }
 0x185   : > { %v805_v47 = vsel %vm692_vm0, %v694_v41, 0.0  ;;  %v624_v48 = vmax.f32 %v478_v42, 0.0 }
 0x186   : > { %824 = vst [vmem:[#allocation2 + $0x28] sm:$0x3] %v805_v47  ;;  %v695_v49 = vsel %vm692_vm0, %v693_v45, %v694_v41  ;;  %v789_v50 = vsel %vm692_vm0, 0.0, %v693_v45  ;;  %v623_v51 = vmax.f32 %v473_v46, 0.0  ;;  %v3168_v53 = vpop.f32.mrb[4].mxu0  ;;  %v1287_v41 = vld [vmem:[#allocation8 + $0x400] sm:$0xff] }
 0x187   : > { %822 = vst [vmem:[#allocation2 + $0x18] sm:$0xff] %v789_v50  ;;  %823 = vst [vmem:[#allocation2 + $0x20] sm:$0xff] %v695_v49  ;;  %v697_v54 = vrot.slane %v624_v48, 7  ;;  %v488_v55 = vadd.f32 %v3168_v53, %v4596_v52  ;;  %v482_v56 = vpop.f32.mrb[5].mxu0  ;;  %v1288_v46 = vld [vmem:[#allocation8 + $0x408] sm:$0xff] }
 0x188   : > { %v4606_v57 = vrot.slane %v623_v51, 7  ;;  %v483_v58 = vadd.f32 %v4596_v52, %v482_v56 }
 0x189   : > { %v806_v59 = vsel %vm692_vm0, %v697_v54, 0.0  ;;  %v626_v61 = vmax.f32 %v488_v55, 0.0 }
 0x18a   : > { %827 = vst [vmem:[#allocation2 + $0x40] sm:$0x3] %v806_v59  ;;  %v4612_v62 = vsel %vm692_vm0, %v4606_v57, %v697_v54  ;;  %v790_v63 = vsel %vm692_vm0, 0.0, %v4606_v57  ;;  %v625_v1 = vmax.f32 %v483_v58, 0.0  ;;  %v3171_v2 = vpop.f32.mrb[6].mxu0 }
 0x18b   : > { %825 = vst [vmem:[#allocation2 + $0x30] sm:$0xff] %v790_v63  ;;  %826 = vst [vmem:[#allocation2 + $0x38] sm:$0xff] %v4612_v62  ;;  %v700_v3 = vrot.slane %v626_v61, 7  ;;  %v498_v4 = vadd.f32 %v3171_v2, %v4596_v52  ;;  %v492_v5 = vpop.f32.mrb[7].mxu0  ;;  %v1223_v2 = vld [vmem:[#allocation8 + $0x200] sm:$0xff] }
 0x18c   : > { %v4618_v6 = vrot.slane %v625_v1, 7  ;;  %v493_v7 = vadd.f32 %v4596_v52, %v492_v5 }
 0x18d   : > { %v807_v8 = vsel %vm692_vm0, %v700_v3, 0.0  ;;  %v628_v9 = vmax.f32 %v498_v4, 0.0 }
 0x18e   : > { %830 = vst [vmem:[#allocation2 + $0x58] sm:$0x3] %v807_v8  ;;  %v4624_v10 = vsel %vm692_vm0, %v4618_v6, %v700_v3  ;;  %v791_v11 = vsel %vm692_vm0, 0.0, %v4618_v6  ;;  %v627_v12 = vmax.f32 %v493_v7, 0.0  ;;  %v3174_v13 = vpop.f32.mrb[8].mxu0  ;;  %v4628_v14 = vld [vmem:[#allocation2 + $0x19] sm:$0xff] }
 0x18f   : > { %828 = vst [vmem:[#allocation2 + $0x48] sm:$0xff] %v791_v11  ;;  %829 = vst [vmem:[#allocation2 + $0x50] sm:$0xff] %v4624_v10  ;;  %v703_v15 = vrot.slane %v628_v9, 7  ;;  %v508_v16 = vadd.f32 %v3174_v13, %v4596_v52  ;;  %v502_v17 = vpop.f32.mrb[9].mxu0  ;;  %1384 = vmatprep.mubr.f32.mxu0 %v4628_v14  ;;  %v4643_v21 = vld [vmem:[#allocation2 + $0x21] sm:$0xff]  ;;  %v1224_v3 = vld [vmem:[#allocation8 + $0x208] sm:$0xff] }
 0x190   : > { %v4633_v18 = vrot.slane %v627_v12, 7  ;;  %v503_v19 = vadd.f32 %v4596_v52, %v502_v17  ;;  %3965 = vmatmul.mubr.msk.f32.gmra.mrb[36].mxu0 %vm4637_vm1, %v693_v45  ;;  %v966_v20 = vld [vmem:[#allocation2 + $0x18] sm:$0xff] }
 0x191   : > { %v808_v22 = vsel %vm692_vm0, %v703_v15, 0.0  ;;  %v630_v23 = vmax.f32 %v508_v16, 0.0  ;;  %1389 = vmatprep.mubr.f32.mxu0 %v4643_v21  ;;  %v3497_v16 = vpack.c.bf16 %v1224_v3, %v1223_v2 }
 0x192   : > { %833 = vst [vmem:[#allocation2 + $0x70] sm:$0x3] %v808_v22  ;;  %v4649_v27 = vsel %vm692_vm0, %v4633_v18, %v703_v15  ;;  %v792_v24 = vsel %vm692_vm0, 0.0, %v4633_v18  ;;  %v629_v25 = vmax.f32 %v503_v19, 0.0  ;;  %v3177_v26 = vpop.f32.mrb[10].mxu0  ;;  %v4658_v32 = vld [vmem:[#allocation2 + $0x31] sm:$0xff] }
 0x193   : > { %831 = vst [vmem:[#allocation2 + $0x60] sm:$0xff] %v792_v24  ;;  %832 = vst [vmem:[#allocation2 + $0x68] sm:$0xff] %v4649_v27  ;;  %v706_v28 = vrot.slane %v630_v23, 7  ;;  %v518_v30 = vadd.f32 %v3177_v26, %v4596_v52  ;;  %v512_v29 = vpop.f32.mrb[11].mxu0  ;;  %v4676_v45 = vld [vmem:[#allocation2 + $0x39] sm:$0xff]  ;;  %v1226_v23 = vld [vmem:[#allocation8 + $0x218] sm:$0xff] }
 0x194   : > { %v4655_v31 = vrot.slane %v629_v25, 7  ;;  %v513_v34 = vadd.f32 %v4596_v52, %v512_v29  ;;  %1390 = vmatmul.mubr.f32.gmra.mrb[38].mxu0 %v695_v49  ;;  %v4680_v49 = vpack.c.bf16 %v1288_v46, %v1287_v41  ;;  %v1225_v22 = vld [vmem:[#allocation8 + $0x210] sm:$0xff]  ;;  %v1228_v46 = vld [vmem:[#allocation8 + $0x228] sm:$0xff] }
 0x195   : > { %v809_v33 = vsel %vm692_vm0, %v706_v28, 0.0  ;;  %v632_v44 = vmax.f32 %v518_v30, 0.0  ;;  %1394 = vmatprep.mubr.f32.mxu0 %v4658_v32 }
 0x196   : > { %836 = vst [vmem:[#allocation2 + $0x88] sm:$0x3] %v809_v33  ;;  %v4664_v60 = vsel %vm692_vm0, %v4655_v31, %v706_v28  ;;  %v793_v35 = vsel %vm692_vm0, 0.0, %v4655_v31  ;;  %v631_v36 = vmax.f32 %v513_v34, 0.0  ;;  %v3180_v37 = vpop.f32.mrb[12].mxu0  ;;  %3593 = vmatprep.subr.bf16.mxu0 %v4680_v49  ;;  %v4694_v59 = vld [vmem:[#allocation2 + $0x49] sm:$0xff] }
 0x197   : > { %834 = vst [vmem:[#allocation2 + $0x78] sm:$0xff] %v793_v35  ;;  %835 = vst [vmem:[#allocation2 + $0x80] sm:$0xff] %v4664_v60  ;;  %v709_v38 = vrot.slane %v632_v44, 7  ;;  %v528_v39 = vadd.f32 %v3180_v37, %v4596_v52  ;;  %v522_v40 = vpop.f32.mrb[13].mxu0  ;;  %v4715_v13 = vld [vmem:[#allocation2 + $0x51] sm:$0xff]  ;;  %v3500_v35 = vpack.c.bf16 %v1226_v23, %v1225_v22 }
 0x198   : > { %v4670_v42 = vrot.slane %v631_v36, 7  ;;  %v523_v43 = vadd.f32 %v4596_v52, %v522_v40  ;;  %3967 = vmatmul.mubr.msk.f32.gmra.mrb[40].mxu0 %vm4637_vm1, %v4606_v57 }
 0x199   : > { %v810_v47 = vsel %vm692_vm0, %v709_v38, 0.0  ;;  %v634_v48 = vmax.f32 %v528_v39, 0.0  ;;  %1399 = vmatprep.mubr.f32.mxu0 %v4676_v45 }
 0x19a   : > { %839 = vst [vmem:[#allocation2 + $0xa0] sm:$0x3] %v810_v47  ;;  %v4684_v50 = vsel %vm692_vm0, %v4670_v42, %v709_v38  ;;  %v794_v51 = vsel %vm692_vm0, 0.0, %v4670_v42  ;;  %v633_v53 = vmax.f32 %v523_v43, 0.0  ;;  %v3183_v54 = vpop.f32.mrb[14].mxu0  ;;  %v4732_v33 = vld [vmem:[#allocation2 + $0x61] sm:$0xff] }
 0x19b   : > { %837 = vst [vmem:[#allocation2 + $0x90] sm:$0xff] %v794_v51  ;;  %838 = vst [vmem:[#allocation2 + $0x98] sm:$0xff] %v4684_v50  ;;  %v712_v55 = vrot.slane %v634_v48, 7  ;;  %v538_v56 = vadd.f32 %v3183_v54, %v4596_v52  ;;  %v532_v57 = vpop.f32.mrb[15].mxu0  ;;  %v1227_v43 = vld [vmem:[#allocation8 + $0x220] sm:$0xff] }
 0x19c   : > { %v4691_v58 = vrot.slane %v633_v53, 7  ;;  %1400 = vmatmul.mubr.f32.gmra.mrb[42].mxu0 %v4612_v62  ;;  %v533_v61 = vadd.f32 %v4596_v52, %v532_v57  ;;  %v4755_v54 = vld [vmem:[#allocation2 + $0x69] sm:$0xff] }
 0x19d   : > { %v811_v63 = vsel %vm692_vm0, %v712_v55, 0.0  ;;  %v636_v1 = vmax.f32 %v538_v56, 0.0  ;;  %1404 = vmatprep.mubr.f32.mxu0 %v4694_v59 }
 0x19e   : > { %842 = vst [vmem:[#allocation2 + $0xb8] sm:$0x3] %v811_v63  ;;  %v4701_v4 = vsel %vm692_vm0, %v4691_v58, %v712_v55  ;;  %v795_v5 = vsel %vm692_vm0, 0.0, %v4691_v58  ;;  %v635_v62 = vmax.f32 %v533_v61, 0.0  ;;  %v3186_v7 = vpop.f32.mrb[16].mxu0  ;;  %3969 = vmatprep.mubr.msk.f32.mxu1 %vm4637_vm1, %v4691_v58  ;;  %v3503_v61 = vpack.c.bf16 %v1228_v46, %v1227_v43 }
 0x19f   : > { %840 = vst [vmem:[#allocation2 + $0xa8] sm:$0xff] %v795_v5  ;;  %841 = vst [vmem:[#allocation2 + $0xb0] sm:$0xff] %v4701_v4  ;;  %v715_v8 = vrot.slane %v636_v1, 7  ;;  %v548_v9 = vadd.f32 %v3186_v7, %v4596_v52  ;;  %v542_v11 = vpop.f32.mrb[17].mxu0  ;;  %v1229_v5 = vld [vmem:[#allocation8 + $0x230] sm:$0xff] }
 0x1a0   : > { %v4710_v12 = vrot.slane %v635_v62, 7  ;;  %3971 = vmatmul.mubr.msk.f32.gmra.mrb[44].mxu0 %vm4637_vm1, %v4618_v6  ;;  %v543_v15 = vadd.f32 %v4596_v52, %v542_v11  ;;  %v1230_v62 = vld [vmem:[#allocation8 + $0x238] sm:$0xff] }
 0x1a1   : > { %v812_v17 = vsel %vm692_vm0, %v715_v8, 0.0  ;;  %1409 = vmatprep.mubr.f32.mxu0 %v4715_v13  ;;  %v638_v19 = vmax.f32 %v548_v9, 0.0  ;;  %v3506_v22 = vpack.c.bf16 %v1230_v62, %v1229_v5 }
 0x1a2   : > { %845 = vst [vmem:[#allocation2 + $0xd0] sm:$0x3] %v812_v17  ;;  %v4722_v24 = vsel %vm692_vm0, %v4710_v12, %v715_v8  ;;  %v796_v6 = vsel %vm692_vm0, 0.0, %v4710_v12  ;;  %v637_v25 = vmax.f32 %v543_v15, 0.0  ;;  %v4726_v26 = vld [vmem:[#allocation2 + $0x92] sm:$0xff]  ;;  %v3189_v28 = vpop.f32.mrb[18].mxu0 }
 0x1a3   : > { %843 = vst [vmem:[#allocation2 + $0xc0] sm:$0xff] %v796_v6  ;;  %844 = vst [vmem:[#allocation2 + $0xc8] sm:$0xff] %v4722_v24  ;;  %v718_v30 = vrot.slane %v638_v19, 7  ;;  %1660 = vmatmul.mubr.f32.vlgmr.msra.gmra.mrb[0].mxu1 %v4726_v26  ;;  %v558_v29 = vadd.f32 %v3189_v28, %v4596_v52  ;;  %v552_v34 = vpop.f32.mrb[19].mxu0  ;;  %v4746_v40 = vld [vmem:[#allocation2 + $0x9a] sm:$0xff]  ;;  %v1231_v28 = vld [vmem:[#allocation8 + $0x240] sm:$0xff] }
 0x1a4   : > { %1410 = vmatmul.mubr.f32.gmra.mrb[46].mxu0 %v4624_v10  ;;  %v4734_v44 = vrot.slane %v637_v25, 7  ;;  %3498 = vmatpush1.bf16.msra.mxu1 %v3497_v16  ;;  %v553_v36 = vadd.f32 %v4596_v52, %v552_v34  ;;  %v4778_v15 = vld [vmem:[#allocation2 + $0x79] sm:$0xff]  ;;  %v4824_v5 = vld [vmem:[#allocation2 + $0x91] sm:$0xff] }
 0x1a5   : > { %v813_v37 = vsel %vm692_vm0, %v718_v30, 0.0  ;;  %1414 = vmatprep.mubr.f32.mxu0 %v4732_v33  ;;  %1664 = vmatprep.mubr.f32.mxu1 %v4701_v4  ;;  %v640_v38 = vmax.f32 %v558_v29, 0.0 }
 0x1a6   : > { %848 = vst [vmem:[#allocation2 + $0xe8] sm:$0x3] %v813_v37  ;;  %v4742_v39 = vsel %vm692_vm0, %v4734_v44, %v718_v30  ;;  %v797_v10 = vsel %vm692_vm0, 0.0, %v4734_v44  ;;  %3499 = vmatprep.subr.bf16.mxu1 %v4210_v0  ;;  %v639_v41 = vmax.f32 %v553_v36, 0.0  ;;  %v3192_v47 = vpop.f32.mrb[20].mxu0  ;;  %v4771_v2 = vld [vmem:[#allocation2 + $0xaa] sm:$0xff] }
 0x1a7   : > { %846 = vst [vmem:[#allocation2 + $0xd8] sm:$0xff] %v797_v10  ;;  %847 = vst [vmem:[#allocation2 + $0xe0] sm:$0xff] %v4742_v39  ;;  %1665 = vmatmul.mubr.f32.gmra.mrb[2].mxu1 %v4746_v40  ;;  %v721_v48 = vrot.slane %v640_v38, 7  ;;  %v568_v51 = vadd.f32 %v3192_v47, %v4596_v52  ;;  %v562_v53 = vpop.f32.mrb[21].mxu0  ;;  %v4786_v6 = vld [vmem:[#allocation2 + $0xb2] sm:$0xff]  ;;  %v4801_v38 = vld [vmem:[#allocation2 + $0x81] sm:$0xff] }
 0x1a8   : > { %3973 = vmatmul.mubr.msk.f32.gmra.mrb[48].mxu0 %vm4637_vm1, %v4633_v18  ;;  %3501 = vmatpush1.bf16.msra.mxu1 %v3500_v35  ;;  %v4757_v55 = vrot.slane %v639_v41, 7  ;;  %v563_v56 = vadd.f32 %v4596_v52, %v562_v53  ;;  %v1232_v30 = vld [vmem:[#allocation8 + $0x248] sm:$0xff]  ;;  %v1233_v53 = vld [vmem:[#allocation8 + $0x250] sm:$0xff] }
 0x1a9   : > { %1419 = vmatprep.mubr.f32.mxu0 %v4755_v54  ;;  %v814_v57 = vsel %vm692_vm0, %v721_v48, 0.0  ;;  %3975 = vmatprep.mubr.msk.f32.mxu1 %vm4637_vm1, %v4710_v12  ;;  %v642_v63 = vmax.f32 %v568_v51, 0.0  ;;  %v3509_v43 = vpack.c.bf16 %v1232_v30, %v1231_v28 }
 0x1aa   : > { %851 = vst [vmem:[#allocation2 + $0x100] sm:$0x3] %v814_v57  ;;  %v4767_v18 = vsel %vm692_vm0, %v4757_v55, %v721_v48  ;;  %v798_v1 = vsel %vm692_vm0, 0.0, %v4757_v55  ;;  %3502 = vmatprep.subr.bf16.mxu1 %v4210_v0  ;;  %v641_v3 = vmax.f32 %v563_v56, 0.0  ;;  %v3195_v7 = vpop.f32.mrb[22].mxu0  ;;  %v4811_v48 = vld [vmem:[#allocation2 + $0xc2] sm:$0xff] }
 0x1ab   : > { %849 = vst [vmem:[#allocation2 + $0xf0] sm:$0xff] %v798_v1  ;;  %850 = vst [vmem:[#allocation2 + $0xf8] sm:$0xff] %v4767_v18  ;;  %1670 = vmatmul.mubr.f32.gmra.mrb[4].mxu1 %v4771_v2  ;;  %v724_v8 = vrot.slane %v642_v63, 7  ;;  %v578_v9 = vadd.f32 %v3195_v7, %v4596_v52  ;;  %v572_v11 = vpop.f32.mrb[23].mxu0  ;;  %v1234_v56 = vld [vmem:[#allocation8 + $0x258] sm:$0xff] }
 0x1ac   : > { %1420 = vmatmul.mubr.f32.gmra.mrb[50].mxu0 %v4649_v27  ;;  %1674 = vmatprep.mubr.f32.mxu1 %v4722_v24  ;;  %v4781_v16 = vrot.slane %v641_v3, 7  ;;  %v573_v17 = vadd.f32 %v4596_v52, %v572_v11 }
 0x1ad   : > { %1424 = vmatprep.mubr.f32.mxu0 %v4778_v15  ;;  %3504 = vmatpush1.bf16.msra.mxu1 %v3503_v61  ;;  %v815_v19 = vsel %vm692_vm0, %v724_v8, 0.0  ;;  %v644_v23 = vmax.f32 %v578_v9, 0.0 }
 0x1ae   : > { %854 = vst [vmem:[#allocation2 + $0x118] sm:$0x3] %v815_v19  ;;  %v4790_v27 = vsel %vm692_vm0, %v4781_v16, %v724_v8  ;;  %v799_v25 = vsel %vm692_vm0, 0.0, %v4781_v16  ;;  %3505 = vmatprep.subr.bf16.mxu1 %v4210_v0  ;;  %v643_v29 = vmax.f32 %v573_v17, 0.0  ;;  %v3198_v34 = vpop.f32.mrb[24].mxu0  ;;  %v3512_v8 = vpack.c.bf16 %v1234_v56, %v1233_v53  ;;  %v4832_v17 = vld [vmem:[#allocation2 + $0xca] sm:$0xff] }
 0x1af   : > { %1675 = vmatmul.mubr.f32.gmra.mrb[6].mxu1 %v4786_v6  ;;  %852 = vst [vmem:[#allocation2 + $0x108] sm:$0xff] %v799_v25  ;;  %853 = vst [vmem:[#allocation2 + $0x110] sm:$0xff] %v4790_v27  ;;  %v727_v35 = vrot.slane %v644_v23, 7  ;;  %v588_v36 = vadd.f32 %v3198_v34, %v4596_v52  ;;  %v582_v37 = vpop.f32.mrb[25].mxu0  ;;  %v1236_v23 = vld [vmem:[#allocation8 + $0x268] sm:$0xff] }
 0x1b0   : > { %3977 = vmatmul.mubr.msk.f32.gmra.mrb[52].mxu0 %vm4637_vm1, %v4655_v31  ;;  %3979 = vmatprep.mubr.msk.f32.mxu1 %vm4637_vm1, %v4734_v44  ;;  %v4806_v10 = vrot.slane %v643_v29, 7  ;;  %v583_v41 = vadd.f32 %v4596_v52, %v582_v37 }
 0x1b1   : > { %1429 = vmatprep.mubr.f32.mxu0 %v4801_v38  ;;  %3507 = vmatpush1.bf16.msra.mxu1 %v3506_v22  ;;  %v816_v46 = vsel %vm692_vm0, %v727_v35, 0.0  ;;  %v646_v47 = vmax.f32 %v588_v36, 0.0  ;;  %v1235_v22 = vld [vmem:[#allocation8 + $0x260] sm:$0xff] }
 0x1b2   : > { %3508 = vmatprep.subr.bf16.mxu1 %v4210_v0  ;;  %857 = vst [vmem:[#allocation2 + $0x130] sm:$0x3] %v816_v46  ;;  %v4816_v31 = vsel %vm692_vm0, %v4806_v10, %v727_v35  ;;  %v800_v51 = vsel %vm692_vm0, 0.0, %v4806_v10  ;;  %v645_v57 = vmax.f32 %v583_v41, 0.0  ;;  %v3201_v61 = vpop.f32.mrb[26].mxu0  ;;  %v4847_v35 = vld [vmem:[#allocation2 + $0x99] sm:$0xff]  ;;  %v3515_v41 = vpack.c.bf16 %v1236_v23, %v1235_v22 }
 0x1b3   : > { %1680 = vmatmul.mubr.f32.gmra.mrb[8].mxu1 %v4811_v48  ;;  %855 = vst [vmem:[#allocation2 + $0x120] sm:$0xff] %v800_v51  ;;  %856 = vst [vmem:[#allocation2 + $0x128] sm:$0xff] %v4816_v31  ;;  %v730_v63 = vrot.slane %v646_v47, 7  ;;  %v598_v1 = vadd.f32 %v3201_v61, %v4596_v52  ;;  %v592_v3 = vpop.f32.mrb[27].mxu0  ;;  %v4857_v47 = vld [vmem:[#allocation2 + $0xda] sm:$0xff]  ;;  %v1238_v51 = vld [vmem:[#allocation8 + $0x278] sm:$0xff] }
 0x1b4   : > { %1430 = vmatmul.mubr.f32.gmra.mrb[54].mxu0 %v4664_v60  ;;  %1684 = vmatprep.mubr.f32.mxu1 %v4742_v39  ;;  %v4827_v62 = vrot.slane %v645_v57, 7  ;;  %v593_v7 = vadd.f32 %v4596_v52, %v592_v3  ;;  %v4878_v23 = vld [vmem:[#allocation2 + $0xe2] sm:$0xff] }
 0x1b5   : > { %1434 = vmatprep.mubr.f32.mxu0 %v4824_v5  ;;  %3510 = vmatpush1.bf16.msra.mxu1 %v3509_v43  ;;  %v817_v9 = vsel %vm692_vm0, %v730_v63, 0.0  ;;  %v648_v11 = vmax.f32 %v598_v1, 0.0 }
 0x1b6   : > { %3511 = vmatprep.subr.bf16.mxu1 %v4210_v0  ;;  %860 = vst [vmem:[#allocation2 + $0x148] sm:$0x3] %v817_v9  ;;  %v4837_v60 = vsel %vm692_vm0, %v4827_v62, %v730_v63  ;;  %v801_v19 = vsel %vm692_vm0, 0.0, %v4827_v62  ;;  %v647_v25 = vmax.f32 %v593_v7, 0.0  ;;  %v3204_v28 = vpop.f32.mrb[28].mxu0  ;;  %v4870_v7 = vld [vmem:[#allocation2 + $0xa9] sm:$0xff] }
 0x1b7   : > { %1685 = vmatmul.mubr.f32.gmra.mrb[10].mxu1 %v4832_v17  ;;  %858 = vst [vmem:[#allocation2 + $0x138] sm:$0xff] %v801_v19  ;;  %859 = vst [vmem:[#allocation2 + $0x140] sm:$0xff] %v4837_v60  ;;  %v733_v30 = vrot.slane %v648_v11, 7  ;;  %v608_v29 = vadd.f32 %v3204_v28, %v4596_v52  ;;  %v602_v34 = vpop.f32.mrb[29].mxu0 }
 0x1b8   : > { %3981 = vmatmul.mubr.msk.f32.gmra.mrb[56].mxu0 %vm4637_vm1, %v4670_v42  ;;  %3983 = vmatprep.mubr.msk.f32.mxu1 %vm4637_vm1, %v4757_v55  ;;  %v4852_v36 = vrot.slane %v647_v25, 7  ;;  %v603_v37 = vadd.f32 %v4596_v52, %v602_v34  ;;  %v1237_v42 = vld [vmem:[#allocation8 + $0x270] sm:$0xff]  ;;  %v1240_v25 = vld [vmem:[#allocation8 + $0x288] sm:$0xff] }
 0x1b9   : > { %1439 = vmatprep.mubr.f32.mxu0 %v4847_v35  ;;  %3513 = vmatpush1.bf16.msra.mxu1 %v3512_v8  ;;  %v818_v43 = vsel %vm692_vm0, %v733_v30, 0.0  ;;  %v650_v46 = vmax.f32 %v608_v29, 0.0  ;;  %v3518_v11 = vpack.c.bf16 %v1238_v51, %v1237_v42  ;;  %v4892_v34 = vld [vmem:[#allocation2 + $0xb1] sm:$0xff]  ;;  %v1241_v42 = vld [vmem:[#allocation8 + $0x290] sm:$0xff] }
 0x1ba   : > { %3514 = vmatprep.subr.bf16.mxu1 %v4210_v0  ;;  %863 = vst [vmem:[#allocation2 + $0x160] sm:$0x3] %v818_v43  ;;  %v4862_v53 = vsel %vm692_vm0, %v4852_v36, %v733_v30  ;;  %v802_v56 = vsel %vm692_vm0, 0.0, %v4852_v36  ;;  %v649_v57 = vmax.f32 %v603_v37, 0.0  ;;  %v3207_v61 = vpop.f32.mrb[30].mxu0 }
 0x1bb   : > { %1690 = vmatmul.mubr.f32.gmra.mrb[12].mxu1 %v4857_v47  ;;  %861 = vst [vmem:[#allocation2 + $0x150] sm:$0xff] %v802_v56  ;;  %862 = vst [vmem:[#allocation2 + $0x158] sm:$0xff] %v4862_v53  ;;  %v736_v63 = vrot.slane %v650_v46, 7  ;;  %v618_v1 = vadd.f32 %v3207_v61, %v4596_v52  ;;  %v612_v3 = vpop.f32.mrb[31].mxu0  ;;  %v4901_v46 = vld [vmem:[#allocation2 + $0xf2] sm:$0xff] }
 0x1bc   : > { %1440 = vmatmul.mubr.f32.gmra.mrb[58].mxu0 %v4684_v50  ;;  %1694 = vmatprep.mubr.f32.mxu1 %v4767_v18  ;;  %v4873_v8 = vrot.slane %v649_v57, 7  ;;  %v613_v9 = vadd.f32 %v4596_v52, %v612_v3  ;;  %v1239_v50 = vld [vmem:[#allocation8 + $0x280] sm:$0xff]  ;;  %v4913_v57 = vld [vmem:[#allocation2 + $0xc1] sm:$0xff]  ;;  %v1244_v3 = vld [vmem:[#allocation8 + $0x2a8] sm:$0xff] }
 0x1bd   : > { %1444 = vmatprep.mubr.f32.mxu0 %v4870_v7  ;;  %3516 = vmatpush1.bf16.msra.mxu1 %v3515_v41  ;;  %v819_v19 = vsel %vm692_vm0, %v736_v63, 0.0  ;;  %v652_v22 = vmax.f32 %v618_v1, 0.0  ;;  %v3521_v41 = vpack.c.bf16 %v1240_v25, %v1239_v50  ;;  %v1243_v1 = vld [vmem:[#allocation8 + $0x2a0] sm:$0xff] }
 0x1be   : > { %3517 = vmatprep.subr.bf16.mxu1 %v4210_v0  ;;  %866 = vst [vmem:[#allocation2 + $0x178] sm:$0x3] %v819_v19  ;;  %v4883_v28 = vsel %vm692_vm0, %v4873_v8, %v736_v63  ;;  %v803_v52 = vsel %vm692_vm0, 0.0, %v4873_v8  ;;  %v651_v30 = vmax.f32 %v613_v9, 0.0  ;;  %v4917_v63 = vld [vmem:[#allocation2 + $0xfa] sm:$0xff]  ;;  %v3527_v9 = vpack.c.bf16 %v1244_v3, %v1243_v1  ;;  %v4939_v25 = vld [vmem:[#allocation2 + $0x112] sm:$0xff] }
 0x1bf   : > { %1695 = vmatmul.mubr.f32.gmra.mrb[14].mxu1 %v4878_v23  ;;  %864 = vst [vmem:[#allocation2 + $0x168] sm:$0xff] %v803_v52  ;;  %865 = vst [vmem:[#allocation2 + $0x170] sm:$0xff] %v4883_v28  ;;  %v739_v29 = vrot.slane %v652_v22, 7  ;;  %v1245_v19 = vld [vmem:[#allocation8 + $0x2b0] sm:$0xff]  ;;  %v1246_v22 = vld [vmem:[#allocation8 + $0x2b8] sm:$0xff] }
 0x1c0   : > { %3985 = vmatmul.mubr.msk.f32.gmra.mrb[60].mxu0 %vm4637_vm1, %v4691_v58  ;;  %3987 = vmatprep.mubr.msk.f32.mxu1 %vm4637_vm1, %v4781_v16  ;;  %v4897_v37 = vrot.slane %v651_v30, 7  ;;  %v1242_v58 = vld [vmem:[#allocation8 + $0x298] sm:$0xff]  ;;  %v3530_v50 = vpack.c.bf16 %v1246_v22, %v1245_v19  ;;  %v1247_v52 = vld [vmem:[#allocation8 + $0x2c0] sm:$0xff]  ;;  %v1248_v30 = vld [vmem:[#allocation8 + $0x2c8] sm:$0xff] }
 0x1c1   : > { %1449 = vmatprep.mubr.f32.mxu0 %v4892_v34  ;;  %3519 = vmatpush1.bf16.msra.mxu1 %v3518_v11  ;;  %v820_v43 = vsel %vm692_vm0, %v739_v29, 0.0  ;;  %v3524_v61 = vpack.c.bf16 %v1242_v58, %v1241_v42  ;;  %v4930_v11 = vld [vmem:[#allocation2 + $0x10a] sm:$0xff]  ;;  %v1252_v1 = vld [vmem:[#allocation8 + $0x2e8] sm:$0xff]  ;;  %v1253_v19 = vld [vmem:[#allocation8 + $0x2f0] sm:$0xff] }
 0x1c2   : > { %3520 = vmatprep.subr.bf16.mxu1 %v4210_v0  ;;  %869 = vst [vmem:[#allocation2 + $0x190] sm:$0x3] %v820_v43  ;;  %v4906_v51 = vsel %vm692_vm0, %v4897_v37, %v739_v29  ;;  %v804_v56 = vsel %vm692_vm0, 0.0, %v4897_v37  ;;  %v3533_v29 = vpack.c.bf16 %v1248_v30, %v1247_v52  ;;  %v1249_v43 = vld [vmem:[#allocation8 + $0x2d0] sm:$0xff]  ;;  %v1250_v42 = vld [vmem:[#allocation8 + $0x2d8] sm:$0xff]  ;;  %v4990_v30 = vld [vmem:[#allocation2 + $0x111] sm:$0xff] }
 0x1c3   : > { %1700 = vmatmul.mubr.f32.gmra.mrb[16].mxu1 %v4901_v46  ;;  %867 = vst [vmem:[#allocation2 + $0x180] sm:$0xff] %v804_v56  ;;  %868 = vst [vmem:[#allocation2 + $0x188] sm:$0xff] %v4906_v51  ;;  %v3536_v58 = vpack.c.bf16 %v1250_v42, %v1249_v43  ;;  %v4961_v56 = vld [vmem:[#allocation2 + $0x12a] sm:$0xff]  ;;  %v4983_v52 = vld [vmem:[#allocation2 + $0x142] sm:$0xff] }
 0x1c4   : > { %1450 = vmatmul.mubr.f32.gmra.mrb[62].mxu0 %v4701_v4  ;;  %1704 = vmatprep.mubr.f32.mxu1 %v4790_v27  ;;  %v4924_v4 = vld [vmem:[#allocation2 + $0xc9] sm:$0xff]  ;;  %v5021_v42 = vld [vmem:[#allocation2 + $0x139] sm:$0xff] }
 0x1c5   : > { %1454 = vmatprep.mubr.f32.mxu0 %v4913_v57  ;;  %3522 = vmatpush1.bf16.msra.mxu1 %v3521_v41  ;;  %v4952_v41 = vld [vmem:[#allocation2 + $0x122] sm:$0xff] }
 0x1c6   : > { %3523 = vmatprep.subr.bf16.mxu1 %v4210_v0  ;;  %v1254_v22 = vld [vmem:[#allocation8 + $0x2f8] sm:$0xff] }
 0x1c7   : > { %1705 = vmatmul.mubr.f32.gmra.mrb[18].mxu1 %v4917_v63  ;;  %v5011_v43 = vld [vmem:[#allocation2 + $0x129] sm:$0xff] }
 0x1c8   : > { %3989 = vmatmul.mubr.msk.f32.gmra.mrb[64].mxu0 %vm4637_vm1, %v4710_v12  ;;  %3991 = vmatprep.mubr.msk.f32.mxu1 %vm4637_vm1, %v4806_v10  ;;  %v4935_v12 = vld [vmem:[#allocation2 + $0xd9] sm:$0xff] }
 0x1c9   : > { %1459 = vmatprep.mubr.f32.mxu0 %v4924_v4  ;;  %3525 = vmatpush1.bf16.msra.mxu1 %v3524_v61  ;;  %v1251_v61 = vld [vmem:[#allocation8 + $0x2e0] sm:$0xff] }
 0x1ca   : > { %3526 = vmatprep.subr.bf16.mxu1 %v4210_v0  ;;  %v3539_v3 = vpack.c.bf16 %v1252_v1, %v1251_v61  ;;  %v5025_v61 = vld [vmem:[#allocation2 + $0x172] sm:$0xff]  ;;  %v5033_v1 = vld [vmem:[#allocation2 + $0x141] sm:$0xff] }
 0x1cb   : > { %1710 = vmatmul.mubr.f32.gmra.mrb[20].mxu1 %v4930_v11  ;;  %5636 = vst [vmem:[#allocation18_spill] sm:$0xff] %v5025_v61 }
 0x1cc   : > { %1460 = vmatmul.mubr.f32.gmra.mrb[66].mxu0 %v4722_v24  ;;  %1714 = vmatprep.mubr.f32.mxu1 %v4816_v31  ;;  %v4946_v24 = vld [vmem:[#allocation2 + $0xe1] sm:$0xff] }
 0x1cd   : > { %1464 = vmatprep.mubr.f32.mxu0 %v4935_v12  ;;  %3528 = vmatpush1.bf16.msra.mxu1 %v3527_v9  ;;  %v4974_v9 = vld [vmem:[#allocation2 + $0x13a] sm:$0xff] }
 0x1ce   : > { %3529 = vmatprep.subr.bf16.mxu1 %v4210_v0 }
 0x1cf   : > { %1715 = vmatmul.mubr.f32.gmra.mrb[22].mxu1 %v4939_v25 }
 0x1d0   : > { %3993 = vmatmul.mubr.msk.f32.gmra.mrb[68].mxu0 %vm4637_vm1, %v4734_v44  ;;  %3995 = vmatprep.mubr.msk.f32.mxu1 %vm4637_vm1, %v4827_v62  ;;  %v4957_v44 = vld [vmem:[#allocation2 + $0xf1] sm:$0xff] }
 0x1d1   : > { %1469 = vmatprep.mubr.f32.mxu0 %v4946_v24  ;;  %3531 = vmatpush1.bf16.msra.mxu1 %v3530_v50  ;;  %v3542_v50 = vpack.c.bf16 %v1254_v22, %v1253_v19  ;;  %v5039_v19 = vld [vmem:[#allocation2 + $0x151] sm:$0xff]  ;;  %v5041_v22 = vld [vmem:[#allocation2 + $0x22] sm:$0xff] }
 0x1d2   : > { %3532 = vmatprep.subr.bf16.mxu1 %v4210_v0 }
 0x1d3   : > { %1720 = vmatmul.mubr.f32.gmra.mrb[24].mxu1 %v4952_v41 }
 0x1d4   : > { %1470 = vmatmul.mubr.f32.gmra.mrb[70].mxu0 %v4742_v39  ;;  %1724 = vmatprep.mubr.f32.mxu1 %v4837_v60  ;;  %v4968_v39 = vld [vmem:[#allocation2 + $0xf9] sm:$0xff] }
 0x1d5   : > { %1474 = vmatprep.mubr.f32.mxu0 %v4957_v44  ;;  %3534 = vmatpush1.bf16.msra.mxu1 %v3533_v29  ;;  %v5001_v29 = vld [vmem:[#allocation2 + $0x121] sm:$0xff] }
 0x1d6   : > { %3535 = vmatprep.subr.bf16.mxu1 %v4210_v0 }
 0x1d7   : > { %1725 = vmatmul.mubr.f32.gmra.mrb[26].mxu1 %v4961_v56 }
 0x1d8   : > { %3997 = vmatmul.mubr.msk.f32.gmra.mrb[72].mxu0 %vm4637_vm1, %v4757_v55  ;;  %3999 = vmatprep.mubr.msk.f32.mxu1 %vm4637_vm1, %v4852_v36  ;;  %v4979_v55 = vld [vmem:[#allocation2 + $0x109] sm:$0xff] }
 0x1d9   : > { %1479 = vmatprep.mubr.f32.mxu0 %v4968_v39  ;;  %3537 = vmatpush1.bf16.msra.mxu1 %v3536_v58  ;;  %v1256_v58 = vld [vmem:[#allocation8 + $0x308] sm:$0xff] }
 0x1da   : > { %3538 = vmatprep.subr.bf16.mxu1 %v4210_v0 }
 0x1db   : > { %1730 = vmatmul.mubr.f32.gmra.mrb[28].mxu1 %v4974_v9 }
 0x1dc   : > { %1480 = vmatmul.mubr.f32.gmra.mrb[74].mxu0 %v4767_v18  ;;  %1734 = vmatprep.mubr.f32.mxu1 %v4862_v53  ;;  %v4996_v18 = vld [vmem:[#allocation2 + $0x152] sm:$0xff] }
 0x1dd   : > { %1484 = vmatprep.mubr.f32.mxu0 %v4979_v55  ;;  %3540 = vmatpush1.bf16.msra.mxu1 %v3539_v3  ;;  %v1258_v3 = vld [vmem:[#allocation8 + $0x318] sm:$0xff] }
 0x1de   : > { %3541 = vmatprep.subr.bf16.mxu1 %v4210_v0 }
 0x1df   : > { %1735 = vmatmul.mubr.f32.gmra.mrb[30].mxu1 %v4983_v52 }
 0x1e0   : > { %4001 = vmatmul.mubr.msk.f32.gmra.mrb[76].mxu0 %vm4637_vm1, %v4781_v16  ;;  %4003 = vmatprep.mubr.msk.f32.mxu1 %vm4637_vm1, %v4873_v8  ;;  %v5005_v16 = vld [vmem:[#allocation2 + $0x15a] sm:$0xff] }
 0x1e1   : > { %1489 = vmatprep.mubr.f32.mxu0 %v4990_v30  ;;  %3543 = vmatpush1.bf16.msra.mxu1 %v3542_v50  ;;  %v1259_v50 = vld [vmem:[#allocation8 + $0x320] sm:$0xff] }
 0x1e2   : > { %3544 = vmatprep.subr.bf16.mxu1 %v4210_v0 }
 0x1e3   : > { %1740 = vmatmul.mubr.f32.gmra.mrb[32].mxu1 %v4996_v18 }
 0x1e4   : > { %1490 = vmatmul.mubr.f32.gmra.mrb[78].mxu0 %v4790_v27  ;;  %1744 = vmatprep.mubr.f32.mxu1 %v4883_v28  ;;  %v5017_v27 = vld [vmem:[#allocation2 + $0x16a] sm:$0xff] }
 0x1e5   : > { %1494 = vmatprep.mubr.f32.mxu0 %v5001_v29  ;;  %5635 = vst [vmem:[#allocation17_spill] sm:$0xff] %v5017_v27 }
 0x1e7   : > { %1745 = vmatmul.mubr.f32.gmra.mrb[34].mxu1 %v5005_v16 }
 0x1e8   : > { %4005 = vmatmul.mubr.msk.f32.gmra.mrb[80].mxu0 %vm4637_vm1, %v4806_v10  ;;  %4007 = vmatprep.mubr.msk.f32.mxu1 %vm4637_vm1, %v4897_v37  ;;  %v1255_v10 = vld [vmem:[#allocation8 + $0x300] sm:$0xff]  ;;  %v5028_v37 = vld [vmem:[#allocation2 + $0x1a] sm:$0xff] }
 0x1e9   : > { %1499 = vmatprep.mubr.f32.mxu0 %v5011_v43 }
 0x1eb   : > { %1750 = vmatmul.mubr.f32.gmra.mrb[36].mxu1 %v5017_v27  ;;  %v1268_v27 = vld [vmem:[#allocation8 + $0x368] sm:$0xff] }
 0x1ec   : > { %1500 = vmatmul.mubr.f32.gmra.mrb[82].mxu0 %v4816_v31  ;;  %1754 = vmatprep.mubr.f32.mxu1 %v4906_v51  ;;  %v3545_v31 = vpack.c.bf16 %v1256_v58, %v1255_v10  ;;  %v1257_v51 = vld [vmem:[#allocation8 + $0x310] sm:$0xff]  ;;  %v1260_v10 = vld [vmem:[#allocation8 + $0x328] sm:$0xff] }
 0x1ed   : > { %1504 = vmatprep.mubr.f32.mxu0 %v5021_v42  ;;  %v5047_v58 = vld [vmem:[#allocation2 + $0x32] sm:$0xff] }
 0x1ef   : > { %1755 = vmatmul.mubr.f32.gmra.mrb[38].mxu1 %v5025_v61  ;;  %v1266_v61 = vld [vmem:[#allocation8 + $0x358] sm:$0xff] }
 0x1f0   : > { %4009 = vmatmul.mubr.msk.f32.gmra.mrb[84].mxu0 %vm4637_vm1, %v4827_v62  ;;  %1824 = vmatprep.mubr.f32.mxu1 %v5028_v37  ;;  %v3548_v62 = vpack.c.bf16 %v1258_v3, %v1257_v51  ;;  %v1262_v51 = vld [vmem:[#allocation8 + $0x338] sm:$0xff] }
 0x1f1   : > { %1509 = vmatprep.mubr.f32.mxu0 %v5033_v1  ;;  %v5061_v3 = vld [vmem:[#allocation2 + $0x169] sm:$0xff] }
 0x1f2   : > { %5638 = vst [vmem:[#allocation20_spill] sm:$0xff] %v5061_v3 }
 0x1f3   : > { %1825 = vmatmul.mubr.f32.vlgmr.msra.gmra.mrb[40].mxu1 %v4628_v14  ;;  %v5052_v14 = vld [vmem:[#allocation2 + $0x159] sm:$0xff] }
 0x1f4   : > { %1510 = vmatmul.mubr.f32.gmra.mrb[86].mxu0 %v4837_v60  ;;  %3546 = vmatpush1.bf16.msra.mxu1 %v3545_v31  ;;  %5637 = vst [vmem:[#allocation19_spill] sm:$0xff] %v5052_v14  ;;  %v3551_v60 = vpack.c.bf16 %v1260_v10, %v1259_v50  ;;  %v1261_v31 = vld [vmem:[#allocation8 + $0x330] sm:$0xff]  ;;  %v1264_v50 = vld [vmem:[#allocation8 + $0x348] sm:$0xff]  ;;  %v5067_v10 = vld [vmem:[#allocation2 + $0x4a] sm:$0xff] }
 0x1f5   : > { %1514 = vmatprep.mubr.f32.mxu0 %v5039_v19  ;;  %1829 = vmatprep.mubr.f32.mxu1 %v5041_v22 }
 0x1f6   : > { %3547 = vmatprep.subr.bf16.mxu1 %v4210_v0 }
 0x1f7   : > { %1830 = vmatmul.mubr.f32.gmra.mrb[42].mxu1 %v4643_v21  ;;  %v5058_v21 = vld [vmem:[#allocation2 + $0x3a] sm:$0xff] }
 0x1f8   : > { %4011 = vmatmul.mubr.msk.f32.gmra.mrb[88].mxu0 %vm4637_vm1, %v4852_v36  ;;  %1834 = vmatprep.mubr.f32.mxu1 %v5047_v58  ;;  %v3554_v36 = vpack.c.bf16 %v1262_v51, %v1261_v31  ;;  %v1289_v31 = vld [vmem:[#allocation8 + $0x410] sm:$0xff] }
 0x1f9   : > { %1519 = vmatprep.mubr.f32.mxu0 %v5052_v14  ;;  %3549 = vmatpush1.bf16.msra.mxu1 %v3548_v62  ;;  %v1263_v62 = vld [vmem:[#allocation8 + $0x340] sm:$0xff]  ;;  %v1265_v51 = vld [vmem:[#allocation8 + $0x350] sm:$0xff] }
 0x1fa   : > { %3550 = vmatprep.subr.bf16.mxu1 %v4210_v0  ;;  %v5092_v14 = vld [vmem:[#allocation2 + $0x30] sm:$0xff] }
 0x1fb   : > { %1835 = vmatmul.mubr.f32.gmra.mrb[44].mxu1 %v4658_v32  ;;  %v5072_v32 = vld [vmem:[#allocation2 + $0x171] sm:$0xff] }
 0x1fc   : > { %1520 = vmatmul.mubr.f32.gmra.mrb[90].mxu0 %v4862_v53  ;;  %1839 = vmatprep.mubr.f32.mxu1 %v5058_v21  ;;  %5639 = vst [vmem:[#allocation21_spill] sm:$0xff] %v5072_v32  ;;  %v3557_v53 = vpack.c.bf16 %v1264_v50, %v1263_v62  ;;  %v3560_v50 = vpack.c.bf16 %v1266_v61, %v1265_v51  ;;  %v1293_v61 = vld [vmem:[#allocation8 + $0x430] sm:$0xff] }
 0x1fd   : > { %1524 = vmatprep.mubr.f32.mxu0 %v5061_v3  ;;  %3552 = vmatpush1.bf16.msra.mxu1 %v3551_v60  ;;  %v5076_v60 = vld [vmem:[#allocation2 + $0x52] sm:$0xff]  ;;  %v1269_v51 = vld [vmem:[#allocation8 + $0x370] sm:$0xff] }
 0x1fe   : > { %3553 = vmatprep.subr.bf16.mxu1 %v4210_v0  ;;  %v1267_v3 = vld [vmem:[#allocation8 + $0x360] sm:$0xff] }
 0x1ff   : > { %1840 = vmatmul.mubr.f32.gmra.mrb[46].mxu1 %v4676_v45  ;;  %v1290_v45 = vld [vmem:[#allocation8 + $0x418] sm:$0xff] }
 0x200   : > { %4013 = vmatmul.mubr.msk.f32.gmra.mrb[92].mxu0 %vm4637_vm1, %v4873_v8  ;;  %1844 = vmatprep.mubr.f32.mxu1 %v5067_v10  ;;  %v934_v8 = vld [vmem:[#allocation2 + $0x2] sm:$0xff]  ;;  %v3596_v62 = vpack.c.bf16 %v1290_v45, %v1289_v31  ;;  %v3563_v45 = vpack.c.bf16 %v1268_v27, %v1267_v3  ;;  %v1295_v27 = vld [vmem:[#allocation8 + $0x440] sm:$0xff]  ;;  %v1296_v3 = vld [vmem:[#allocation8 + $0x448] sm:$0xff] }
 0x201   : > { %1529 = vmatprep.mubr.f32.mxu0 %v5072_v32  ;;  %3555 = vmatpush1.bf16.msra.mxu1 %v3554_v36  ;;  %v5082_v36 = vld [vmem:[#allocation2 + $0x62] sm:$0xff]  ;;  %v1291_v32 = vld [vmem:[#allocation8 + $0x420] sm:$0xff] }
 0x202   : > { %3556 = vmatprep.subr.bf16.mxu1 %v4210_v0 }
 0x203   : > { %1845 = vmatmul.mubr.f32.gmra.mrb[48].mxu1 %v4694_v59  ;;  %v1292_v59 = vld [vmem:[#allocation8 + $0x428] sm:$0xff] }
 0x204   : > { %1530 = vmatmul.mubr.f32.gmra.mrb[94].mxu0 %v4883_v28  ;;  %1849 = vmatprep.mubr.f32.mxu1 %v5076_v60  ;;  %v967_v28 = vld [vmem:[#allocation2 + $0x20] sm:$0xff]  ;;  %v3600_v31 = vpack.c.bf16 %v1292_v59, %v1291_v32  ;;  %v1272_v59 = vld [vmem:[#allocation8 + $0x388] sm:$0xff] }
 0x205   : > { %1599 = vmatprep.mubr.f32.mxu0 %v966_v20  ;;  %3558 = vmatpush1.bf16.msra.mxu1 %v3557_v53  ;;  %v935_v20 = vld [vmem:[#allocation2 + $0xa] sm:$0xff] }
 0x206   : > { %3559 = vmatprep.subr.bf16.mxu1 %v4210_v0  ;;  %v5088_v53 = vld [vmem:[#allocation2 + $0x6a] sm:$0xff] }
 0x207   : > { %1850 = vmatmul.mubr.f32.gmra.mrb[50].mxu1 %v4715_v13  ;;  %v1294_v13 = vld [vmem:[#allocation8 + $0x438] sm:$0xff] }
 0x208   : > { %1600 = vmatmul.mubr.f32.vlgmr.msra.gmra.mrb[32].mxu0 %v934_v8  ;;  %1854 = vmatprep.mubr.f32.mxu1 %v5082_v36  ;;  %v1270_v8 = vld [vmem:[#allocation8 + $0x378] sm:$0xff]  ;;  %v3604_v32 = vpack.c.bf16 %v1294_v13, %v1293_v61  ;;  %v1297_v61 = vld [vmem:[#allocation8 + $0x450] sm:$0xff] }
 0x209   : > { %1604 = vmatprep.mubr.f32.mxu0 %v967_v28  ;;  %3595 = vmatpush3.bf16.msra.mxu0 %v4680_v49  ;;  %v5096_v49 = vld [vmem:[#allocation2 + $0x7a] sm:$0xff]  ;;  %v1274_v13 = vld [vmem:[#allocation8 + $0x398] sm:$0xff] }
 0x20a   : > { %3597 = vmatprep.subr.bf16.mxu0 %v3596_v62  ;;  %3561 = vmatpush1.bf16.msra.mxu1 %v3560_v50  ;;  %v1271_v50 = vld [vmem:[#allocation8 + $0x380] sm:$0xff]  ;;  %v5101_v28 = vld [vmem:[#allocation2 + $0x38] sm:$0xff] }
 0x20b   : > { %1855 = vmatmul.mubr.f32.gmra.mrb[52].mxu1 %v4732_v33  ;;  %3562 = vmatprep.subr.bf16.mxu1 %v4210_v0  ;;  %v3566_v33 = vpack.c.bf16 %v1270_v8, %v1269_v51  ;;  %v5110_v51 = vld [vmem:[#allocation2 + $0x48] sm:$0xff]  ;;  %v1299_v8 = vld [vmem:[#allocation8 + $0x460] sm:$0xff] }
 0x20c   : > { %1605 = vmatmul.mubr.f32.gmra.mrb[34].mxu0 %v935_v20  ;;  %1859 = vmatprep.mubr.f32.mxu1 %v5088_v53  ;;  %v3608_v20 = vpack.c.bf16 %v1296_v3, %v1295_v27  ;;  %v1276_v3 = vld [vmem:[#allocation8 + $0x3a8] sm:$0xff] }
 0x20d   : > { %1609 = vmatprep.mubr.f32.mxu0 %v5092_v14  ;;  %3599 = vmatpush3.bf16.msra.mxu0 %v3596_v62  ;;  %v5105_v62 = vld [vmem:[#allocation2 + $0x82] sm:$0xff] }
 0x20e   : > { %3601 = vmatprep.subr.bf16.mxu0 %v3600_v31  ;;  %3564 = vmatpush1.bf16.msra.mxu1 %v3563_v45  ;;  %v1298_v45 = vld [vmem:[#allocation8 + $0x458] sm:$0xff] }
 0x20f   : > { %1860 = vmatmul.mubr.f32.gmra.mrb[54].mxu1 %v4755_v54  ;;  %3565 = vmatprep.subr.bf16.mxu1 %v4210_v0  ;;  %v3569_v54 = vpack.c.bf16 %v1272_v59, %v1271_v50  ;;  %v1301_v50 = vld [vmem:[#allocation8 + $0x470] sm:$0xff] }
 0x210   : > { %1610 = vmatmul.mubr.f32.gmra.mrb[36].mxu0 %v5028_v37  ;;  %1864 = vmatprep.mubr.f32.mxu1 %v5096_v49  ;;  %v1273_v37 = vld [vmem:[#allocation8 + $0x390] sm:$0xff] }
 0x211   : > { %1614 = vmatprep.mubr.f32.mxu0 %v5101_v28  ;;  %3603 = vmatpush3.bf16.msra.mxu0 %v3600_v31  ;;  %v3612_v31 = vpack.c.bf16 %v1298_v45, %v1297_v61  ;;  %v3572_v27 = vpack.c.bf16 %v1274_v13, %v1273_v37  ;;  %v1277_v61 = vld [vmem:[#allocation8 + $0x3b0] sm:$0xff]  ;;  %v1280_v37 = vld [vmem:[#allocation8 + $0x3c8] sm:$0xff]  ;;  %v5131_v13 = vld [vmem:[#allocation2 + $0x68] sm:$0xff] }
 0x212   : > { %3605 = vmatprep.subr.bf16.mxu0 %v3604_v32  ;;  %3567 = vmatpush1.bf16.msra.mxu1 %v3566_v33  ;;  %v1275_v33 = vld [vmem:[#allocation8 + $0x3a0] sm:$0xff]  ;;  %v5124_v45 = vld [vmem:[#allocation2 + $0x60] sm:$0xff] }
 0x213   : > { %1865 = vmatmul.mubr.f32.gmra.mrb[56].mxu1 %v4778_v15  ;;  %3568 = vmatprep.subr.bf16.mxu1 %v4210_v0  ;;  %v1300_v15 = vld [vmem:[#allocation8 + $0x468] sm:$0xff]  ;;  %v3575_v59 = vpack.c.bf16 %v1276_v3, %v1275_v33  ;;  %v1285_v33 = vld [vmem:[#allocation8 + $0x3f0] sm:$0xff]  ;;  %v5152_v3 = vld [vmem:[#allocation2 + $0x90] sm:$0xff] }
 0x214   : > { %1615 = vmatmul.mubr.f32.gmra.mrb[38].mxu0 %v5041_v22  ;;  %1869 = vmatprep.mubr.f32.mxu1 %v5105_v62  ;;  %v5117_v22 = vld [vmem:[#allocation2 + $0x50] sm:$0xff] }
 0x215   : > { %1619 = vmatprep.mubr.f32.mxu0 %v5110_v51  ;;  %3607 = vmatpush3.bf16.msra.mxu0 %v3604_v32  ;;  %v3616_v32 = vpack.c.bf16 %v1300_v15, %v1299_v8  ;;  %v5138_v8 = vld [vmem:[#allocation2 + $0x78] sm:$0xff]  ;;  %v5145_v15 = vld [vmem:[#allocation2 + $0x80] sm:$0xff] }
 0x216   : > { %3609 = vmatprep.subr.bf16.mxu0 %v3608_v20  ;;  %3570 = vmatpush1.bf16.msra.mxu1 %v3569_v54  ;;  %v1278_v54 = vld [vmem:[#allocation8 + $0x3b8] sm:$0xff] }
 0x217   : > { %1870 = vmatmul.mubr.f32.gmra.mrb[58].mxu1 %v4801_v38  ;;  %3571 = vmatprep.subr.bf16.mxu1 %v4210_v0  ;;  %v1302_v38 = vld [vmem:[#allocation8 + $0x478] sm:$0xff] }
 0x218   : > { %1620 = vmatmul.mubr.f32.gmra.mrb[40].mxu0 %v5047_v58  ;;  %1874 = vmatprep.mubr.f32.mxu1 %v4726_v26  ;;  %v3620_v26 = vpack.c.bf16 %v1302_v38, %v1301_v50 }
 0x219   : > { %1624 = vmatprep.mubr.f32.mxu0 %v5117_v22  ;;  %3611 = vmatpush3.bf16.msra.mxu0 %v3608_v20  ;;  %v3578_v20 = vpack.c.bf16 %v1278_v54, %v1277_v61  ;;  %v1074_v61 = vld [vmem:[#allocation2 + $0xb0] sm:$0xff] }
 0x21a   : > { %3613 = vmatprep.subr.bf16.mxu0 %v3612_v31  ;;  %3573 = vmatpush1.bf16.msra.mxu1 %v3572_v27  ;;  %v1284_v27 = vld [vmem:[#allocation8 + $0x3e8] sm:$0xff] }
 0x21b   : > { %1875 = vmatmul.mubr.f32.gmra.mrb[60].mxu1 %v4824_v5  ;;  %3574 = vmatprep.subr.bf16.mxu1 %v4210_v0  ;;  %v1279_v5 = vld [vmem:[#allocation8 + $0x3c0] sm:$0xff] }
 0x21c   : > { %1625 = vmatmul.mubr.f32.gmra.mrb[42].mxu0 %v5058_v21  ;;  %1879 = vmatprep.mubr.f32.mxu1 %v4746_v40  ;;  %v3581_v40 = vpack.c.bf16 %v1280_v37, %v1279_v5  ;;  %v1108_v37 = vld [vmem:[#allocation2 + $0xc9] sm:$0xff] }
 0x21d   : > { %1629 = vmatprep.mubr.f32.mxu0 %v5124_v45  ;;  %3615 = vmatpush3.bf16.msra.mxu0 %v3612_v31  ;;  %v1282_v31 = vld [vmem:[#allocation8 + $0x3d8] sm:$0xff] }
 0x21e   : > { %3617 = vmatprep.subr.bf16.mxu0 %v3616_v32  ;;  %3576 = vmatpush1.bf16.msra.mxu1 %v3575_v59  ;;  %v1106_v59 = vld [vmem:[#allocation2 + $0xb1] sm:$0xff] }
 0x21f   : > { %1880 = vmatmul.mubr.f32.gmra.mrb[62].mxu1 %v4847_v35  ;;  %3577 = vmatprep.subr.bf16.mxu1 %v4210_v0  ;;  %v1281_v35 = vld [vmem:[#allocation8 + $0x3d0] sm:$0xff] }
 0x220   : > { %1630 = vmatmul.mubr.f32.gmra.mrb[44].mxu0 %v5067_v10  ;;  %1884 = vmatprep.mubr.f32.mxu1 %v4771_v2  ;;  %v3584_v2 = vpack.c.bf16 %v1282_v31, %v1281_v35  ;;  %v1109_v31 = vld [vmem:[#allocation2 + $0xd9] sm:$0xff] }
 0x221   : > { %1634 = vmatprep.mubr.f32.mxu0 %v5131_v13  ;;  %3619 = vmatpush3.bf16.msra.mxu0 %v3616_v32  ;;  %v1073_v32 = vld [vmem:[#allocation2 + $0xa8] sm:$0xff] }
 0x222   : > { %3621 = vmatprep.subr.bf16.mxu0 %v3620_v26  ;;  %3579 = vmatpush1.bf16.msra.mxu1 %v3578_v20  ;;  %v1075_v20 = vld [vmem:[#allocation2 + $0xc0] sm:$0xff] }
 0x223   : > { %1885 = vmatmul.mubr.f32.gmra.mrb[0].mxu1 %v4870_v7  ;;  %3580 = vmatprep.subr.bf16.mxu1 %v4210_v0  ;;  %v1283_v7 = vld [vmem:[#allocation8 + $0x3e0] sm:$0xff] }
 0x224   : > { %1635 = vmatmul.mubr.f32.gmra.mrb[46].mxu0 %v5076_v60  ;;  %1889 = vmatprep.mubr.f32.mxu1 %v4786_v6  ;;  %v3587_v6 = vpack.c.bf16 %v1284_v27, %v1283_v7  ;;  %v1110_v27 = vld [vmem:[#allocation2 + $0xe1] sm:$0xff] }
 0x225   : > { %1639 = vmatprep.mubr.f32.mxu0 %v5138_v8  ;;  %3623 = vmatpush3.bf16.msra.mxu0 %v3620_v26 }
 0x226   : > { %3582 = vmatpush1.bf16.msra.mxu1 %v3581_v40  ;;  %v1076_v40 = vld [vmem:[#allocation2 + $0xc8] sm:$0xff] }
 0x227   : > { %1890 = vmatmul.mubr.f32.gmra.mrb[2].mxu1 %v4892_v34  ;;  %3583 = vmatprep.subr.bf16.mxu1 %v4210_v0  ;;  %v1286_v34 = vld [vmem:[#allocation8 + $0x3f8] sm:$0xff] }
 0x228   : > { %1640 = vmatmul.mubr.f32.gmra.mrb[48].mxu0 %v5082_v36  ;;  %1894 = vmatprep.mubr.f32.mxu1 %v4811_v48  ;;  %v3590_v48 = vpack.c.bf16 %v1286_v34, %v1285_v33  ;;  %v1111_v34 = vld [vmem:[#allocation2 + $0xf1] sm:$0xff] }
 0x229   : > { %1644 = vmatprep.mubr.f32.mxu0 %v5145_v15 }
 0x22a   : > { %3585 = vmatpush1.bf16.msra.mxu1 %v3584_v2  ;;  %v1077_v2 = vld [vmem:[#allocation2 + $0xd8] sm:$0xff] }
 0x22b   : > { %1895 = vmatmul.mubr.f32.gmra.mrb[4].mxu1 %v4913_v57  ;;  %3586 = vmatprep.subr.bf16.mxu1 %v4210_v0  ;;  %v5159_v57 = vld [vmem:[#allocation2 + $0x98] sm:$0xff] }
 0x22c   : > { %1645 = vmatmul.mubr.f32.gmra.mrb[50].mxu0 %v5088_v53  ;;  %1899 = vmatprep.mubr.f32.mxu1 %v4832_v17  ;;  %v1136_v17 = vld [vmem:[#allocation2 + $0x9a] sm:$0xff] }
 0x22d   : > { %1649 = vmatprep.mubr.f32.mxu0 %v5152_v3 }
 0x22e   : > { %3588 = vmatpush1.bf16.msra.mxu1 %v3587_v6  ;;  %v1078_v6 = vld [vmem:[#allocation2 + $0xe0] sm:$0xff] }
 0x22f   : > { %1900 = vmatmul.mubr.f32.gmra.mrb[6].mxu1 %v4924_v4  ;;  %3589 = vmatprep.subr.bf16.mxu1 %v4210_v0  ;;  %v1135_v0 = vld [vmem:[#allocation2 + $0x92] sm:$0xff]  ;;  %v1139_v4 = vld [vmem:[#allocation2 + $0xc2] sm:$0xff] }
 0x230   : > { %1650 = vmatmul.mubr.f32.gmra.mrb[52].mxu0 %v5096_v49  ;;  %1904 = vmatprep.mubr.f32.mxu1 %v4857_v47  ;;  %v1137_v47 = vld [vmem:[#allocation2 + $0xaa] sm:$0xff] }
 0x231   : > { %1654 = vmatprep.mubr.f32.mxu0 %v5159_v57 }
 0x232   : > { %3591 = vmatpush1.bf16.msra.mxu1 %v3590_v48  ;;  %v1079_v48 = vld [vmem:[#allocation2 + $0xf0] sm:$0xff] }
 0x233   : > { %1905 = vmatmul.mubr.f32.gmra.mrb[8].mxu1 %v4935_v12  ;;  %v1140_v12 = vld [vmem:[#allocation2 + $0xca] sm:$0xff] }
 0x234   : > { %1655 = vmatmul.mubr.f32.gmra.mrb[54].mxu0 %v5105_v62  ;;  %1909 = vmatprep.mubr.f32.mxu1 %v4878_v23  ;;  %v1138_v23 = vld [vmem:[#allocation2 + $0xb2] sm:$0xff] }
 0x235   : > { %3240 = vmatprep.mubr.f32.mxu0 %v5047_v58 }
 0x237   : > { %1910 = vmatmul.mubr.f32.gmra.mrb[10].mxu1 %v4946_v24  ;;  %v1141_v24 = vld [vmem:[#allocation2 + $0xda] sm:$0xff] }
 0x238   : > { %3241 = vmatmul.mubr.f32.vlgmr.msra.gmra.mrb[96].mxu0 %v5058_v21  ;;  %1914 = vmatprep.mubr.f32.mxu1 %v4901_v46 }
 0x239   : > { %3243 = vmatprep.mubr.f32.mxu0 %v5067_v10 }
 0x23b   : > { %1915 = vmatmul.mubr.f32.gmra.mrb[12].mxu1 %v4957_v44  ;;  %v1142_v44 = vld [vmem:[#allocation2 + $0xe2] sm:$0xff] }
 0x23c   : > { %3244 = vmatmul.mubr.f32.gmra.mrb[98].mxu0 %v5076_v60  ;;  %1919 = vmatprep.mubr.f32.mxu1 %v4917_v63  ;;  %v1103_v60 = vld [vmem:[#allocation2 + $0x91] sm:$0xff] }
 0x23d   : > { %3246 = vmatprep.mubr.f32.mxu0 %v5082_v36 }
 0x23f   : > { %1920 = vmatmul.mubr.f32.gmra.mrb[14].mxu1 %v4968_v39  ;;  %v5640_v39 = vld [vmem:[#allocation19_spill] sm:$0xff] }
 0x240   : > { %3247 = vmatmul.mubr.f32.gmra.mrb[100].mxu0 %v5088_v53  ;;  %1924 = vmatprep.mubr.f32.mxu1 %v4930_v11 }
 0x241   : > { %3249 = vmatprep.mubr.f32.mxu0 %v5096_v49  ;;  %v1104_v49 = vld [vmem:[#allocation2 + $0x99] sm:$0xff] }
 0x243   : > { %1925 = vmatmul.mubr.f32.gmra.mrb[16].mxu1 %v4979_v55  ;;  %v1060_v55 = vld [vmem:[#allocation2 + $0x182] sm:$0xff] }
 0x244   : > { %3250 = vmatmul.mubr.f32.gmra.mrb[102].mxu0 %v5105_v62  ;;  %1929 = vmatprep.mubr.f32.mxu1 %v4939_v25 }
 0x245   : > { %3252 = vmatprep.mubr.f32.mxu0 %v1135_v0  ;;  %v1112_v0 = vld [vmem:[#allocation2 + $0xf9] sm:$0xff] }
 0x247   : > { %1930 = vmatmul.mubr.f32.gmra.mrb[18].mxu1 %v4990_v30  ;;  %v1157_v30 = vld [vmem:[#allocation2 + $0x19a] sm:$0xff] }
 0x248   : > { %3253 = vmatmul.mubr.f32.gmra.mrb[104].mxu0 %v1136_v17  ;;  %1934 = vmatprep.mubr.f32.mxu1 %v4952_v41  ;;  %v2467_v17 = vld [vmem:[#allocation9] sm:$0xff] }
 0x249   : > { %3255 = vmatprep.mubr.f32.mxu0 %v1137_v47  ;;  %v2468_v47 = vld [vmem:[#allocation9 + $0x8] sm:$0xff] }
 0x24b   : > { %1935 = vmatmul.mubr.f32.gmra.mrb[20].mxu1 %v5001_v29  ;;  %v1096_v29 = vld [vmem:[#allocation2 + $0x39] sm:$0xff] }
 0x24c   : > { %3256 = vmatmul.mubr.f32.gmra.mrb[106].mxu0 %v1138_v23  ;;  %1939 = vmatprep.mubr.f32.mxu1 %v4961_v56 }
 0x24d   : > { %3258 = vmatprep.mubr.f32.mxu0 %v1139_v4  ;;  %v3624_v4 = vpack.c.bf16 %v2468_v47, %v2467_v17 }
 0x24f   : > { %1940 = vmatmul.mubr.f32.gmra.mrb[22].mxu1 %v5011_v43  ;;  %v1098_v43 = vld [vmem:[#allocation2 + $0x51] sm:$0xff]  ;;  %3625 = vmatprep.subr.bf16.mxu0 %v3624_v4 }
 0x250   : > { %3259 = vmatmul.mubr.f32.gmra.mrb[108].mxu0 %v1140_v12  ;;  %1944 = vmatprep.mubr.f32.mxu1 %v4974_v9  ;;  %v1080_v12 = vld [vmem:[#allocation2 + $0xf8] sm:$0xff] }
 0x251   : > { %3261 = vmatprep.mubr.f32.mxu0 %v1141_v24  ;;  %3627 = vmatpush3.bf16.msra.mxu0 %v3624_v4 }
 0x253   : > { %1945 = vmatmul.mubr.f32.gmra.mrb[24].mxu1 %v5021_v42  ;;  %v1099_v42 = vld [vmem:[#allocation2 + $0x61] sm:$0xff] }
 0x254   : > { %3262 = vmatmul.mubr.f32.gmra.mrb[110].mxu0 %v1142_v44  ;;  %1949 = vmatprep.mubr.f32.mxu1 %v4983_v52  ;;  %v1113_v44 = vld [vmem:[#allocation2 + $0x109] sm:$0xff] }
 0x255   : > { %3264 = vmatprep.mubr.f32.mxu0 %v4901_v46  ;;  %v5641_v46 = vld [vmem:[#allocation17_spill] sm:$0xff] }
 0x257   : > { %1950 = vmatmul.mubr.f32.gmra.mrb[26].mxu1 %v5033_v1  ;;  %v1100_v1 = vld [vmem:[#allocation2 + $0x69] sm:$0xff] }
 0x258   : > { %3265 = vmatmul.mubr.f32.gmra.mrb[112].mxu0 %v4917_v63  ;;  %1954 = vmatprep.mubr.f32.mxu1 %v4996_v18  ;;  %v5642_v63 = vld [vmem:[#allocation20_spill] sm:$0xff] }
 0x259   : > { %3267 = vmatprep.mubr.f32.mxu0 %v4930_v11  ;;  %v5643_v11 = vld [vmem:[#allocation18_spill] sm:$0xff] }
 0x25b   : > { %1955 = vmatmul.mubr.f32.gmra.mrb[28].mxu1 %v5039_v19  ;;  %v1101_v19 = vld [vmem:[#allocation2 + $0x79] sm:$0xff] }
 0x25c   : > { %3268 = vmatmul.mubr.f32.gmra.mrb[114].mxu0 %v4939_v25  ;;  %1959 = vmatprep.mubr.f32.mxu1 %v5005_v16  ;;  %v5644_v25 = vld [vmem:[#allocation21_spill] sm:$0xff] }
 0x25d   : > { %3270 = vmatprep.mubr.f32.mxu0 %v4952_v41  ;;  %v5210_v41 = vld [vmem:[#allocation2 + $0x181] sm:$0xff] }
 0x25f   : > { %1960 = vmatmul.mubr.f32.gmra.mrb[30].mxu1 %v5640_v39  ;;  %v2469_v39 = vld [vmem:[#allocation9 + $0x10] sm:$0xff] }
 0x260   : > { %3271 = vmatmul.mubr.f32.gmra.mrb[116].mxu0 %v4961_v56  ;;  %1964 = vmatprep.mubr.f32.mxu1 %v5641_v46  ;;  %v1156_v56 = vld [vmem:[#allocation2 + $0x18a] sm:$0xff] }
 0x261   : > { %3273 = vmatprep.mubr.f32.mxu0 %v4974_v9  ;;  %v5214_v9 = vld [vmem:[#allocation2 + $0x189] sm:$0xff] }
 0x263   : > { %1965 = vmatmul.mubr.f32.gmra.mrb[32].mxu1 %v5642_v63 }
 0x264   : > { %3274 = vmatmul.mubr.f32.gmra.mrb[118].mxu0 %v4983_v52  ;;  %1969 = vmatprep.mubr.f32.mxu1 %v5643_v11  ;;  %v1095_v52 = vld [vmem:[#allocation2 + $0x31] sm:$0xff] }
 0x265   : > { %3276 = vmatprep.mubr.f32.mxu0 %v4996_v18  ;;  %v1158_v18 = vld [vmem:[#allocation2 + $0x1a2] sm:$0xff] }
 0x267   : > { %1970 = vmatmul.mubr.f32.gmra.mrb[34].mxu1 %v5644_v25  ;;  %v1081_v25 = vld [vmem:[#allocation2 + $0x108] sm:$0xff] }
 0x268   : > { %3277 = vmatmul.mubr.f32.gmra.mrb[120].mxu0 %v5005_v16  ;;  %1974 = vmatprep.mubr.f32.mxu1 %v1060_v55  ;;  %v1097_v16 = vld [vmem:[#allocation2 + $0x49] sm:$0xff] }
 0x269   : > { %3279 = vmatprep.mubr.f32.mxu0 %v5641_v46  ;;  %v2470_v46 = vld [vmem:[#allocation9 + $0x18] sm:$0xff] }
 0x26b   : > { %1975 = vmatmul.mubr.f32.gmra.mrb[36].mxu1 %v5210_v41 }
 0x26c   : > { %3280 = vmatmul.mubr.f32.gmra.mrb[122].mxu0 %v5643_v11  ;;  %1979 = vmatprep.mubr.f32.mxu1 %v1156_v56  ;;  %v3628_v11 = vpack.c.bf16 %v2470_v46, %v2469_v39  ;;  %v1088_v39 = vld [vmem:[#allocation2 + $0x158] sm:$0xff] }
 0x26d   : > { %3282 = vmatprep.mubr.f32.mxu0 %v1060_v55 }
 0x26e   : > { %3629 = vmatprep.subr.bf16.mxu0 %v3628_v11 }
 0x26f   : > { %1980 = vmatmul.mubr.f32.gmra.mrb[38].mxu1 %v5214_v9  ;;  %3631 = vmatpush3.bf16.msra.mxu0 %v3628_v11 }
 0x270   : > { %3283 = vmatmul.mubr.f32.gmra.mrb[124].mxu0 %v1156_v56  ;;  %2049 = vmatprep.mubr.f32.mxu1 %v1095_v52  ;;  %v1114_v56 = vld [vmem:[#allocation2 + $0x111] sm:$0xff] }
 0x271   : > { %3285 = vmatprep.mubr.f32.mxu0 %v1157_v30  ;;  %v2471_v52 = vld [vmem:[#allocation9 + $0x20] sm:$0xff]  ;;  %v2472_v30 = vld [vmem:[#allocation9 + $0x28] sm:$0xff] }
 0x273   : > { %2050 = vmatmul.mubr.f32.vlgmr.msra.gmra.mrb[40].mxu1 %v5092_v14  ;;  %v1102_v14 = vld [vmem:[#allocation2 + $0x81] sm:$0xff] }
 0x274   : > { %2054 = vmatprep.mubr.f32.mxu1 %v1096_v29  ;;  %3286 = vmatmul.mubr.f32.gmra.mrb[126].mxu0 %v1158_v18  ;;  %v3632_v29 = vpack.c.bf16 %v2472_v30, %v2471_v52  ;;  %v1122_v52 = vld [vmem:[#allocation2 + $0x171] sm:$0xff] }
 0x276   : > { %3633 = vmatprep.subr.bf16.mxu0 %v3632_v29 }
 0x277   : > { %2055 = vmatmul.mubr.f32.gmra.mrb[42].mxu1 %v5101_v28  ;;  %3635 = vmatpush3.bf16.msra.mxu0 %v3632_v29 }
 0x278   : > { %2059 = vmatprep.mubr.f32.mxu1 %v1097_v16  ;;  %v1082_v16 = vld [vmem:[#allocation2 + $0x110] sm:$0xff] }
 0x27b   : > { %2060 = vmatmul.mubr.f32.gmra.mrb[44].mxu1 %v5110_v51  ;;  %v1105_v51 = vld [vmem:[#allocation2 + $0xa9] sm:$0xff] }
 0x27c   : > { %2064 = vmatprep.mubr.f32.mxu1 %v1098_v43 }
 0x27f   : > { %2065 = vmatmul.mubr.f32.gmra.mrb[46].mxu1 %v5117_v22 }
 0x280   : > { %2069 = vmatprep.mubr.f32.mxu1 %v1099_v42  ;;  %v1115_v42 = vld [vmem:[#allocation2 + $0x121] sm:$0xff] }
 0x283   : > { %2070 = vmatmul.mubr.f32.gmra.mrb[48].mxu1 %v5124_v45  ;;  %v1107_v45 = vld [vmem:[#allocation2 + $0xc1] sm:$0xff] }
 0x284   : > { %2074 = vmatprep.mubr.f32.mxu1 %v1100_v1  ;;  %v2473_v1 = vld [vmem:[#allocation9 + $0x30] sm:$0xff] }
 0x287   : > { %2075 = vmatmul.mubr.f32.gmra.mrb[50].mxu1 %v5131_v13 }
 0x288   : > { %2079 = vmatprep.mubr.f32.mxu1 %v1101_v19  ;;  %v2474_v19 = vld [vmem:[#allocation9 + $0x38] sm:$0xff] }
 0x28b   : > { %v5223_v58 = vpop.f32.mrb[56].mxu0  ;;  %2080 = vmatmul.mubr.f32.gmra.mrb[52].mxu1 %v5138_v8 }
 0x28c   : > { %v1438_v21 = vpop.f32.mrb[57].mxu0  ;;  %2084 = vmatprep.mubr.f32.mxu1 %v1102_v14 }
 0x28d   : > { %v3636_v21 = vpack.c.bf16 %v2474_v19, %v2473_v1 }
 0x28f   : > { %v5226_v10 = vpop.f32.mrb[58].mxu0  ;;  %2085 = vmatmul.mubr.f32.gmra.mrb[54].mxu1 %v5145_v15  ;;  %3637 = vmatprep.subr.bf16.mxu0 %v3636_v21 }
 0x290   : > { %v1443_v36 = vpop.f32.mrb[59].mxu0  ;;  %2089 = vmatprep.mubr.f32.mxu1 %v1103_v60  ;;  %v1083_v60 = vld [vmem:[#allocation2 + $0x120] sm:$0xff]  ;;  %3639 = vmatpush3.bf16.msra.mxu0 %v3636_v21  ;;  %v1092_v21 = vld [vmem:[#allocation2 + $0x188] sm:$0xff] }
 0x293   : > { %v5229_v53 = vpop.f32.mrb[60].mxu0  ;;  %2090 = vmatmul.mubr.f32.gmra.mrb[56].mxu1 %v5152_v3 }
 0x294   : > { %v1448_v28 = vpop.f32.mrb[61].mxu0  ;;  %2094 = vmatprep.mubr.f32.mxu1 %v1104_v49  ;;  %v1116_v49 = vld [vmem:[#allocation2 + $0x129] sm:$0xff] }
 0x295   : > { %v2475_v28 = vld [vmem:[#allocation9 + $0x40] sm:$0xff] }
 0x297   : > { %v5232_v62 = vpop.f32.mrb[62].mxu0  ;;  %2095 = vmatmul.mubr.f32.gmra.mrb[58].mxu1 %v5159_v57 }
 0x298   : > { %v1453_v22 = vpop.f32.mrb[63].mxu0  ;;  %2099 = vmatprep.mubr.f32.mxu1 %v1105_v51  ;;  %v2476_v51 = vld [vmem:[#allocation9 + $0x48] sm:$0xff] }
 0x29b   : > { %v5235_v50 = vpop.f32.mrb[64].mxu0  ;;  %2100 = vmatmul.mubr.f32.gmra.mrb[60].mxu1 %v1073_v32  ;;  %v3640_v32 = vpack.c.bf16 %v2476_v51, %v2475_v28  ;;  %v1126_v28 = vld [vmem:[#allocation2 + $0x1a1] sm:$0xff] }
 0x29c   : > { %v1458_v38 = vpop.f32.mrb[65].mxu0  ;;  %2104 = vmatprep.mubr.f32.mxu1 %v1106_v59  ;;  %v2477_v59 = vld [vmem:[#allocation9 + $0x50] sm:$0xff] }
 0x29d   : > { %v2478_v38 = vld [vmem:[#allocation9 + $0x58] sm:$0xff]  ;;  %3641 = vmatprep.subr.bf16.mxu0 %v3640_v32 }
 0x29e   : > { %3643 = vmatpush3.bf16.msra.mxu0 %v3640_v32 }
 0x29f   : > { %v5237_v54 = vpop.f32.mrb[66].mxu0  ;;  %2105 = vmatmul.mubr.f32.gmra.mrb[62].mxu1 %v1074_v61  ;;  %v3644_v61 = vpack.c.bf16 %v2478_v38, %v2477_v59 }
 0x2a0   : > { %v1463_v26 = vpop.f32.mrb[67].mxu0  ;;  %2109 = vmatprep.mubr.f32.mxu1 %v1107_v45  ;;  %v1084_v45 = vld [vmem:[#allocation2 + $0x128] sm:$0xff] }
 0x2a1   : > { %3645 = vmatprep.subr.bf16.mxu0 %v3644_v61 }
 0x2a2   : > { %3647 = vmatpush3.bf16.msra.mxu0 %v3644_v61 }
 0x2a3   : > { %v5239_v5 = vpop.f32.mrb[68].mxu0  ;;  %2110 = vmatmul.mubr.f32.gmra.mrb[0].mxu1 %v1075_v20  ;;  %v1117_v20 = vld [vmem:[#allocation2 + $0x139] sm:$0xff] }
 0x2a4   : > { %v1468_v13 = vpop.f32.mrb[69].mxu0  ;;  %2114 = vmatprep.mubr.f32.mxu1 %v1108_v37 }
 0x2a5   : > { %v1085_v13 = vld [vmem:[#allocation2 + $0x138] sm:$0xff] }
 0x2a7   : > { %v5241_v35 = vpop.f32.mrb[70].mxu0  ;;  %2115 = vmatmul.mubr.f32.gmra.mrb[2].mxu1 %v1076_v40 }
 0x2a8   : > { %v1473_v8 = vpop.f32.mrb[71].mxu0  ;;  %2119 = vmatprep.mubr.f32.mxu1 %v1109_v31  ;;  %v1118_v31 = vld [vmem:[#allocation2 + $0x141] sm:$0xff] }
 0x2a9   : > { %v2479_v8 = vld [vmem:[#allocation9 + $0x60] sm:$0xff] }
 0x2ab   : > { %v5243_v7 = vpop.f32.mrb[72].mxu0  ;;  %2120 = vmatmul.mubr.f32.gmra.mrb[4].mxu1 %v1077_v2  ;;  %v2480_v2 = vld [vmem:[#allocation9 + $0x68] sm:$0xff] }
 0x2ac   : > { %v1478_v15 = vpop.f32.mrb[73].mxu0  ;;  %2124 = vmatprep.mubr.f32.mxu1 %v1110_v27 }
 0x2ad   : > { %v3648_v15 = vpack.c.bf16 %v2480_v2, %v2479_v8 }
 0x2af   : > { %v5245_v33 = vpop.f32.mrb[74].mxu0  ;;  %2125 = vmatmul.mubr.f32.gmra.mrb[6].mxu1 %v1078_v6  ;;  %v1086_v6 = vld [vmem:[#allocation2 + $0x140] sm:$0xff]  ;;  %3649 = vmatprep.subr.bf16.mxu0 %v3648_v15 }
 0x2b0   : > { %v1483_v3 = vpop.f32.mrb[75].mxu0  ;;  %2129 = vmatprep.mubr.f32.mxu1 %v1111_v34  ;;  %3651 = vmatpush3.bf16.msra.mxu0 %v3648_v15 }
 0x2b1   : > { %v1119_v3 = vld [vmem:[#allocation2 + $0x151] sm:$0xff] }
 0x2b3   : > { %v5247_v57 = vpop.f32.mrb[76].mxu0  ;;  %2130 = vmatmul.mubr.f32.gmra.mrb[8].mxu1 %v1079_v48  ;;  %v2481_v48 = vld [vmem:[#allocation9 + $0x70] sm:$0xff] }
 0x2b4   : > { %v1488_v23 = vpop.f32.mrb[77].mxu0  ;;  %2134 = vmatprep.mubr.f32.mxu1 %v1112_v0  ;;  %v2482_v0 = vld [vmem:[#allocation9 + $0x78] sm:$0xff] }
 0x2b5   : > { %v3652_v47 = vpack.c.bf16 %v2482_v0, %v2481_v48  ;;  %v1087_v23 = vld [vmem:[#allocation2 + $0x150] sm:$0xff] }
 0x2b7   : > { %v5249_v24 = vpop.f32.mrb[78].mxu0  ;;  %2135 = vmatmul.mubr.f32.gmra.mrb[10].mxu1 %v1080_v12  ;;  %3653 = vmatprep.subr.bf16.mxu0 %v3652_v47  ;;  %v1120_v12 = vld [vmem:[#allocation2 + $0x159] sm:$0xff] }
 0x2b8   : > { %v1493_v63 = vpop.f32.mrb[79].mxu0  ;;  %2139 = vmatprep.mubr.f32.mxu1 %v1113_v44  ;;  %3655 = vmatpush3.bf16.msra.mxu0 %v3652_v47 }
 0x2b9   : > { %v1121_v63 = vld [vmem:[#allocation2 + $0x169] sm:$0xff] }
 0x2bb   : > { %v5251_v55 = vpop.f32.mrb[80].mxu0  ;;  %2140 = vmatmul.mubr.f32.gmra.mrb[12].mxu1 %v1081_v25  ;;  %v1089_v25 = vld [vmem:[#allocation2 + $0x168] sm:$0xff] }
 0x2bc   : > { %v1498_v18 = vpop.f32.mrb[81].mxu0  ;;  %2144 = vmatprep.mubr.f32.mxu1 %v1114_v56 }
 0x2bd   : > { %v1090_v18 = vld [vmem:[#allocation2 + $0x170] sm:$0xff] }
 0x2bf   : > { %v5253_v43 = vpop.f32.mrb[82].mxu0  ;;  %2145 = vmatmul.mubr.f32.gmra.mrb[14].mxu1 %v1082_v16 }
 0x2c0   : > { %5645 = vst [vmem:[#allocation19_spill] sm:$0xff] %v5253_v43  ;;  %v1503_v14 = vpop.f32.mrb[83].mxu0  ;;  %2149 = vmatprep.mubr.f32.mxu1 %v1115_v42  ;;  %v1091_v42 = vld [vmem:[#allocation2 + $0x180] sm:$0xff] }
 0x2c1   : > { %v1125_v14 = vld [vmem:[#allocation2 + $0x199] sm:$0xff] }
 0x2c3   : > { %v5255_v36 = vpop.f32.mrb[84].mxu0  ;;  %2150 = vmatmul.mubr.f32.gmra.mrb[16].mxu1 %v1083_v60 }
 0x2c4   : > { %5646 = vst [vmem:[#allocation17_spill] sm:$0xff] %v5255_v36  ;;  %v1508_v22 = vpop.f32.mrb[85].mxu0  ;;  %2154 = vmatprep.mubr.f32.mxu1 %v1116_v49 }
 0x2c5   : > { %v3963_v22 = vld [vmem:[#allocation2] sm:$0xff] }
 0x2c7   : > { %v5257_v26 = vpop.f32.mrb[86].mxu0  ;;  %2155 = vmatmul.mubr.f32.gmra.mrb[18].mxu1 %v1084_v45 }
 0x2c8   : > { %5647 = vst [vmem:[#allocation20_spill] sm:$0xff] %v5257_v26  ;;  %v1513_v37 = vpop.f32.mrb[87].mxu0  ;;  %2159 = vmatprep.mubr.f32.mxu1 %v1117_v20 }
 0x2cb   : > { %v5259_v40 = vpop.f32.mrb[88].mxu0  ;;  %2160 = vmatmul.mubr.f32.gmra.mrb[20].mxu1 %v1085_v13 }
 0x2cc   : > { %5648 = vst [vmem:[#allocation18_spill] sm:$0xff] %v5259_v40  ;;  %v1518_v27 = vpop.f32.mrb[89].mxu0  ;;  %2164 = vmatprep.mubr.f32.mxu1 %v1118_v31 }
 0x2cf   : > { %v5261_v34 = vpop.f32.mrb[90].mxu0  ;;  %2165 = vmatmul.mubr.f32.gmra.mrb[22].mxu1 %v1086_v6 }
 0x2d0   : > { %5649 = vst [vmem:[#allocation21_spill] sm:$0xff] %v5261_v34  ;;  %v1523_v17 = vpop.f32.mrb[91].mxu0  ;;  %2169 = vmatprep.mubr.f32.mxu1 %v1119_v3 }
 0x2d3   : > { %v5263_v4 = vpop.f32.mrb[92].mxu0  ;;  %2170 = vmatmul.mubr.f32.gmra.mrb[24].mxu1 %v1087_v23 }
 0x2d4   : > { %5650 = vst [vmem:[#allocation22_spill] sm:$0xff] %v5263_v4  ;;  %v1528_v44 = vpop.f32.mrb[93].mxu0  ;;  %2174 = vmatprep.mubr.f32.mxu1 %v1120_v12 }
 0x2d7   : > { %v5265_v46 = vpop.f32.mrb[94].mxu0  ;;  %2175 = vmatmul.mubr.f32.gmra.mrb[26].mxu1 %v1088_v39 }
 0x2d8   : > { %5651 = vst [vmem:[#allocation23_spill] sm:$0xff] %v5265_v46  ;;  %v1533_v11 = vpop.f32.mrb[95].mxu0  ;;  %2179 = vmatprep.mubr.f32.mxu1 %v1121_v63 }
 0x2db   : > { %v5267_v56 = vpop.f32.mrb[32].mxu0  ;;  %2180 = vmatmul.mubr.f32.gmra.mrb[28].mxu1 %v1089_v25 }
 0x2dc   : > { %v1603_v30 = vpop.f32.mrb[33].mxu0  ;;  %2184 = vmatprep.mubr.f32.mxu1 %v1122_v52 }
 0x2df   : > { %v5269_v29 = vpop.f32.mrb[34].mxu0  ;;  %2185 = vmatmul.mubr.f32.gmra.mrb[30].mxu1 %v1090_v18 }
 0x2e0   : > { %v1608_v16 = vpop.f32.mrb[35].mxu0  ;;  %2189 = vmatprep.mubr.f32.mxu1 %v5210_v41 }
 0x2e3   : > { %v5272_v1 = vpop.f32.mrb[36].mxu0  ;;  %2190 = vmatmul.mubr.f32.gmra.mrb[32].mxu1 %v1091_v42 }
 0x2e4   : > { %v1613_v19 = vpop.f32.mrb[37].mxu0  ;;  %2194 = vmatprep.mubr.f32.mxu1 %v5214_v9 }
 0x2e7   : > { %v5275_v60 = vpop.f32.mrb[38].mxu0  ;;  %2195 = vmatmul.mubr.f32.gmra.mrb[34].mxu1 %v1092_v21 }
 0x2e8   : > { %v1618_v49 = vpop.f32.mrb[39].mxu0  ;;  %2199 = vmatprep.mubr.f32.mxu1 %v1125_v14 }
 0x2eb   : > { %v5277_v51 = vpop.f32.mrb[40].mxu0  ;;  %2200 = vmatmul.mubr.f32.gmra.mrb[36].mxu1 %v3963_v22 }
 0x2ec   : > { %v1623_v41 = vpop.f32.mrb[41].mxu0  ;;  %2204 = vmatprep.mubr.f32.mxu1 %v1126_v28 }
 0x2ef   : > { %v5279_v32 = vpop.f32.mrb[42].mxu0  ;;  %2205 = vmatmul.mubr.f32.gmra.mrb[38].mxu1 %v3963_v22 }
 0x2f0   : > { %v1628_v59 = vpop.f32.mrb[43].mxu0 }
 0x2f3   : > { %v5281_v38 = vpop.f32.mrb[44].mxu0 }
 0x2f4   : > { %v1633_v9 = vpop.f32.mrb[45].mxu0 }
 0x2f7   : > { %v5283_v61 = vpop.f32.mrb[46].mxu0 }
 0x2f8   : > { %v1638_v45 = vpop.f32.mrb[47].mxu0 }
 0x2fb   : > { %v5285_v20 = vpop.f32.mrb[48].mxu0 }
 0x2fc   : > { %v1643_v37 = vpop.f32.mrb[49].mxu0 }
 0x2ff   : > { %v5287_v13 = vpop.f32.mrb[50].mxu0 }
 0x300   : > { %v1648_v31 = vpop.f32.mrb[51].mxu0 }
 0x301   : > { %v5344_v31 = vld [vmem:[%s5604_s5] ss:$0 sm:$0xff] }
 0x303   : > { %v5289_v8 = vpop.f32.mrb[52].mxu0 }
 0x304   : > { %v1653_v2 = vpop.f32.mrb[53].mxu0 }
 0x307   : > { %v5291_v27 = vpop.f32.mrb[54].mxu0 }
 0x308   : > { %v1658_v15 = vpop.f32.mrb[55].mxu0 }
 0x309   : > { %v3688_v15 = vadd.f32 %v5344_v31, %v5267_v56 }
 0x30b   : > { %v3242_v6 = vpop.f32.mrb[96].mxu0 }
 0x30c   : > { %v2276_v3 = vpop.f32.mrb[97].mxu0 }
 0x30f   : > { %v3245_v48 = vpop.f32.mrb[98].mxu0 }
 0x310   : > { %v2286_v0 = vpop.f32.mrb[99].mxu0 }
 0x313   : > { %v5293_v17 = vpop.f32.mrb[100].mxu0 }
 0x314   : > { %v2296_v47 = vpop.f32.mrb[101].mxu0 }
 0x317   : > { %v5295_v23 = vpop.f32.mrb[102].mxu0 }
 0x318   : > { %v5297_v12 = vpop.f32.mrb[103].mxu0 }
 0x31b   : > { %v5299_v44 = vpop.f32.mrb[104].mxu0 }
 0x31c   : > { %v5301_v39 = vpop.f32.mrb[105].mxu0 }
 0x31f   : > { %v5303_v63 = vpop.f32.mrb[106].mxu0 }
 0x320   : > { %v5305_v11 = vpop.f32.mrb[107].mxu0 }
 0x323   : > { %v5307_v25 = vpop.f32.mrb[108].mxu0 }
 0x324   : > { %v5309_v52 = vpop.f32.mrb[109].mxu0 }
 0x327   : > { %v5311_v30 = vpop.f32.mrb[110].mxu0 }
 0x328   : > { %v5313_v18 = vpop.f32.mrb[111].mxu0 }
 0x32b   : > { %v5315_v16 = vpop.f32.mrb[112].mxu0 }
 0x32c   : > { %v5317_v42 = vpop.f32.mrb[113].mxu0 }
 0x32f   : > { %v5319_v19 = vpop.f32.mrb[114].mxu0 }
 0x330   : > { %v5321_v14 = vpop.f32.mrb[115].mxu0 }
 0x333   : > { %v5323_v21 = vpop.f32.mrb[116].mxu0 }
 0x334   : > { %v5325_v49 = vpop.f32.mrb[117].mxu0 }
 0x337   : > { %v5327_v28 = vpop.f32.mrb[118].mxu0 }
 0x338   : > { %v5329_v22 = vpop.f32.mrb[119].mxu0 }
 0x33b   : > { %v5331_v41 = vpop.f32.mrb[120].mxu0 }
 0x33c   : > { %5652 = vst [vmem:[#allocation24_spill] sm:$0xff] %v5331_v41  ;;  %v5333_v59 = vpop.f32.mrb[121].mxu0 }
 0x33d   : > { %5653 = vst [vmem:[#allocation25_spill] sm:$0xff] %v5333_v59 }
 0x33f   : > { %v5335_v9 = vpop.f32.mrb[122].mxu0 }
 0x340   : > { %5654 = vst [vmem:[#allocation26_spill] sm:$0xff] %v5335_v9  ;;  %v5337_v45 = vpop.f32.mrb[123].mxu0 }
 0x341   : > { %5655 = vst [vmem:[#allocation27_spill] sm:$0xff] %v5337_v45 }
 0x343   : > { %v5339_v37 = vpop.f32.mrb[124].mxu0 }
 0x344   : > { %5656 = vst [vmem:[#allocation28_spill] sm:$0xff] %v5339_v37  ;;  %v5346_v2 = vpop.f32.mrb[125].mxu0  ;;  %v3690_v37 = vadd.f32 %v5344_v31, %v5269_v29 }
 0x345   : > { %5657 = vst [vmem:[#allocation29_spill] sm:$0xff] %v5346_v2  ;;  %v3692_v2 = vadd.f32 %v5344_v31, %v5272_v1 }
 0x346   : > { %v2051_v46 = vpop.f32.mrb[40].mxu1 }
 0x347   : > { %v3689_v4 = vadd.f32 %v3688_v15, %v2051_v46  ;;  %v2053_v34 = vpop.f32.mrb[41].mxu1  ;;  %v5350_v40 = vpop.f32.mrb[126].mxu0 }
 0x348   : > { %5658 = vst [vmem:[#allocation30_spill] sm:$0xff] %v5350_v40  ;;  %v5352_v9 = vpop.f32.mrb[127].mxu0  ;;  %v3694_v40 = vadd.f32 %v5344_v31, %v5275_v60 }
 0x349   : > { %5659 = vst [vmem:[#allocation31_spill] sm:$0xff] %v5352_v9  ;;  %v2277_v45 = vadd.f32 %v3689_v4, %v2276_v3 }
 0x34a   : > { %v2056_v26 = vpop.f32.mrb[42].mxu1 }
 0x34b   : > { %v2435_v41 = vmax.f32 %v2277_v45, 0.0  ;;  %v3691_v36 = vadd.f32 %v3690_v37, %v2056_v26  ;;  %v2058_v59 = vpop.f32.mrb[43].mxu1  ;;  %v3696_v26 = vadd.f32 %v5344_v31, %v5277_v51 }
 0x34d   : > { %v2282_v43 = vadd.f32 %v3691_v36, %v3242_v6  ;;  %3320 = vmatprep.mubr.f32.mxu0 %v2435_v41  ;;  %v3698_v41 = vadd.f32 %v5344_v31, %v5279_v32 }
 0x34e   : > { %v2061_v56 = vpop.f32.mrb[44].mxu1 }
 0x34f   : > { %v2436_v46 = vmax.f32 %v2282_v43, 0.0  ;;  %v3693_v34 = vadd.f32 %v3692_v2, %v2061_v56  ;;  %v2063_v15 = vpop.f32.mrb[45].mxu1 }
 0x350   : > { %v3702_v15 = vadd.f32 %v5344_v31, %v5283_v61  ;;  %v3706_v61 = vadd.f32 %v5344_v31, %v5287_v13  ;;  %v3710_v13 = vadd.f32 %v5344_v31, %v5291_v27  ;;  %v1442_v27 = vadd.f32 %v5344_v31, %v5226_v10 }
 0x351   : > { %v2287_v9 = vadd.f32 %v3693_v34, %v2286_v0  ;;  %3321 = vmatmul.mubr.f32.vlgmr.msra.gmra.mrb[128].mxu0 %v2436_v46  ;;  %v1452_v10 = vadd.f32 %v5344_v31, %v5232_v62  ;;  %v1462_v62 = vadd.f32 %v5344_v31, %v5237_v54  ;;  %v1472_v54 = vadd.f32 %v5344_v31, %v5241_v35 }
 0x352   : > { %v2066_v29 = vpop.f32.mrb[46].mxu1  ;;  %v1482_v35 = vadd.f32 %v5344_v31, %v5245_v33  ;;  %v1492_v33 = vadd.f32 %v5344_v31, %v5249_v24 }
 0x353   : > { %v2437_v4 = vmax.f32 %v2287_v9, 0.0  ;;  %v3695_v3 = vadd.f32 %v3694_v40, %v2066_v29  ;;  %v2068_v45 = vpop.f32.mrb[47].mxu1  ;;  %v3700_v40 = vadd.f32 %v5344_v31, %v5281_v38  ;;  %v3704_v38 = vadd.f32 %v5344_v31, %v5285_v20 }
 0x354   : > { %v3708_v20 = vadd.f32 %v5344_v31, %v5289_v8  ;;  %v1437_v8 = vadd.f32 %v5344_v31, %v5223_v58  ;;  %v1447_v58 = vadd.f32 %v5344_v31, %v5229_v53  ;;  %v1457_v53 = vadd.f32 %v5344_v31, %v5235_v50 }
 0x355   : > { %v2292_v59 = vadd.f32 %v3695_v3, %v3245_v48  ;;  %3323 = vmatprep.mubr.f32.mxu0 %v2437_v4  ;;  %v1467_v50 = vadd.f32 %v5344_v31, %v5239_v5  ;;  %v1477_v5 = vadd.f32 %v5344_v31, %v5243_v7  ;;  %v1487_v7 = vadd.f32 %v5344_v31, %v5247_v57 }
 0x356   : > { %v2071_v36 = vpop.f32.mrb[48].mxu1  ;;  %v1497_v57 = vadd.f32 %v5344_v31, %v5251_v55 }
 0x357   : > { %v2438_v1 = vmax.f32 %v2292_v59, 0.0  ;;  %v3697_v6 = vadd.f32 %v3696_v26, %v2071_v36  ;;  %v2073_v43 = vpop.f32.mrb[49].mxu1 }
 0x359   : > { %v2297_v37 = vadd.f32 %v3697_v6, %v2296_v47  ;;  %3324 = vmatmul.mubr.f32.gmra.mrb[130].mxu0 %v2438_v1 }
 0x35a   : > { %v2076_v60 = vpop.f32.mrb[50].mxu1 }
 0x35b   : > { %v2439_v0 = vmax.f32 %v2297_v37, 0.0  ;;  %v3699_v2 = vadd.f32 %v3698_v41, %v2076_v60  ;;  %v2078_v9 = vpop.f32.mrb[51].mxu1 }
 0x35d   : > { %v2302_v51 = vadd.f32 %v3699_v2, %v5293_v17  ;;  %3326 = vmatprep.mubr.f32.mxu0 %v2439_v0 }
 0x35e   : > { %v2081_v48 = vpop.f32.mrb[52].mxu1 }
 0x35f   : > { %v2440_v56 = vmax.f32 %v2302_v51, 0.0  ;;  %v3701_v46 = vadd.f32 %v3700_v40, %v2081_v48  ;;  %v2083_v34 = vpop.f32.mrb[53].mxu1 }
 0x361   : > { %v2307_v32 = vadd.f32 %v3701_v46, %v5297_v12  ;;  %3327 = vmatmul.mubr.f32.gmra.mrb[132].mxu0 %v2440_v56 }
 0x362   : > { %v2086_v47 = vpop.f32.mrb[54].mxu1 }
 0x363   : > { %v2441_v29 = vmax.f32 %v2307_v32, 0.0  ;;  %v3703_v4 = vadd.f32 %v3702_v15, %v2086_v47  ;;  %v2088_v3 = vpop.f32.mrb[55].mxu1 }
 0x365   : > { %v2312_v17 = vadd.f32 %v3703_v4, %v5295_v23  ;;  %3329 = vmatprep.mubr.f32.mxu0 %v2441_v29 }
 0x366   : > { %v2091_v45 = vpop.f32.mrb[56].mxu1 }
 0x367   : > { %v2442_v26 = vmax.f32 %v2312_v17, 0.0  ;;  %v3705_v59 = vadd.f32 %v3704_v38, %v2091_v45  ;;  %v2093_v36 = vpop.f32.mrb[57].mxu1 }
 0x369   : > { %v2317_v12 = vadd.f32 %v3705_v59, %v5301_v39  ;;  %3330 = vmatmul.mubr.f32.gmra.mrb[134].mxu0 %v2442_v26 }
 0x36a   : > { %v2096_v1 = vpop.f32.mrb[58].mxu1 }
 0x36b   : > { %v2443_v6 = vmax.f32 %v2317_v12, 0.0  ;;  %v3707_v43 = vadd.f32 %v3706_v61, %v2096_v1  ;;  %v2098_v41 = vpop.f32.mrb[59].mxu1 }
 0x36d   : > { %v2322_v23 = vadd.f32 %v3707_v43, %v5299_v44  ;;  %3332 = vmatprep.mubr.f32.mxu0 %v2443_v6 }
 0x36e   : > { %v2101_v37 = vpop.f32.mrb[60].mxu1 }
 0x36f   : > { %v2444_v60 = vmax.f32 %v2322_v23, 0.0  ;;  %v3709_v0 = vadd.f32 %v3708_v20, %v2101_v37  ;;  %v2103_v2 = vpop.f32.mrb[61].mxu1 }
 0x371   : > { %v2327_v39 = vadd.f32 %v3709_v0, %v5305_v11  ;;  %3333 = vmatmul.mubr.f32.gmra.mrb[136].mxu0 %v2444_v60 }
 0x372   : > { %v2106_v9 = vpop.f32.mrb[62].mxu1 }
 0x373   : > { %v2445_v40 = vmax.f32 %v2327_v39, 0.0  ;;  %v3711_v51 = vadd.f32 %v3710_v13, %v2106_v9  ;;  %v2108_v48 = vpop.f32.mrb[63].mxu1 }
 0x375   : > { %v2332_v44 = vadd.f32 %v3711_v51, %v5303_v63  ;;  %3335 = vmatprep.mubr.f32.mxu0 %v2445_v40 }
 0x376   : > { %v2111_v56 = vpop.f32.mrb[0].mxu1 }
 0x377   : > { %v2446_v46 = vmax.f32 %v2332_v44, 0.0  ;;  %v3713_v34 = vadd.f32 %v2111_v56, %v1437_v8  ;;  %v2113_v15 = vpop.f32.mrb[1].mxu1 }
 0x379   : > { %v2337_v11 = vadd.f32 %v3713_v34, %v5309_v52  ;;  %3336 = vmatmul.mubr.f32.gmra.mrb[138].mxu0 %v2446_v46 }
 0x37a   : > { %v2116_v32 = vpop.f32.mrb[2].mxu1 }
 0x37b   : > { %v2447_v47 = vmax.f32 %v2337_v11, 0.0  ;;  %v3715_v29 = vadd.f32 %v2116_v32, %v1442_v27  ;;  %v2118_v4 = vpop.f32.mrb[3].mxu1 }
 0x37d   : > { %v2342_v63 = vadd.f32 %v3715_v29, %v5307_v25  ;;  %3338 = vmatprep.mubr.f32.mxu0 %v2447_v47 }
 0x37e   : > { %v2121_v3 = vpop.f32.mrb[4].mxu1 }
 0x37f   : > { %v2448_v38 = vmax.f32 %v2342_v63, 0.0  ;;  %v3717_v17 = vadd.f32 %v2121_v3, %v1447_v58  ;;  %v2123_v45 = vpop.f32.mrb[5].mxu1 }
 0x381   : > { %v2347_v52 = vadd.f32 %v3717_v17, %v5313_v18  ;;  %3339 = vmatmul.mubr.f32.gmra.mrb[140].mxu0 %v2448_v38 }
 0x382   : > { %v2126_v26 = vpop.f32.mrb[6].mxu1 }
 0x383   : > { %v2449_v59 = vmax.f32 %v2347_v52, 0.0  ;;  %v3719_v36 = vadd.f32 %v2126_v26, %v1452_v10  ;;  %v2128_v61 = vpop.f32.mrb[7].mxu1  ;;  %v5660_v52 = vld [vmem:[#allocation19_spill] sm:$0xff]  ;;  %v5661_v26 = vld [vmem:[#allocation25_spill] sm:$0xff] }
 0x384   : > { %v1502_v24 = vadd.f32 %v5344_v31, %v5660_v52  ;;  %v2715_v52 = vld [vmem:[%s4466_s8] sm:$0xff] }
 0x385   : > { %v2352_v25 = vadd.f32 %v3719_v36, %v5311_v30  ;;  %3341 = vmatprep.mubr.f32.mxu0 %v2449_v59 }
 0x386   : > { %v2131_v12 = vpop.f32.mrb[8].mxu1 }
 0x387   : > { %v2450_v1 = vmax.f32 %v2352_v25, 0.0  ;;  %v3721_v6 = vadd.f32 %v2131_v12, %v1457_v53  ;;  %v2133_v43 = vpop.f32.mrb[9].mxu1  ;;  %v5662_v25 = vld [vmem:[#allocation17_spill] sm:$0xff]  ;;  %v5663_v12 = vld [vmem:[#allocation24_spill] sm:$0xff] }
 0x388   : > { %v1507_v55 = vadd.f32 %v5344_v31, %v5662_v25 }
 0x389   : > { %v2357_v18 = vadd.f32 %v3721_v6, %v5317_v42  ;;  %3342 = vmatmul.mubr.f32.gmra.mrb[142].mxu0 %v2450_v1 }
 0x38a   : > { %v2136_v41 = vpop.f32.mrb[10].mxu1 }
 0x38b   : > { %v2451_v20 = vmax.f32 %v2357_v18, 0.0  ;;  %v3723_v23 = vadd.f32 %v2136_v41, %v1462_v62  ;;  %v2138_v37 = vpop.f32.mrb[11].mxu1  ;;  %v5664_v18 = vld [vmem:[#allocation20_spill] sm:$0xff] }
 0x38c   : > { %v1512_v41 = vadd.f32 %v5344_v31, %v5664_v18 }
 0x38d   : > { %v2362_v30 = vadd.f32 %v3723_v23, %v5315_v16  ;;  %3344 = vmatprep.mubr.f32.mxu0 %v2451_v20  ;;  %v5665_v20 = vld [vmem:[#allocation27_spill] sm:$0xff] }
 0x38e   : > { %v2141_v60 = vpop.f32.mrb[12].mxu1 }
 0x38f   : > { %v2452_v0 = vmax.f32 %v2362_v30, 0.0  ;;  %v3725_v2 = vadd.f32 %v2141_v60, %v1467_v50  ;;  %v2143_v13 = vpop.f32.mrb[13].mxu1 }
 0x390   : > { %v5667_v13 = vld [vmem:[#allocation26_spill] sm:$0xff] }
 0x391   : > { %v2367_v42 = vadd.f32 %v3725_v2, %v5321_v14  ;;  %3345 = vmatmul.mubr.f32.gmra.mrb[144].mxu0 %v2452_v0  ;;  %v5666_v0 = vld [vmem:[#allocation18_spill] sm:$0xff] }
 0x392   : > { %v2146_v39 = vpop.f32.mrb[14].mxu1  ;;  %v1517_v2 = vadd.f32 %v5344_v31, %v5666_v0 }
 0x393   : > { %v2453_v9 = vmax.f32 %v2367_v42, 0.0  ;;  %v3727_v40 = vadd.f32 %v2146_v39, %v1472_v54  ;;  %v2148_v51 = vpop.f32.mrb[15].mxu1 }
 0x394   : > { %v5668_v51 = vld [vmem:[#allocation21_spill] sm:$0xff] }
 0x395   : > { %v2372_v16 = vadd.f32 %v3727_v40, %v5319_v19  ;;  %3347 = vmatprep.mubr.f32.mxu0 %v2453_v9 }
 0x396   : > { %v2151_v48 = vpop.f32.mrb[16].mxu1 }
 0x397   : > { %v2454_v8 = vmax.f32 %v2372_v16, 0.0  ;;  %v3729_v44 = vadd.f32 %v2151_v48, %v1477_v5  ;;  %v2153_v56 = vpop.f32.mrb[17].mxu1  ;;  %v1522_v5 = vadd.f32 %v5344_v31, %v5668_v51  ;;  %v5669_v16 = vld [vmem:[#allocation29_spill] sm:$0xff] }
 0x399   : > { %v2377_v14 = vadd.f32 %v3729_v44, %v5325_v49  ;;  %3348 = vmatmul.mubr.f32.gmra.mrb[146].mxu0 %v2454_v8 }
 0x39a   : > { %v2156_v46 = vpop.f32.mrb[18].mxu1 }
 0x39b   : > { %v2455_v34 = vmax.f32 %v2377_v14, 0.0  ;;  %v3731_v15 = vadd.f32 %v2156_v46, %v1482_v35  ;;  %v2158_v27 = vpop.f32.mrb[19].mxu1  ;;  %v5670_v14 = vld [vmem:[#allocation22_spill] sm:$0xff] }
 0x39c   : > { %v1527_v46 = vadd.f32 %v5344_v31, %v5670_v14  ;;  %v2723_v14 = vld [vmem:[%s4466_s8 + $0x40] sm:$0xff] }
 0x39d   : > { %v2382_v19 = vadd.f32 %v3731_v15, %v5323_v21  ;;  %3350 = vmatprep.mubr.f32.mxu0 %v2455_v34  ;;  %v5671_v34 = vld [vmem:[#allocation28_spill] sm:$0xff] }
 0x39e   : > { %v2161_v11 = vpop.f32.mrb[20].mxu1 }
 0x39f   : > { %v2456_v32 = vmax.f32 %v2382_v19, 0.0  ;;  %v3733_v47 = vadd.f32 %v2161_v11, %v1487_v7  ;;  %v2163_v29 = vpop.f32.mrb[21].mxu1 }
 0x3a0   : > { %v5673_v29 = vld [vmem:[#allocation31_spill] sm:$0xff] }
 0x3a1   : > { %v2387_v49 = vadd.f32 %v3733_v47, %v5329_v22  ;;  %3351 = vmatmul.mubr.f32.gmra.mrb[148].mxu0 %v2456_v32  ;;  %v5672_v32 = vld [vmem:[#allocation23_spill] sm:$0xff] }
 0x3a2   : > { %v2166_v4 = vpop.f32.mrb[22].mxu1  ;;  %v1532_v47 = vadd.f32 %v5344_v31, %v5672_v32 }
 0x3a3   : > { %v2457_v58 = vmax.f32 %v2387_v49, 0.0  ;;  %v3735_v63 = vadd.f32 %v2166_v4, %v1492_v33  ;;  %v2168_v3 = vpop.f32.mrb[23].mxu1 }
 0x3a4   : > { %v5674_v3 = vld [vmem:[#allocation30_spill] sm:$0xff] }
 0x3a5   : > { %v2392_v21 = vadd.f32 %v3735_v63, %v5327_v28  ;;  %3353 = vmatprep.mubr.f32.mxu0 %v2457_v58 }
 0x3a6   : > { %v2171_v38 = vpop.f32.mrb[24].mxu1 }
 0x3a7   : > { %v2458_v17 = vmax.f32 %v2392_v21, 0.0  ;;  %v3737_v45 = vadd.f32 %v2171_v38, %v1497_v57  ;;  %v2173_v10 = vpop.f32.mrb[25].mxu1  ;;  %v5446_v38 = vld [vmem:[%s5605_s6] ss:$0 sm:$0xff] }
 0x3a9   : > { %v2397_v22 = vadd.f32 %v3737_v45, %v5661_v26  ;;  %3354 = vmatmul.mubr.f32.gmra.mrb[150].mxu0 %v2458_v17  ;;  %v2716_v17 = vld [vmem:[%s4466_s8 + $0x8] sm:$0xff] }
 0x3aa   : > { %v2176_v59 = vpop.f32.mrb[26].mxu1 }
 0x3ab   : > { %v2459_v36 = vmax.f32 %v2397_v22, 0.0  ;;  %v3739_v61 = vadd.f32 %v2176_v59, %v1502_v24  ;;  %v2178_v53 = vpop.f32.mrb[27].mxu1 }
 0x3ac   : > { %v2718_v53 = vld [vmem:[%s4466_s8 + $0x18] sm:$0xff] }
 0x3ad   : > { %v2402_v28 = vadd.f32 %v3739_v61, %v5663_v12  ;;  %3356 = vmatprep.mubr.f32.mxu0 %v2459_v36  ;;  %v2717_v12 = vld [vmem:[%s4466_s8 + $0x10] sm:$0xff] }
 0x3ae   : > { %v2181_v1 = vpop.f32.mrb[28].mxu1 }
 0x3af   : > { %v2460_v6 = vmax.f32 %v2402_v28, 0.0  ;;  %v3741_v43 = vadd.f32 %v2181_v1, %v1507_v55  ;;  %v2183_v62 = vpop.f32.mrb[29].mxu1 }
 0x3b1   : > { %v2407_v23 = vadd.f32 %v3741_v43, %v5665_v20  ;;  %3357 = vmatmul.mubr.f32.gmra.mrb[152].mxu0 %v2460_v6 }
 0x3b2   : > { %v2186_v37 = vpop.f32.mrb[30].mxu1 }
 0x3b3   : > { %v2461_v50 = vmax.f32 %v2407_v23, 0.0  ;;  %v3743_v30 = vadd.f32 %v2186_v37, %v1512_v41  ;;  %v2188_v60 = vpop.f32.mrb[31].mxu1  ;;  %v2720_v41 = vld [vmem:[%s4466_s8 + $0x28] sm:$0xff]  ;;  %v2719_v37 = vld [vmem:[%s4466_s8 + $0x20] sm:$0xff] }
 0x3b5   : > { %v2412_v54 = vadd.f32 %v3743_v30, %v5667_v13  ;;  %3359 = vmatprep.mubr.f32.mxu0 %v2461_v50 }
 0x3b6   : > { %v2191_v42 = vpop.f32.mrb[32].mxu1 }
 0x3b7   : > { %v2462_v39 = vmax.f32 %v2412_v54, 0.0  ;;  %v3745_v9 = vadd.f32 %v2191_v42, %v1517_v2  ;;  %v2193_v40 = vpop.f32.mrb[33].mxu1  ;;  %v2722_v54 = vld [vmem:[%s4466_s8 + $0x38] sm:$0xff] }
 0x3b9   : > { %v2417_v48 = vadd.f32 %v3745_v9, %v5669_v16  ;;  %3360 = vmatmul.mubr.f32.gmra.mrb[154].mxu0 %v2462_v39  ;;  %v2721_v9 = vld [vmem:[%s4466_s8 + $0x30] sm:$0xff] }
 0x3ba   : > { %v2196_v8 = vpop.f32.mrb[34].mxu1 }
 0x3bb   : > { %v2463_v44 = vmax.f32 %v2417_v48, 0.0  ;;  %v3747_v56 = vadd.f32 %v2196_v8, %v1522_v5  ;;  %v2198_v35 = vpop.f32.mrb[35].mxu1 }
 0x3bd   : > { %v2422_v15 = vadd.f32 %v3747_v56, %v5671_v34  ;;  %3362 = vmatprep.mubr.f32.mxu0 %v2463_v44  ;;  %v2724_v44 = vld [vmem:[%s4466_s8 + $0x48] sm:$0xff] }
 0x3be   : > { %v2201_v27 = vpop.f32.mrb[36].mxu1 }
 0x3bf   : > { %v2464_v7 = vmax.f32 %v2422_v15, 0.0  ;;  %v3749_v19 = vadd.f32 %v2201_v27, %v1527_v46  ;;  %v2203_v11 = vpop.f32.mrb[37].mxu1 }
 0x3c0   : > { %v2726_v11 = vld [vmem:[%s4466_s8 + $0x58] sm:$0xff] }
 0x3c1   : > { %v2427_v33 = vadd.f32 %v3749_v19, %v5673_v29  ;;  %3363 = vmatmul.mubr.f32.gmra.mrb[156].mxu0 %v2464_v7  ;;  %v2725_v29 = vld [vmem:[%s4466_s8 + $0x50] sm:$0xff] }
 0x3c2   : > { %v2206_v49 = vpop.f32.mrb[38].mxu1 }
 0x3c3   : > { %v2465_v4 = vmax.f32 %v2427_v33, 0.0  ;;  %v3751_v58 = vadd.f32 %v2206_v49, %v1532_v47  ;;  %v2208_v63 = vpop.f32.mrb[39].mxu1 }
 0x3c5   : > { %v2432_v57 = vadd.f32 %v3751_v58, %v5674_v3  ;;  %3365 = vmatprep.mubr.f32.mxu0 %v2465_v4 }
 0x3c7   : > { %v2466_v21 = vmax.f32 %v2432_v57, 0.0  ;;  %v2728_v57 = vld [vmem:[%s4466_s8 + $0x68] sm:$0xff] }
 0x3c9   : > { %3366 = vmatmul.mubr.f32.gmra.mrb[158].mxu0 %v2466_v21 }
 0x424   : > { %v3322_v31 = vpop.f32.mrb[128].mxu0 }
 0x425   : > { %v2562_v45 = vadd.f32 %v3322_v31, %v5446_v38  ;;  %v2556_v10 = vpop.f32.mrb[129].mxu0 }
 0x426   : > { %v2557_v24 = vadd.f32 %v5446_v38, %v2556_v10 }
 0x427   : > { %v2748_v26 = vadd.f32 %v2716_v17, %v2562_v45  ;;  %v2727_v17 = vld [vmem:[%s4466_s8 + $0x60] sm:$0xff] }
 0x428   : > { %v2747_v22 = vadd.f32 %v2715_v52, %v2557_v24 }
 0x429   : > { %v2780_v59 = vmax.f32 %v2748_v26, 0.0 }
 0x42a   : > { %v2779_v36 = vmax.f32 %v2747_v22, 0.0 }
 0x42b   : > { %2812 = vst [vmem:[%s5454_s12 + $0x8] sm:$0xff] %v2780_v59  ;;  %v2730_v59 = vld [vmem:[%s4466_s8 + $0x78] sm:$0xff] }
 0x42c   : > { %2811 = vst [vmem:[%s5454_s12] sm:$0xff] %v2779_v36  ;;  %v3325_v61 = vpop.f32.mrb[130].mxu0 }
 0x42d   : > { %v2572_v25 = vadd.f32 %v3325_v61, %v5446_v38  ;;  %v2566_v55 = vpop.f32.mrb[131].mxu0 }
 0x42e   : > { %v2567_v28 = vadd.f32 %v5446_v38, %v2566_v55 }
 0x42f   : > { %v2750_v1 = vadd.f32 %v2718_v53, %v2572_v25  ;;  %v2729_v53 = vld [vmem:[%s4466_s8 + $0x70] sm:$0xff] }
 0x430   : > { %v2749_v6 = vadd.f32 %v2717_v12, %v2567_v28 }
 0x431   : > { %v2782_v43 = vmax.f32 %v2750_v1, 0.0 }
 0x432   : > { %v2781_v62 = vmax.f32 %v2749_v6, 0.0 }
 0x433   : > { %2814 = vst [vmem:[%s5454_s12 + $0x18] sm:$0xff] %v2782_v43  ;;  %v2732_v43 = vld [vmem:[%s4466_s8 + $0x88] sm:$0xff] }
 0x434   : > { %2813 = vst [vmem:[%s5454_s12 + $0x10] sm:$0xff] %v2781_v62  ;;  %v3328_v18 = vpop.f32.mrb[132].mxu0 }
 0x435   : > { %v2582_v20 = vadd.f32 %v3328_v18, %v5446_v38  ;;  %v2576_v23 = vpop.f32.mrb[133].mxu0 }
 0x436   : > { %v2577_v50 = vadd.f32 %v5446_v38, %v2576_v23 }
 0x437   : > { %v2752_v30 = vadd.f32 %v2720_v41, %v2582_v20  ;;  %v2731_v41 = vld [vmem:[%s4466_s8 + $0x80] sm:$0xff] }
 0x438   : > { %v2751_v60 = vadd.f32 %v2719_v37, %v2577_v50 }
 0x439   : > { %v2784_v0 = vmax.f32 %v2752_v30, 0.0 }
 0x43a   : > { %v2783_v2 = vmax.f32 %v2751_v60, 0.0 }
 0x43b   : > { %2816 = vst [vmem:[%s5454_s12 + $0x28] sm:$0xff] %v2784_v0  ;;  %v2734_v0 = vld [vmem:[%s4466_s8 + $0x98] sm:$0xff] }
 0x43c   : > { %2815 = vst [vmem:[%s5454_s12 + $0x20] sm:$0xff] %v2783_v2  ;;  %v3331_v13 = vpop.f32.mrb[134].mxu0 }
 0x43d   : > { %v2592_v42 = vadd.f32 %v3331_v13, %v5446_v38  ;;  %v2586_v39 = vpop.f32.mrb[135].mxu0 }
 0x43e   : > { %v2587_v40 = vadd.f32 %v5446_v38, %v2586_v39 }
 0x43f   : > { %v2754_v51 = vadd.f32 %v2722_v54, %v2592_v42  ;;  %v2733_v54 = vld [vmem:[%s4466_s8 + $0x90] sm:$0xff] }
 0x440   : > { %v2753_v5 = vadd.f32 %v2721_v9, %v2587_v40 }
 0x441   : > { %v2786_v16 = vmax.f32 %v2754_v51, 0.0 }
 0x442   : > { %v2785_v48 = vmax.f32 %v2753_v5, 0.0 }
 0x443   : > { %2818 = vst [vmem:[%s5454_s12 + $0x38] sm:$0xff] %v2786_v16  ;;  %v2736_v16 = vld [vmem:[%s4466_s8 + $0xa8] sm:$0xff] }
 0x444   : > { %2817 = vst [vmem:[%s5454_s12 + $0x30] sm:$0xff] %v2785_v48  ;;  %v3334_v8 = vpop.f32.mrb[136].mxu0 }
 0x445   : > { %v2602_v56 = vadd.f32 %v3334_v8, %v5446_v38  ;;  %v2596_v35 = vpop.f32.mrb[137].mxu0 }
 0x446   : > { %v2597_v46 = vadd.f32 %v5446_v38, %v2596_v35 }
 0x447   : > { %v2756_v34 = vadd.f32 %v2724_v44, %v2602_v56  ;;  %v2735_v44 = vld [vmem:[%s4466_s8 + $0xa0] sm:$0xff] }
 0x448   : > { %v2755_v15 = vadd.f32 %v2723_v14, %v2597_v46 }
 0x449   : > { %v2788_v27 = vmax.f32 %v2756_v34, 0.0 }
 0x44a   : > { %v2787_v7 = vmax.f32 %v2755_v15, 0.0 }
 0x44b   : > { %2820 = vst [vmem:[%s5454_s12 + $0x48] sm:$0xff] %v2788_v27  ;;  %v2738_v27 = vld [vmem:[%s4466_s8 + $0xb8] sm:$0xff] }
 0x44c   : > { %2819 = vst [vmem:[%s5454_s12 + $0x40] sm:$0xff] %v2787_v7  ;;  %v3337_v19 = vpop.f32.mrb[138].mxu0 }
 0x44d   : > { %v2612_v32 = vadd.f32 %v3337_v19, %v5446_v38  ;;  %v2606_v47 = vpop.f32.mrb[139].mxu0 }
 0x44e   : > { %v2607_v33 = vadd.f32 %v5446_v38, %v2606_v47 }
 0x44f   : > { %v2758_v49 = vadd.f32 %v2726_v11, %v2612_v32  ;;  %v2737_v11 = vld [vmem:[%s4466_s8 + $0xb0] sm:$0xff] }
 0x450   : > { %v2757_v4 = vadd.f32 %v2725_v29, %v2607_v33 }
 0x451   : > { %v2790_v58 = vmax.f32 %v2758_v49, 0.0 }
 0x452   : > { %v2789_v63 = vmax.f32 %v2757_v4, 0.0 }
 0x453   : > { %2822 = vst [vmem:[%s5454_s12 + $0x58] sm:$0xff] %v2790_v58  ;;  %v2740_v58 = vld [vmem:[%s4466_s8 + $0xc8] sm:$0xff] }
 0x454   : > { %2821 = vst [vmem:[%s5454_s12 + $0x50] sm:$0xff] %v2789_v63  ;;  %v3340_v3 = vpop.f32.mrb[140].mxu0 }
 0x455   : > { %v2622_v21 = vadd.f32 %v3340_v3, %v5446_v38  ;;  %v2616_v31 = vpop.f32.mrb[141].mxu0 }
 0x456   : > { %v2617_v45 = vadd.f32 %v5446_v38, %v2616_v31 }
 0x457   : > { %v2760_v10 = vadd.f32 %v2728_v57, %v2622_v21  ;;  %v2739_v57 = vld [vmem:[%s4466_s8 + $0xc0] sm:$0xff] }
 0x458   : > { %v2759_v52 = vadd.f32 %v2727_v17, %v2617_v45 }
 0x459   : > { %v2792_v24 = vmax.f32 %v2760_v10, 0.0 }
 0x45a   : > { %v2791_v26 = vmax.f32 %v2759_v52, 0.0 }
 0x45b   : > { %2824 = vst [vmem:[%s5454_s12 + $0x68] sm:$0xff] %v2792_v24  ;;  %v2742_v24 = vld [vmem:[%s4466_s8 + $0xd8] sm:$0xff] }
 0x45c   : > { %2823 = vst [vmem:[%s5454_s12 + $0x60] sm:$0xff] %v2791_v26  ;;  %v3343_v22 = vpop.f32.mrb[142].mxu0 }
 0x45d   : > { %v2632_v36 = vadd.f32 %v3343_v22, %v5446_v38  ;;  %v2626_v61 = vpop.f32.mrb[143].mxu0 }
 0x45e   : > { %v2627_v25 = vadd.f32 %v5446_v38, %v2626_v61 }
 0x45f   : > { %v2762_v55 = vadd.f32 %v2730_v59, %v2632_v36  ;;  %v2741_v59 = vld [vmem:[%s4466_s8 + $0xd0] sm:$0xff] }
 0x460   : > { %v2761_v12 = vadd.f32 %v2729_v53, %v2627_v25 }
 0x461   : > { %v2794_v28 = vmax.f32 %v2762_v55, 0.0 }
 0x462   : > { %v2793_v1 = vmax.f32 %v2761_v12, 0.0 }
 0x463   : > { %2826 = vst [vmem:[%s5454_s12 + $0x78] sm:$0xff] %v2794_v28  ;;  %v2744_v28 = vld [vmem:[%s4466_s8 + $0xe8] sm:$0xff] }
 0x464   : > { %2825 = vst [vmem:[%s5454_s12 + $0x70] sm:$0xff] %v2793_v1  ;;  %v3346_v6 = vpop.f32.mrb[144].mxu0 }
 0x465   : > { %v2642_v62 = vadd.f32 %v3346_v6, %v5446_v38  ;;  %v2636_v18 = vpop.f32.mrb[145].mxu0 }
 0x466   : > { %v2637_v20 = vadd.f32 %v5446_v38, %v2636_v18 }
 0x467   : > { %v2764_v23 = vadd.f32 %v2732_v43, %v2642_v62  ;;  %v2743_v43 = vld [vmem:[%s4466_s8 + $0xe0] sm:$0xff] }
 0x468   : > { %v2763_v37 = vadd.f32 %v2731_v41, %v2637_v20 }
 0x469   : > { %v2796_v50 = vmax.f32 %v2764_v23, 0.0 }
 0x46a   : > { %v2795_v30 = vmax.f32 %v2763_v37, 0.0 }
 0x46b   : > { %2828 = vst [vmem:[%s5454_s12 + $0x88] sm:$0xff] %v2796_v50  ;;  %v2746_v50 = vld [vmem:[%s4466_s8 + $0xf8] sm:$0xff] }
 0x46c   : > { %2827 = vst [vmem:[%s5454_s12 + $0x80] sm:$0xff] %v2795_v30  ;;  %v3349_v60 = vpop.f32.mrb[146].mxu0 }
 0x46d   : > { %v2652_v2 = vadd.f32 %v3349_v60, %v5446_v38  ;;  %v2646_v13 = vpop.f32.mrb[147].mxu0 }
 0x46e   : > { %v2647_v42 = vadd.f32 %v5446_v38, %v2646_v13 }
 0x46f   : > { %v2766_v39 = vadd.f32 %v2734_v0, %v2652_v2  ;;  %v2745_v0 = vld [vmem:[%s4466_s8 + $0xf0] sm:$0xff]  ;;  %s4128_s8 = scalar_lea.vmem %s5553_s21, 4096 }
 0x470   : > { %v2765_v9 = vadd.f32 %v2733_v54, %v2647_v42  ;;  %p4129_p10 = scmp.ne.s32.totalorder %s5553_s21, %s4128_s8  ;;  %p4136_p1 = scmp.lt.s32.totalorder %s4134_s9, %s4128_s8 }
 0x471   : > { %v2798_v40 = vmax.f32 %v2766_v39, 0.0 }
 0x472   : > { %v2797_v51 = vmax.f32 %v2765_v9, 0.0  ;;  %p4130_p3 = pnand %p4129_p10, %p4409_p5  ;;  %p4137_p2 = por %p4136_p1, %p4135_p12 }
 0x473   : > { %2830 = vst [vmem:[%s5454_s12 + $0x98] sm:$0xff] %v2798_v40 }
 0x474   : > { %2829 = vst [vmem:[%s5454_s12 + $0x90] sm:$0xff] %v2797_v51  ;;  %v3352_v5 = vpop.f32.mrb[148].mxu0  ;;  %p4131_p7 = pneg %p4130_p3 }
 0x475   : > { %v2662_v48 = vadd.f32 %v3352_v5, %v5446_v38  ;;  %v2656_v8 = vpop.f32.mrb[149].mxu0 }
 0x476   : > { %v2657_v56 = vadd.f32 %v5446_v38, %v2656_v8  ;;  %p4138_p4 = pnand %p4137_p2, %p4131_p7 }
 0x477   : > { %v2768_v35 = vadd.f32 %v2736_v16, %v2662_v48 }
 0x478   : > { %v2767_v14 = vadd.f32 %v2735_v44, %v2657_v56 }
 0x479   : > { %v2800_v46 = vmax.f32 %v2768_v35, 0.0 }
 0x47a   : > { %v2799_v34 = vmax.f32 %v2767_v14, 0.0 }
 0x47b   : > { %2832 = vst [vmem:[%s5454_s12 + $0xa8] sm:$0xff] %v2800_v46 }
 0x47c   : > { %2831 = vst [vmem:[%s5454_s12 + $0xa0] sm:$0xff] %v2799_v34  ;;  %v3355_v15 = vpop.f32.mrb[150].mxu0 }
 0x47d   : > { %v2672_v7 = vadd.f32 %v3355_v15, %v5446_v38  ;;  %v2666_v19 = vpop.f32.mrb[151].mxu0 }
 0x47e   : > { %v2667_v32 = vadd.f32 %v5446_v38, %v2666_v19 }
 0x47f   : > { %v2770_v47 = vadd.f32 %v2738_v27, %v2672_v7 }
 0x480   : > { %v2769_v29 = vadd.f32 %v2737_v11, %v2667_v32 }
 0x481   : > { %v2802_v33 = vmax.f32 %v2770_v47, 0.0 }
 0x482   : > { %v2801_v49 = vmax.f32 %v2769_v29, 0.0 }
 0x483   : > { %2834 = vst [vmem:[%s5454_s12 + $0xb8] sm:$0xff] %v2802_v33 }
 0x484   : > { %2833 = vst [vmem:[%s5454_s12 + $0xb0] sm:$0xff] %v2801_v49  ;;  %v3358_v4 = vpop.f32.mrb[152].mxu0 }
 0x485   : > { %v2682_v63 = vadd.f32 %v3358_v4, %v5446_v38  ;;  %v2676_v3 = vpop.f32.mrb[153].mxu0 }
 0x486   : > { %v2677_v21 = vadd.f32 %v5446_v38, %v2676_v3 }
 0x487   : > { %v2772_v31 = vadd.f32 %v2740_v58, %v2682_v63 }
 0x488   : > { %v2771_v17 = vadd.f32 %v2739_v57, %v2677_v21 }
 0x489   : > { %v2804_v45 = vmax.f32 %v2772_v31, 0.0 }
 0x48a   : > { %v2803_v10 = vmax.f32 %v2771_v17, 0.0 }
 0x48b   : > { %2836 = vst [vmem:[%s5454_s12 + $0xc8] sm:$0xff] %v2804_v45 }
 0x48c   : > { %2835 = vst [vmem:[%s5454_s12 + $0xc0] sm:$0xff] %v2803_v10  ;;  %v3361_v52 = vpop.f32.mrb[154].mxu0 }
 0x48d   : > { %v2692_v26 = vadd.f32 %v3361_v52, %v5446_v38  ;;  %v2686_v22 = vpop.f32.mrb[155].mxu0 }
 0x48e   : > { %v2687_v36 = vadd.f32 %v5446_v38, %v2686_v22 }
 0x48f   : > { %v2774_v61 = vadd.f32 %v2742_v24, %v2692_v26 }
 0x490   : > { %v2773_v53 = vadd.f32 %v2741_v59, %v2687_v36 }
 0x491   : > { %v2806_v25 = vmax.f32 %v2774_v61, 0.0 }
 0x492   : > { %v2805_v55 = vmax.f32 %v2773_v53, 0.0 }
 0x493   : > { %2838 = vst [vmem:[%s5454_s12 + $0xd8] sm:$0xff] %v2806_v25 }
 0x494   : > { %2837 = vst [vmem:[%s5454_s12 + $0xd0] sm:$0xff] %v2805_v55  ;;  %v3364_v12 = vpop.f32.mrb[156].mxu0 }
 0x495   : > { %v2702_v1 = vadd.f32 %v3364_v12, %v5446_v38  ;;  %v2696_v6 = vpop.f32.mrb[157].mxu0 }
 0x496   : > { %v2697_v62 = vadd.f32 %v5446_v38, %v2696_v6 }
 0x497   : > { %v2776_v18 = vadd.f32 %v2744_v28, %v2702_v1 }
 0x498   : > { %v2775_v41 = vadd.f32 %v2743_v43, %v2697_v62 }
 0x499   : > { %v2808_v20 = vmax.f32 %v2776_v18, 0.0 }
 0x49a   : > { %v2807_v23 = vmax.f32 %v2775_v41, 0.0 }
 0x49b   : > { %2840 = vst [vmem:[%s5454_s12 + $0xe8] sm:$0xff] %v2808_v20 }
 0x49c   : > { %2839 = vst [vmem:[%s5454_s12 + $0xe0] sm:$0xff] %v2807_v23  ;;  %v3367_v37 = vpop.f32.mrb[158].mxu0 }
 0x49d   : > { %v2712_v30 = vadd.f32 %v3367_v37, %v5446_v38  ;;  %v2706_v60 = vpop.f32.mrb[159].mxu0 }
 0x49e   : > { %v2707_v2 = vadd.f32 %v5446_v38, %v2706_v60 }
 0x49f   : > { %v2778_v13 = vadd.f32 %v2746_v50, %v2712_v30 }
 0x4a0   : > { %v2777_v54 = vadd.f32 %v2745_v0, %v2707_v2 }
 0x4a1   : > { %v2810_v42 = vmax.f32 %v2778_v13, 0.0 }
 0x4a2   : > { %v2809_v39 = vmax.f32 %v2777_v54, 0.0 }
 0x4a3   : > { %2842 = vst [vmem:[%s5454_s12 + $0xf8] sm:$0xff] %v2810_v42 }
 0x4a4   : > { %2841 = vst [vmem:[%s5454_s12 + $0xf0] sm:$0xff] %v2809_v39 }
 0x4a5   : > { %4141 = shalt.err (!%p4138_p4)
}
 0x4a6   : > { %s4142_s13 = scalar_lea.hbm %s5551_s23, 4096  ;;  %s4146_s14 = scalar_lea.hbm %s5606_s7, 8192 }
 0x4a7   : > { %p4143_p9 = scmp.ne.s32.totalorder %s5551_s23, %s4142_s13  ;;  %p4147_p8 = scmp.lt.u32.totalorder %s5551_s23, %s5606_s7 }
 0x4a8   : > { %p4148_p13 = scmp.lt.u32.totalorder %s4146_s14, %s4142_s13  ;;  %p4150_p10 = scmp.lt.u32.totalorder %s4142_s13, %s5551_s23 }
 0x4a9   : > { %p4144_p0 = pnand %p4143_p9, %p4409_p5 }
 0x4aa   : > { %p4149_p6 = por %p4148_p13, %p4147_p8 }
 0x4ab   : > { %p4145_p11 = pneg %p4144_p0 }
 0x4ac   : > { %p4151_p3 = por %p4150_p10, %p4149_p6 }
 0x4ae   : > { %p4152_p7 = pnand %p4151_p3, %p4145_p11 }
 0x4b0   : > { %4155 = shalt.err (!%p4152_p7)
}
 0x4b1   : > { %s4213_s16 = smov 128   ;;  %s4214_s29 = smov 8  }
 0x4b2   : > { %3894 = dma.vmem_to_hbm [thread:$0]  (%p4409_p5), %s5553_s21, 4096, %s5551_s23, %s2844_s11, %s4213_s16, %s4213_s16, %s4214_s29  }
 0x4b3 PF: > { %s5675_s8 = sld [smem:[#allocation16_spill]]  ;;  %s2872_s28 = sand.u32 1, %s4190_s24  }
 0x4b4   : > { %p5677_p1 = scmp.ge.s32.totalorder %s4202_s27, 2  ;;  %s2873_s30 = scalar_lea.sflag [#allocation5], %s2872_s28 }
 0x4b9   : > { %p5676_p12 = scmp.ne.s32.totalorder %s5675_s8, 0 }
 0x4bb   : > { %p3911_p2 = pnand %p5677_p1, %p5676_p12 }
 0x4bd   : > { %4185 = dma.done.wait (!%p3911_p2), %s2873_s30, 4096  }
 0x4be   : > { %4187 = vsyncadd (!%p3911_p2), %s2873_s30, 4294963200  ;;  %p22_p4 = scmp.ge.s32.totalorder %s4395_s22, 4   ;;  %s5678_s24 = smov %s4194_s25 }
 0x4bf   : > { %s5679_s25 = smov %s4198_s26  ;;  %s5680_s26 = smov %s4405_s18 }
 0x4c0   : > { %s5681_s27 = smov %s4395_s22  ;;  %24 = sbr.rel (!%p22_p4) target bundleno = 7 (0x7), region = 108 }
 0x4c7   :  { %2878 = vsyncpa [#allocation4], 1 }
 0x4c8   :  { %2880 = vsyncpa [#allocation4 + $0x1], 1 }
 0x4c9   :  { %2881 = vsyncpa [#allocation7], 1 }
 0x4ca   :  { %2882 = vsyncpa [#allocation10], 1 }
 0x4cb   :  { %2883 = vsyncpa [#allocation5], 1 }
 0x4cc   :  { %2885 = vsyncpa [#allocation5 + $0x1], 1 }

</bundles_post_ra>
